<compile_context>
chip_gen: v6e
topology: v6e:2x2x1
jax: 0.10.0
libtpu: 0.0.40
codegen_flags: <defaults>
</compile_context>

<pallas_src>
import jax
import jax.numpy as jnp
from jax.experimental import pallas as pl
from jax.experimental.pallas import tpu as pltpu

PAD = "<PAD>"
UNK = "<UNK>"


def _embedding_kernel(ids_ref, table_ref, out_ref):
    """One grid step: embed tile_rows * pack nodes.

    ids_ref   : (tile_rows, 2*pack) int32 -- per lane-group j, columns (2j, 2j+1)
                hold (token_id, v_tok + type_id) of node  row*pack + j.
    table_ref : (v_pad, h) f32            -- fused [tok_table; typ_table], zero-padded.
    out_ref   : (tile_rows, pack*h) f32   -- lane-dense output block (pack*h == 128).
    """
    tile_rows = out_ref.shape[0]
    v_pad, h = table_ref.shape
    pack = ids_ref.shape[1] // 2

    ids = ids_ref[...]                              # (tile_rows, 2*pack)
    table = table_ref[...]                          # (v_pad, h)

    # Hoisted column iota, shared by every lane group (built once per step).
    col = jax.lax.broadcasted_iota(jnp.int32, (tile_rows, v_pad), 1)

    # Static (unrolled) loop over lane groups; pack is small (e.g. 4 at h=32).
    for j in range(pack):
        tok = ids[:, 2 * j:2 * j + 1]               # (tile_rows, 1)
        typ = ids[:, 2 * j + 1:2 * j + 2]           # (tile_rows, 1), already offset
        # Two-hot selector row: exactly two ones per node (token row + type row),
        # so the single MXU matmul performs both gathers and the sum reduction.
        hot = ((col == tok) | (col == typ)).astype(jnp.float32)
        part = jnp.dot(hot, table, preferred_element_type=jnp.float32)
        out_ref[:, j * h:(j + 1) * h] = part        # static lane-range store


def embedding_forward(token_ids, type_ids, tok_table, typ_table, *,
                      token_pad=0, type_pad=0, tile_nodes=1024):
    """graph.ndata['x'] = tok_table[token_ids] + typ_table[type_ids]  -> (N, h_emb).

    NOTE: ids are assumed in-range (UNK/PAD mapping happens upstream in the
    PyTorch module's vocab handling); an out-of-range id yields a zero row.
    """
    n = token_ids.shape[0]
    v_tok, h = tok_table.shape
    v_typ = typ_table.shape[0]
    v_total = v_tok + v_typ

    # Pack several nodes' h-vectors into each 128-lane output row so the output
    # block (and its writeback DMA) is lane-dense. Fallback pack=1 if h does not
    # divide 128 (then the out block's last dim just equals h).
    pack = 128 // h if (h <= 128 and 128 % h == 0) else 1
    # Ensure tile_rows (= tile_nodes / pack) is a multiple of 8 (sublane rule).
    tile_nodes = pl.cdiv(tile_nodes, 8 * pack) * 8 * pack
    tile_rows = tile_nodes // pack

    # Pad the node dimension so the grid tiles evenly; padded rows use the PAD
    # ids (any in-range id works — those rows are sliced off after the call).
    n_pad = pl.cdiv(n, tile_nodes) * tile_nodes
    rows = n_pad // pack
    tok_p = jnp.full((n_pad,), max(int(token_pad), 0), jnp.int32).at[:n].set(
        token_ids.astype(jnp.int32))
    typ_p = jnp.full((n_pad,), max(int(type_pad), 0), jnp.int32).at[:n].set(
        type_ids.astype(jnp.int32))

    # Fused, UN-replicated table [tok_table; typ_table]; K padded toward a 128
    # multiple (zero rows, never selected) so the MXU contraction dim is clean.
    v_pad = pl.cdiv(v_total, 128) * 128
    fused = jnp.zeros((v_pad, h), jnp.float32)
    fused = fused.at[:v_tok].set(tok_table.astype(jnp.float32))
    fused = fused.at[v_tok:v_total].set(typ_table.astype(jnp.float32))

    # Per-node two-hot column positions: (token_id, v_tok + type_id), laid out so
    # row r holds the `pack` consecutive nodes r*pack .. r*pack+pack-1.
    ids2 = jnp.stack([tok_p, v_tok + typ_p], axis=1).reshape(rows, 2 * pack)

    grid = (n_pad // tile_nodes,)
    # NOTE: on v7x, a grid length that is a multiple of 2 lets ("parallel",)
    # shard evenly across both TensorCores.
    flops = 2 * n_pad * v_pad * h
    bytes_accessed = ids2.size * 4 + fused.size * 4 + rows * pack * h * 4

    out2 = pl.pallas_call(
        _embedding_kernel,
        out_shape=jax.ShapeDtypeStruct((rows, pack * h), jnp.float32),
        grid_spec=pltpu.PrefetchScalarGridSpec(
            num_scalar_prefetch=0,
            grid=grid,
            in_specs=[
                # ids: small per-step block, fully hidden by the pipeline.
                pl.BlockSpec((tile_rows, 2 * pack), lambda i: (i, 0)),
                # fused table: constant index_map -> DMA'd into VMEM once.
                pl.BlockSpec((v_pad, h), lambda i: (0, 0)),
            ],
            out_specs=pl.BlockSpec((tile_rows, pack * h), lambda i: (i, 0)),
        ),
        compiler_params=pltpu.CompilerParams(
            dimension_semantics=("parallel",),
            # Explicit VMEM budget with headroom; sized for v7x's smaller VMEM
            # (32 MiB scoped / 64 MiB physical), harmless on v5e/v6e. Actual
            # usage here is well under 1 MiB.
            vmem_limit_bytes=32 * 1024 * 1024),
        cost_estimate=pl.CostEstimate(
            flops=flops, transcendentals=0, bytes_accessed=bytes_accessed),
    )(ids2, fused)

    # Un-pack lanes back to one node per row and drop padded nodes.
    # TODO(synk): this (rows,128)->(n_pad,h) reshape costs a second HBM pass;
    # a fused consumer should read the packed (rows, 128) layout directly.
    return out2.reshape(n_pad, h)[:n]


if __name__ == "__main__":
    # --- build vocabularies exactly as INodeEmbedding.__init__ would ---
    token_to_id = {f"tok{i}": i for i in range(22)}
    token_to_id[PAD] = len(token_to_id)          # 22
    type_to_id = {f"type{i}": i for i in range(10)}
    type_to_id[PAD] = len(type_to_id)            # 10
    if UNK not in token_to_id:
        token_to_id[UNK] = len(token_to_id)      # 23
    if UNK not in type_to_id:
        type_to_id[UNK] = len(type_to_id)        # 11

    token_vocab = len(token_to_id)               # 24
    type_vocab = len(type_to_id)                 # 12
    token_pad = token_to_id[PAD]
    type_pad = type_to_id[PAD]

    h_emb = 32
    num_nodes = 2500    # not a tile multiple: exercises padding + a multi-step grid

    # --- deterministic parameter init (synthetic; no checkpoint load) ---
    key = jax.random.PRNGKey(0)
    k1, k2, k3, k4 = jax.random.split(key, 4)
    tok_table = jax.random.normal(k1, (token_vocab, h_emb), dtype=jnp.float32)
    typ_table = jax.random.normal(k2, (type_vocab, h_emb), dtype=jnp.float32)
    # nn.Embedding(padding_idx=...) zeroes the pad row.
    tok_table = tok_table.at[token_pad].set(0.0)
    typ_table = typ_table.at[type_pad].set(0.0)

    # --- synthetic graph node features (token id + type id per node) ---
    token_ids = jax.random.randint(k3, (num_nodes,), 0, token_vocab, dtype=jnp.int32)
    type_ids = jax.random.randint(k4, (num_nodes,), 0, type_vocab, dtype=jnp.int32)

    out = embedding_forward(token_ids, type_ids, tok_table, typ_table,
                            token_pad=token_pad, type_pad=type_pad,
                            tile_nodes=1024)
    out = jax.block_until_ready(out)

    # pure-JAX reference (sum reduction over the node-embedding list)
    ref = jnp.take(tok_table, token_ids, axis=0) + jnp.take(typ_table, type_ids, axis=0)
    assert out.shape == (num_nodes, h_emb)
    assert jnp.allclose(out, ref, atol=1e-6), "mismatch vs reference"

    # TODO(synk): DGL graph container semantics (writing into graph.ndata) have
    # no Pallas equivalent; the kernel returns the node-feature matrix directly.
    print("KERNEL_OK")
</pallas_src>

<mosaic_0001>
module attributes {stable_mosaic.version = 11 : i64} {
  func.func @_embedding_kernel(%arg0: i32, %arg1: memref<256x8xi32, #tpu.memory_space<vmem>>, %arg2: memref<128x32xf32, #tpu.memory_space<vmem>>, %arg3: memref<256x128xf32, #tpu.memory_space<vmem>>) attributes {dimension_semantics = [#tpu.dimension_semantics<parallel>], iteration_bounds = array<i64: 3>, scalar_prefetch = 0 : i64, scratch_operands = 0 : i64, tpu.core_type = #tpu.core_type<tc>, window_params = [{transform_indices = @transform_0, window_bounds = array<i64: 256, 8>}, {pipeline_mode = #tpu.pipeline_mode<synchronous>, transform_indices = @transform_1, window_bounds = array<i64: 128, 32>}, {transform_indices = @transform_2, window_bounds = array<i64: 256, 128>}]} {
    %c0 = arith.constant 0 : index
    %c0_0 = arith.constant 0 : index
    %0 = vector.load %arg1[%c0, %c0_0] : memref<256x8xi32, #tpu.memory_space<vmem>>, vector<256x8xi32>
    %c0_1 = arith.constant 0 : index
    %c0_2 = arith.constant 0 : index
    %1 = vector.load %arg2[%c0_1, %c0_2] : memref<128x32xf32, #tpu.memory_space<vmem>>, vector<128x32xf32>
    %2 = tpu.iota {dimensions = array<i32: 1>} : vector<256x128xi32>
    %3 = vector.extract_strided_slice %0 {offsets = [0, 0], sizes = [256, 1], strides = [1, 1]} : vector<256x8xi32> to vector<256x1xi32>
    %4 = vector.extract_strided_slice %0 {offsets = [0, 1], sizes = [256, 1], strides = [1, 1]} : vector<256x8xi32> to vector<256x1xi32>
    %5 = vector.broadcast %3 : vector<256x1xi32> to vector<256x128xi32>
    %6 = arith.cmpi eq, %2, %5 : vector<256x128xi32>
    %7 = vector.broadcast %4 : vector<256x1xi32> to vector<256x128xi32>
    %8 = arith.cmpi eq, %2, %7 : vector<256x128xi32>
    %9 = arith.ori %6, %8 : vector<256x128xi1>
    %10 = arith.extui %9 : vector<256x128xi1> to vector<256x128xi32>
    %11 = arith.sitofp %10 : vector<256x128xi32> to vector<256x128xf32>
    %cst = arith.constant dense<0.000000e+00> : vector<256x32xf32>
    %12 = tpu.matmul %11, %1, %cst {dimension_numbers = #tpu.dot_dimension_numbers<[1], [0], [0], [1], [0, 0, 1, 1], [], []>} : vector<256x128xf32>, vector<128x32xf32>, vector<256x32xf32> -> vector<256x32xf32>
    %c0_3 = arith.constant 0 : index
    %c0_4 = arith.constant 0 : index
    %13 = vector.load %arg3[%c0_3, %c0_4] : memref<256x128xf32, #tpu.memory_space<vmem>>, vector<256x32xf32>
    tpu.vector_store %arg3[%c0_3, %c0_4], %12 {strides = array<i32>} : memref<256x128xf32, #tpu.memory_space<vmem>>, vector<256x32xf32>,
    %14 = vector.extract_strided_slice %0 {offsets = [0, 2], sizes = [256, 1], strides = [1, 1]} : vector<256x8xi32> to vector<256x1xi32>
    %15 = vector.extract_strided_slice %0 {offsets = [0, 3], sizes = [256, 1], strides = [1, 1]} : vector<256x8xi32> to vector<256x1xi32>
    %16 = vector.broadcast %14 : vector<256x1xi32> to vector<256x128xi32>
    %17 = arith.cmpi eq, %2, %16 : vector<256x128xi32>
    %18 = vector.broadcast %15 : vector<256x1xi32> to vector<256x128xi32>
    %19 = arith.cmpi eq, %2, %18 : vector<256x128xi32>
    %20 = arith.ori %17, %19 : vector<256x128xi1>
    %21 = arith.extui %20 : vector<256x128xi1> to vector<256x128xi32>
    %22 = arith.sitofp %21 : vector<256x128xi32> to vector<256x128xf32>
    %cst_5 = arith.constant dense<0.000000e+00> : vector<256x32xf32>
    %23 = tpu.matmul %22, %1, %cst_5 {dimension_numbers = #tpu.dot_dimension_numbers<[1], [0], [0], [1], [0, 0, 1, 1], [], []>} : vector<256x128xf32>, vector<128x32xf32>, vector<256x32xf32> -> vector<256x32xf32>
    %c0_6 = arith.constant 0 : index
    %c32 = arith.constant 32 : index
    %24 = vector.load %arg3[%c0_6, %c32] : memref<256x128xf32, #tpu.memory_space<vmem>>, vector<256x32xf32>
    tpu.vector_store %arg3[%c0_6, %c32], %23 {strides = array<i32>} : memref<256x128xf32, #tpu.memory_space<vmem>>, vector<256x32xf32>,
    %25 = vector.extract_strided_slice %0 {offsets = [0, 4], sizes = [256, 1], strides = [1, 1]} : vector<256x8xi32> to vector<256x1xi32>
    %26 = vector.extract_strided_slice %0 {offsets = [0, 5], sizes = [256, 1], strides = [1, 1]} : vector<256x8xi32> to vector<256x1xi32>
    %27 = vector.broadcast %25 : vector<256x1xi32> to vector<256x128xi32>
    %28 = arith.cmpi eq, %2, %27 : vector<256x128xi32>
    %29 = vector.broadcast %26 : vector<256x1xi32> to vector<256x128xi32>
    %30 = arith.cmpi eq, %2, %29 : vector<256x128xi32>
    %31 = arith.ori %28, %30 : vector<256x128xi1>
    %32 = arith.extui %31 : vector<256x128xi1> to vector<256x128xi32>
    %33 = arith.sitofp %32 : vector<256x128xi32> to vector<256x128xf32>
    %cst_7 = arith.constant dense<0.000000e+00> : vector<256x32xf32>
    %34 = tpu.matmul %33, %1, %cst_7 {dimension_numbers = #tpu.dot_dimension_numbers<[1], [0], [0], [1], [0, 0, 1, 1], [], []>} : vector<256x128xf32>, vector<128x32xf32>, vector<256x32xf32> -> vector<256x32xf32>
    %c0_8 = arith.constant 0 : index
    %c64 = arith.constant 64 : index
    %35 = vector.load %arg3[%c0_8, %c64] : memref<256x128xf32, #tpu.memory_space<vmem>>, vector<256x32xf32>
    tpu.vector_store %arg3[%c0_8, %c64], %34 {strides = array<i32>} : memref<256x128xf32, #tpu.memory_space<vmem>>, vector<256x32xf32>,
    %36 = vector.extract_strided_slice %0 {offsets = [0, 6], sizes = [256, 1], strides = [1, 1]} : vector<256x8xi32> to vector<256x1xi32>
    %37 = vector.extract_strided_slice %0 {offsets = [0, 7], sizes = [256, 1], strides = [1, 1]} : vector<256x8xi32> to vector<256x1xi32>
    %38 = vector.broadcast %36 : vector<256x1xi32> to vector<256x128xi32>
    %39 = arith.cmpi eq, %2, %38 : vector<256x128xi32>
    %40 = vector.broadcast %37 : vector<256x1xi32> to vector<256x128xi32>
    %41 = arith.cmpi eq, %2, %40 : vector<256x128xi32>
    %42 = arith.ori %39, %41 : vector<256x128xi1>
    %43 = arith.extui %42 : vector<256x128xi1> to vector<256x128xi32>
    %44 = arith.sitofp %43 : vector<256x128xi32> to vector<256x128xf32>
    %cst_9 = arith.constant dense<0.000000e+00> : vector<256x32xf32>
    %45 = tpu.matmul %44, %1, %cst_9 {dimension_numbers = #tpu.dot_dimension_numbers<[1], [0], [0], [1], [0, 0, 1, 1], [], []>} : vector<256x128xf32>, vector<128x32xf32>, vector<256x32xf32> -> vector<256x32xf32>
    %c0_10 = arith.constant 0 : index
    %c96 = arith.constant 96 : index
    %46 = vector.load %arg3[%c0_10, %c96] : memref<256x128xf32, #tpu.memory_space<vmem>>, vector<256x32xf32>
    tpu.vector_store %arg3[%c0_10, %c96], %45 {strides = array<i32>} : memref<256x128xf32, #tpu.memory_space<vmem>>, vector<256x32xf32>,
    return
  }
  func.func @transform_0(%arg0: i32) -> (i32, i32) {
    %c0_i32 = arith.constant 0 : i32
    %c0_i32_0 = arith.constant 0 : i32
    return %arg0, %c0_i32 : i32, i32
  }
  func.func @transform_1(%arg0: i32) -> (i32, i32) {
    %c0_i32 = arith.constant 0 : i32
    %c0_i32_0 = arith.constant 0 : i32
    %c0_i32_1 = arith.constant 0 : i32
    return %c0_i32, %c0_i32_0 : i32, i32
  }
  func.func @transform_2(%arg0: i32) -> (i32, i32) {
    %c0_i32 = arith.constant 0 : i32
    %c0_i32_0 = arith.constant 0 : i32
    return %arg0, %c0_i32 : i32, i32
  }
}

</mosaic_0001>

<bundles_post_ra>
// kernel: tpu_custom_call.1
= control target key start
LH: loop header
LB: loop body
LE: loop exit
PB: predicated region body
PF: predicated region fallthrough
CT: control target
= control target key end

     0   :  { %7 = vsyncpa [#allocation3], 0  ;;  %s6029_s0 = inlined_call_operand.vmem [shape: s32[768,8], index: 0, kind: input, shape index: {}]   ;;  %s6030_s1 = inlined_call_operand.vmem [shape: f32[128,32], index: 1, kind: input, shape index: {}]   ;;  %s6031_s2 = inlined_call_operand.hbm [shape: f32[768,128], index: 2, kind: output, shape index: {}]  }
   0x1   :  { %9 = vsyncpa [#allocation3 + $0x1], 0  ;;  %s4107_s9 = smov 0   ;;  %s4109_s10 = smov 0  }
   0x2   :  { %s4111_s11 = smov 0   ;;  %s4113_s12 = smov 0  }
   0x3 LB: > { %s4128_s13 = sadd.s32 4294967295, %s4075_s12   ;;  %s3095_s14 = sadd.s32 4294967294, %s4075_s12   ;;  %s4075_s12 = sphi %s4113_s12, %s6152_s12   ;;  %s4071_s11 = sphi %s4111_s11, %s6151_s11   ;;  %s4067_s10 = sphi %s4109_s10, %s6150_s10   ;;  %s4063_s9 = sphi %s4107_s9, %s6149_s9  }
   0x4   : > { %s4132_s15 = sadd.s32 1, %s4075_s12   ;;  %s69_s16 = sadd.s32 1, %s4071_s11 }
   0x5   : > { %s66_s17 = ssub.s32 %s4075_s12, %s4132_s15  ;;  %p79_p0 = scmp.ne.s32.totalorder %s4071_s11, %s4067_s10 }
   0x6   : > { %p67_p1 = scmp.eq.s32.totalorder %s66_s17, 0  ;;  %p80_p2 = scmp.eq.s32.totalorder %s4128_s13, 2 }
   0x7   : > { %p85_p3 = scmp.ne.s32.totalorder %s4067_s10, %s4063_s9  ;;  %p86_p4 = scmp.eq.s32.totalorder %s3095_s14, 2 }
   0x8   : > { %s4143_s18 = scalar_select %p67_p1, %s4071_s11, %s69_s16  }
   0x9   : > { %p4145_p5 = por %p80_p2, %p79_p0  ;;  %p4149_p6 = por %p86_p4, %p85_p3 }
   0xa   : > { %p3098_p7 = scmp.ge.s32.totalorder %s4075_s12, 1  ;;  %p116_p8 = scmp.lt.s32.totalorder %s4075_s12, 4 }
   0xc   : > { %p117_p9 = pnand %p3098_p7, %p116_p8 }
   0xe   : > { %120 = sbr.rel (%p117_p9) target bundleno = 1575 (0x627), region = 28 }
  0x13   : > { %s3100_s21 = sshll.u32 %s4128_s13, 5  ;;  %v4077_v0 = vmov 0   ;;  %v4234_v19 = vld [vmem:[%s6030_s1 + $0x78] sm:$0xff]  ;;  %v4241_v20 = vld [vmem:[%s6030_s1 + $0x70] sm:$0xff]  ;;  %v4257_v23 = vld [vmem:[%s6030_s1 + $0x68] sm:$0xff]  ;;  %v4078_v46 = vmov 1  }
  0x14   : > { %3930 = vset.pattern.permute.xlu1 %v4077_v0  ;;  %3929 = vset.pattern.permute.xlu0 %v4077_v0  ;;  %p139_p10 = scmp.lt.s32.totalorder %s3100_s21, 95  ;;  %v4274_v26 = vld [vmem:[%s6030_s1 + $0x60] sm:$0xff]  ;;  %v4284_v27 = vld [vmem:[%s6030_s1 + $0x58] sm:$0xff]  ;;  %v4300_v30 = vld [vmem:[%s6030_s1 + $0x50] sm:$0xff]  ;;  %v4079_v54 = vmov 2   ;;  %s135_s8 = sand.u32 1, %s4067_s10  }
  0x15   : > { %3556 = vmatprep.subr.mxu0 %v4234_v19  ;;  %3636 = vmatprep.subr.mxu1 %v4234_v19  ;;  %v4317_v33 = vld [vmem:[%s6030_s1 + $0x48] sm:$0xff]  ;;  %v4327_v34 = vld [vmem:[%s6030_s1 + $0x40] sm:$0xff]  ;;  %v4343_v37 = vld [vmem:[%s6030_s1 + $0x38] sm:$0xff]  ;;  %s3099_s14 = sshll.u32 %s135_s8, 8  ;;  %s4084_s17 = smov 32  }
  0x16   : > { %s6154_s21 = smov (!%p139_p10, %s3100_s21), 95  ;;  %3557 = vmatpush3.msra.mxu0 %v4234_v19  ;;  %3637 = vmatpush3.msra.mxu1 %v4234_v19  ;;  %v4360_v40 = vld [vmem:[%s6030_s1 + $0x30] sm:$0xff]  ;;  %v4370_v41 = vld [vmem:[%s6030_s1 + $0x28] sm:$0xff]  ;;  %v4386_v44 = vld [vmem:[%s6030_s1 + $0x20] sm:$0xff]  ;;  %s5030_s16 = scalar_lea.vmem [#allocation2], %s3099_s14 }
  0x17   : > { %s3101_s22 = sshll.u32 %s6154_s21, 3  ;;  %3558 = vmatprep.subr.mxu0 %v4241_v20  ;;  %3638 = vmatprep.subr.mxu1 %v4241_v20  ;;  %6094 = vst [vmem:[#allocation13_spill] sm:$0xff] %v4360_v40  ;;  %6095 = vst [vmem:[#allocation14_spill] sm:$0xff] %v4370_v41  ;;  %v4399_v45 = vld [vmem:[%s6030_s1 + $0x18] sm:$0xff]  ;;  %v4407_v47 = vld [vmem:[%s6030_s1 + $0x10] sm:$0xff]  ;;  %s4088_s21 = smov 96  }
  0x18   : > { %s4159_s25 = scalar_lea.vmem %s6029_s0, %s3101_s22  ;;  %3559 = vmatpush3.msra.mxu0 %v4241_v20  ;;  %3639 = vmatpush3.msra.mxu1 %v4241_v20  ;;  %6097 = vst [vmem:[#allocation16_spill] sm:$0xff] %v4386_v44  ;;  %6098 = vst [vmem:[#allocation17_spill] sm:$0xff] %v4399_v45  ;;  %v4417_v48 = vld [vmem:[%s6030_s1 + $0x8] sm:$0xff]  ;;  %v4428_v49 = vld [vmem:[%s6030_s1] sm:$0xff]  ;;  %s3363_s22 = sshll.u32 %s4128_s13, 12 }
  0x19   : > { %v4162_v1 = vld [vmem:[%s4159_s25 + $0x10] sm:$0xff]  ;;  %v4165_v2 = vld [vmem:[%s4159_s25] sm:$0xff]  ;;  %v4170_v3 = vld [vmem:[%s4159_s25 + $0x18] sm:$0xff]  ;;  %3560 = vmatprep.subr.mxu0 %v4257_v23  ;;  %3640 = vmatprep.subr.mxu1 %v4257_v23  ;;  %6099 = vst [vmem:[#allocation18_spill] sm:$0xff] %v4407_v47  ;;  %s3033_s23 = sshll.u32 %s5030_s16, 4  ;;  %s5979_s27 = scalar_lea.hbm %s6031_s2, %s3363_s22  ;;  %s5981_s23 = int_to_ptr.vmem [resolvable:$true] %s3033_s23 }
  0x1a   : > { %202 = vperm.xlu1 %3930, %v4162_v1   ;;  %196 = vperm.xlu0 %3929, %v4165_v2   ;;  %v4173_v4 = vld [vmem:[%s4159_s25 + $0x8] sm:$0xff]  ;;  %v4181_v6 = vld [vmem:[%s4159_s25 + $0x20] sm:$0xff]  ;;  %v4186_v7 = vld [vmem:[%s4159_s25 + $0x38] sm:$0xff]  ;;  %6100 = vst [vmem:[#allocation19_spill] sm:$0xff] %v4417_v48  ;;  %s5989_s28 = scalar_lea.sflag [#allocation3], %s135_s8  ;;  %s4015_s13 = scalar_lea.vmem %s5981_s23, 4096 }
  0x1b   : > { %v4178_v5 = vld [vmem:[%s4159_s25 + $0x28] sm:$0xff]  ;;  %v4189_v8 = vld [vmem:[%s4159_s25 + $0x30] sm:$0xff]  ;;  %v4197_v10 = vld [vmem:[%s4159_s25 + $0x40] sm:$0xff]  ;;  %3561 = vmatpush3.msra.mxu0 %v4257_v23  ;;  %3641 = vmatpush3.msra.mxu1 %v4257_v23  ;;  %6101 = vst [vmem:[#allocation20_spill] sm:$0xff] %v4428_v49  ;;  %p4016_p11 = scmp.ne.s32.totalorder %s5981_s23, %s4015_s13  ;;  %s4089_s29 = smov [#allocation2]  }
  0x1c   : > { %v4194_v9 = vld [vmem:[%s4159_s25 + $0x48] sm:$0xff]  ;;  %v4202_v11 = vld [vmem:[%s4159_s25 + $0x58] sm:$0xff]  ;;  %v4205_v12 = vld [vmem:[%s4159_s25 + $0x50] sm:$0xff]  ;;  %3562 = vmatprep.subr.mxu0 %v4274_v26  ;;  %3642 = vmatprep.subr.mxu1 %v4274_v26  ;;  %s4019_s30 = sshll.u32 %s4089_s29, 4  ;;  %s4020_s30 = int_to_ptr.vmem [resolvable:$false] %s4019_s30 }
  0x1d   : > { %v4210_v13 = vld [vmem:[%s4159_s25 + $0x68] sm:$0xff]  ;;  %v4213_v14 = vld [vmem:[%s4159_s25 + $0x60] sm:$0xff]  ;;  %v4218_v15 = vld [vmem:[%s4159_s25 + $0x78] sm:$0xff]  ;;  %3563 = vmatpush3.msra.mxu0 %v4274_v26  ;;  %3643 = vmatpush3.msra.mxu1 %v4274_v26  ;;  %p4017_p12 = pnand %p4016_p11, %p4145_p5  ;;  %s4021_s3 = scalar_lea.vmem %s4020_s30, 8192 }
  0x1e   : > { %205 = vperm.xlu1 %3930, %v4170_v3   ;;  %199 = vperm.xlu0 %3929, %v4173_v4   ;;  %v4221_v16 = vld [vmem:[%s4159_s25 + $0x70] sm:$0xff]  ;;  %v4226_v17 = vld [vmem:[%s4159_s25 + $0x88] sm:$0xff]  ;;  %v4229_v18 = vld [vmem:[%s4159_s25 + $0x80] sm:$0xff]  ;;  %p4022_p0 = scmp.lt.s32.totalorder %s5981_s23, %s4020_s30  ;;  %p4023_p1 = scmp.lt.s32.totalorder %s4021_s3, %s4015_s13 }
  0x1f   : > { %6086 = vst [vmem:[#allocation5_spill] sm:$0xff] %v4221_v16  ;;  %6087 = vst [vmem:[#allocation6_spill] sm:$0xff] %v4229_v18  ;;  %v4244_v21 = vld [vmem:[%s4159_s25 + $0x98] sm:$0xff]  ;;  %v4247_v22 = vld [vmem:[%s4159_s25 + $0x90] sm:$0xff]  ;;  %3564 = vmatprep.subr.mxu0 %v4284_v27  ;;  %3644 = vmatprep.subr.mxu1 %v4284_v27  ;;  %p4018_p13 = pneg %p4017_p12 }
  0x20   : > { %6088 = vst [vmem:[#allocation7_spill] sm:$0xff] %v4247_v22  ;;  %v4263_v24 = vld [vmem:[%s4159_s25 + $0xa8] sm:$0xff]  ;;  %v4266_v25 = vld [vmem:[%s4159_s25 + $0xa0] sm:$0xff]  ;;  %v4287_v28 = vld [vmem:[%s4159_s25 + $0xb8] sm:$0xff]  ;;  %3565 = vmatpush3.msra.mxu0 %v4284_v27  ;;  %3645 = vmatpush3.msra.mxu1 %v4284_v27  ;;  %p4024_p2 = por %p4023_p1, %p4022_p0 }
  0x21   : > { %6089 = vst [vmem:[#allocation8_spill] sm:$0xff] %v4266_v25  ;;  %v4290_v29 = vld [vmem:[%s4159_s25 + $0xb0] sm:$0xff]  ;;  %v4306_v31 = vld [vmem:[%s4159_s25 + $0xc8] sm:$0xff]  ;;  %v4309_v32 = vld [vmem:[%s4159_s25 + $0xc0] sm:$0xff]  ;;  %3566 = vmatprep.subr.mxu0 %v4300_v30  ;;  %3646 = vmatprep.subr.mxu1 %v4300_v30 }
  0x22   : > { %211 = vperm.xlu1 %3930, %v4178_v5   ;;  %208 = vperm.xlu0 %3929, %v4181_v6   ;;  %6090 = vst [vmem:[#allocation9_spill] sm:$0xff] %v4290_v29  ;;  %6091 = vst [vmem:[#allocation10_spill] sm:$0xff] %v4309_v32  ;;  %v4330_v35 = vld [vmem:[%s4159_s25 + $0xd8] sm:$0xff]  ;;  %v4333_v36 = vld [vmem:[%s4159_s25 + $0xd0] sm:$0xff]  ;;  %p4025_p3 = pnand %p4024_p2, %p4018_p13 }
  0x23   : > { %3567 = vmatpush3.msra.mxu0 %v4300_v30  ;;  %3647 = vmatpush3.msra.mxu1 %v4300_v30  ;;  %6092 = vst [vmem:[#allocation11_spill] sm:$0xff] %v4333_v36  ;;  %v4349_v38 = vld [vmem:[%s4159_s25 + $0xe8] sm:$0xff]  ;;  %v4352_v39 = vld [vmem:[%s4159_s25 + $0xe0] sm:$0xff]  ;;  %v4373_v42 = vld [vmem:[%s4159_s25 + $0xf8] sm:$0xff] }
  0x24   : > { %3568 = vmatprep.subr.mxu0 %v4317_v33  ;;  %3648 = vmatprep.subr.mxu1 %v4317_v33  ;;  %6093 = vst [vmem:[#allocation12_spill] sm:$0xff] %v4352_v39  ;;  %v4376_v43 = vld [vmem:[%s4159_s25 + $0xf0] sm:$0xff] }
  0x25   : > { %3569 = vmatpush3.msra.mxu0 %v4317_v33  ;;  %3649 = vmatpush3.msra.mxu1 %v4317_v33  ;;  %6096 = vst [vmem:[#allocation15_spill] sm:$0xff] %v4376_v43 }
  0x26   : > { %217 = vperm.xlu1 %3930, %v4186_v7   ;;  %214 = vperm.xlu0 %3929, %v4189_v8  }
  0x27   : > { %3570 = vmatprep.subr.mxu0 %v4327_v34  ;;  %3650 = vmatprep.subr.mxu1 %v4327_v34 }
  0x28   : > { %3571 = vmatpush3.msra.mxu0 %v4327_v34  ;;  %3651 = vmatpush3.msra.mxu1 %v4327_v34 }
  0x29   : > { %3572 = vmatprep.subr.mxu0 %v4343_v37  ;;  %3652 = vmatprep.subr.mxu1 %v4343_v37 }
  0x2a   : > { %223 = vperm.xlu1 %3930, %v4194_v9   ;;  %220 = vperm.xlu0 %3929, %v4197_v10  }
  0x2b   : > { %3573 = vmatpush3.msra.mxu0 %v4343_v37  ;;  %3653 = vmatpush3.msra.mxu1 %v4343_v37 }
  0x2c   : > { %3574 = vmatprep.subr.mxu0 %v4360_v40  ;;  %3654 = vmatprep.subr.mxu1 %v4360_v40 }
  0x2d   : > { %3575 = vmatpush3.msra.mxu0 %v4360_v40  ;;  %3655 = vmatpush3.msra.mxu1 %v4360_v40 }
  0x2e   : > { %229 = vperm.xlu1 %3930, %v4202_v11   ;;  %226 = vperm.xlu0 %3929, %v4205_v12  }
  0x2f   : > { %3576 = vmatprep.subr.mxu0 %v4370_v41  ;;  %3656 = vmatprep.subr.mxu1 %v4370_v41 }
  0x30   : > { %3577 = vmatpush3.msra.mxu0 %v4370_v41  ;;  %3657 = vmatpush3.msra.mxu1 %v4370_v41 }
  0x31   : > { %3578 = vmatprep.subr.mxu0 %v4386_v44  ;;  %3658 = vmatprep.subr.mxu1 %v4386_v44 }
  0x32   : > { %235 = vperm.xlu1 %3930, %v4210_v13   ;;  %232 = vperm.xlu0 %3929, %v4213_v14  }
  0x33   : > { %3579 = vmatpush3.msra.mxu0 %v4386_v44  ;;  %3659 = vmatpush3.msra.mxu1 %v4386_v44 }
  0x34   : > { %3580 = vmatprep.subr.mxu0 %v4399_v45  ;;  %3660 = vmatprep.subr.mxu1 %v4399_v45 }
  0x35   : > { %3581 = vmatpush3.msra.mxu0 %v4399_v45  ;;  %3661 = vmatpush3.msra.mxu1 %v4399_v45 }
  0x36   : > { %241 = vperm.xlu1 %3930, %v4218_v15   ;;  %238 = vperm.xlu0 %3929, %v4221_v16  }
  0x37   : > { %3582 = vmatprep.subr.mxu0 %v4407_v47  ;;  %3662 = vmatprep.subr.mxu1 %v4407_v47 }
  0x38   : > { %3583 = vmatpush3.msra.mxu0 %v4407_v47  ;;  %3663 = vmatpush3.msra.mxu1 %v4407_v47 }
  0x39   : > { %3584 = vmatprep.subr.mxu0 %v4417_v48  ;;  %3664 = vmatprep.subr.mxu1 %v4417_v48 }
  0x3a   : > { %247 = vperm.xlu1 %3930, %v4226_v17   ;;  %244 = vperm.xlu0 %3929, %v4229_v18  }
  0x3b   : > { %3585 = vmatpush3.msra.mxu0 %v4417_v48  ;;  %3665 = vmatpush3.msra.mxu1 %v4417_v48 }
  0x3c   : > { %3586 = vmatprep.subr.mxu0 %v4428_v49  ;;  %3666 = vmatprep.subr.mxu1 %v4428_v49 }
  0x3d   : > { %3587 = vmatpush3.msra.mxu0 %v4428_v49  ;;  %3667 = vmatpush3.msra.mxu1 %v4428_v49 }
  0x3e   : > { %253 = vperm.xlu1 %3930, %v4244_v21   ;;  %250 = vperm.xlu0 %3929, %v4247_v22  }
  0x3f   : > { %3716 = vmatprep.subr.mxu0 %v4234_v19  ;;  %3796 = vmatprep.subr.mxu1 %v4234_v19 }
  0x42   : > { %259 = vperm.xlu1 %3930, %v4263_v24   ;;  %256 = vperm.xlu0 %3929, %v4266_v25  }
  0x46   : > { %265 = vperm.xlu1 %3930, %v4287_v28   ;;  %262 = vperm.xlu0 %3929, %v4290_v29  }
  0x4a   : > { %271 = vperm.xlu1 %3930, %v4306_v31   ;;  %268 = vperm.xlu0 %3929, %v4309_v32  }
  0x4e   : > { %277 = vperm.xlu1 %3930, %v4330_v35   ;;  %274 = vperm.xlu0 %3929, %v4333_v36  }
  0x52   : > { %283 = vperm.xlu1 %3930, %v4349_v38   ;;  %280 = vperm.xlu0 %3929, %v4352_v39  }
  0x56   : > { %289 = vperm.xlu1 %3930, %v4373_v42   ;;  %286 = vperm.xlu0 %3929, %v4376_v43  }
  0x5a   : > { %3932 = vset.pattern.permute.xlu1 %v4078_v46  ;;  %3931 = vset.pattern.permute.xlu0 %v4078_v46 }
  0x5b   : > { %327 = vperm.xlu1 %3932, %v4173_v4   ;;  %324 = vperm.xlu0 %3931, %v4165_v2  }
  0x5f   : > { %330 = vperm.xlu1 %3932, %v4162_v1   ;;  %333 = vperm.xlu0 %3931, %v4170_v3  }
  0x63   : > { %336 = vperm.xlu1 %3932, %v4181_v6   ;;  %339 = vperm.xlu0 %3931, %v4178_v5  }
  0x67   : > { %342 = vperm.xlu1 %3932, %v4189_v8   ;;  %345 = vperm.xlu0 %3931, %v4186_v7  }
  0x6b   : > { %348 = vperm.xlu1 %3932, %v4197_v10   ;;  %351 = vperm.xlu0 %3931, %v4194_v9  }
  0x6f   : > { %354 = vperm.xlu1 %3932, %v4205_v12   ;;  %357 = vperm.xlu0 %3931, %v4202_v11  }
  0x73   : > { %360 = vperm.xlu1 %3932, %v4213_v14   ;;  %363 = vperm.xlu0 %3931, %v4210_v13  }
  0x77   : > { %366 = vperm.xlu1 %3932, %v4221_v16   ;;  %369 = vperm.xlu0 %3931, %v4218_v15  }
  0x7b   : > { %372 = vperm.xlu1 %3932, %v4229_v18   ;;  %375 = vperm.xlu0 %3931, %v4226_v17  }
  0x7f   : > { %378 = vperm.xlu1 %3932, %v4247_v22   ;;  %381 = vperm.xlu0 %3931, %v4244_v21  }
  0x83   : > { %384 = vperm.xlu1 %3932, %v4266_v25   ;;  %387 = vperm.xlu0 %3931, %v4263_v24  }
  0x87   : > { %390 = vperm.xlu1 %3932, %v4290_v29   ;;  %393 = vperm.xlu0 %3931, %v4287_v28  }
  0x8b   : > { %396 = vperm.xlu1 %3932, %v4309_v32   ;;  %399 = vperm.xlu0 %3931, %v4306_v31  }
  0x8f   : > { %402 = vperm.xlu1 %3932, %v4333_v36   ;;  %405 = vperm.xlu0 %3931, %v4330_v35  }
  0x93   : > { %408 = vperm.xlu1 %3932, %v4352_v39   ;;  %411 = vperm.xlu0 %3931, %v4349_v38  }
  0x95   : > { %v4465_v50 = vpop.permute.xlu1 %202  ;;  %v4467_v51 = vpop.permute.xlu0 %196 }
  0x97   : > { %414 = vperm.xlu1 %3932, %v4376_v43   ;;  %417 = vperm.xlu0 %3931, %v4373_v42  }
  0x99   : > { %v4471_v52 = vpop.permute.xlu1 %205  ;;  %v4473_v53 = vpop.permute.xlu0 %199 }
  0x9b   : > { %3933 = vset.pattern.permute.xlu1 %v4079_v54  ;;  %3934 = vset.pattern.permute.xlu0 %v4079_v54 }
  0x9c   : > { %806 = vperm.xlu1 %3933, %v4165_v2   ;;  %809 = vperm.xlu0 %3934, %v4173_v4  }
  0x9d   : > { %v4477_v55 = vpop.permute.xlu1 %211  ;;  %v4479_v56 = vpop.permute.xlu0 %208 }
  0xa0   : > { %812 = vperm.xlu1 %3933, %v4162_v1   ;;  %818 = vperm.xlu0 %3934, %v4181_v6  }
  0xa1   : > { %v4483_v57 = vpop.permute.xlu1 %217  ;;  %v4485_v58 = vpop.permute.xlu0 %214 }
  0xa4   : > { %815 = vperm.xlu1 %3933, %v4170_v3   ;;  %824 = vperm.xlu0 %3934, %v4189_v8  }
  0xa5   : > { %v4489_v59 = vpop.permute.xlu1 %223  ;;  %v4491_v60 = vpop.permute.xlu0 %220 }
  0xa8   : > { %821 = vperm.xlu1 %3933, %v4178_v5   ;;  %830 = vperm.xlu0 %3934, %v4197_v10  }
  0xa9   : > { %v4495_v61 = vpop.permute.xlu1 %229  ;;  %v4497_v62 = vpop.permute.xlu0 %226 }
  0xac   : > { %827 = vperm.xlu1 %3933, %v4186_v7   ;;  %836 = vperm.xlu0 %3934, %v4205_v12  }
  0xad   : > { %v4501_v63 = vpop.permute.xlu1 %235  ;;  %v4503_v0 = vpop.permute.xlu0 %232 }
  0xb0   : > { %833 = vperm.xlu1 %3933, %v4194_v9   ;;  %842 = vperm.xlu0 %3934, %v4213_v14  }
  0xb1   : > { %v4507_v46 = vpop.permute.xlu1 %241  ;;  %v4509_v54 = vpop.permute.xlu0 %238 }
  0xb4   : > { %839 = vperm.xlu1 %3933, %v4202_v11   ;;  %848 = vperm.xlu0 %3934, %v4221_v16  }
  0xb5   : > { %v4513_v49 = vpop.permute.xlu1 %247  ;;  %v4515_v48 = vpop.permute.xlu0 %244 }
  0xb8   : > { %845 = vperm.xlu1 %3933, %v4210_v13   ;;  %854 = vperm.xlu0 %3934, %v4229_v18  }
  0xb9   : > { %v4519_v47 = vpop.permute.xlu1 %253  ;;  %v4521_v45 = vpop.permute.xlu0 %250 }
  0xba   : > { %6102 = vst [vmem:[#allocation21_spill] sm:$0xff] %v4519_v47 }
  0xbc   : > { %851 = vperm.xlu1 %3933, %v4218_v15   ;;  %860 = vperm.xlu0 %3934, %v4247_v22  }
  0xbd   : > { %v4525_v44 = vpop.permute.xlu1 %259  ;;  %v4527_v41 = vpop.permute.xlu0 %256 }
  0xbe   : > { %6103 = vst [vmem:[#allocation22_spill] sm:$0xff] %v4525_v44 }
  0xc0   : > { %857 = vperm.xlu1 %3933, %v4226_v17   ;;  %866 = vperm.xlu0 %3934, %v4266_v25  }
  0xc1   : > { %v4531_v40 = vpop.permute.xlu1 %265  ;;  %v4533_v16 = vpop.permute.xlu0 %262 }
  0xc2   : > { %6104 = vst [vmem:[#allocation23_spill] sm:$0xff] %v4531_v40 }
  0xc4   : > { %863 = vperm.xlu1 %3933, %v4244_v21   ;;  %872 = vperm.xlu0 %3934, %v4290_v29   ;;  %v193_v29 = vlaneseq }
  0xc5   : > { %v4537_v18 = vpop.permute.xlu1 %271  ;;  %v4539_v47 = vpop.permute.xlu0 %268 }
  0xc6   : > { %6105 = vst [vmem:[#allocation24_spill] sm:$0xff] %v4537_v18 }
  0xc8   : > { %869 = vperm.xlu1 %3933, %v4263_v24   ;;  %878 = vperm.xlu0 %3934, %v4309_v32  }
  0xc9   : > { %v4543_v22 = vpop.permute.xlu1 %277  ;;  %v4545_v44 = vpop.permute.xlu0 %274 }
  0xca   : > { %6106 = vst [vmem:[#allocation25_spill] sm:$0xff] %v4543_v22  ;;  %6107 = vst [vmem:[#allocation26_spill] sm:$0xff] %v4545_v44  ;;  %v4561_v22 = vand.u32 127, %v193_v29  ;;  %v6064_v29 = vmov 1.0  }
  0xcc   : > { %875 = vperm.xlu1 %3933, %v4287_v28   ;;  %884 = vperm.xlu0 %3934, %v4333_v36   ;;  %vm292_vm0 = vcmp.eq.s32.totalorder %v4561_v22, %v4473_v53  ;;  %vm291_vm4 = vcmp.eq.s32.totalorder %v4561_v22, %v4467_v51  ;;  %vm293_vm6 = vcmp.eq.s32.totalorder %v4561_v22, %v4465_v50 }
  0xcd   : > { %v4549_v25 = vpop.permute.xlu1 %283  ;;  %v4551_v40 = vpop.permute.xlu0 %280  ;;  %vm294_vm9 = vcmp.eq.s32.totalorder %v4561_v22, %v4471_v52  ;;  %vm295_vm12 = vcmp.eq.s32.totalorder %v4561_v22, %v4479_v56  ;;  %vm296_vm15 = vcmp.eq.s32.totalorder %v4561_v22, %v4477_v55 }
  0xd0   : > { %881 = vperm.xlu1 %3933, %v4306_v31   ;;  %890 = vperm.xlu0 %3934, %v4352_v39   ;;  %v4080_v39 = vmov 3  }
  0xd1   : > { %v4555_v18 = vpop.permute.xlu1 %289  ;;  %v4557_v32 = vpop.permute.xlu0 %286 }
  0xd4   : > { %887 = vperm.xlu1 %3933, %v4330_v35   ;;  %896 = vperm.xlu0 %3934, %v4376_v43  }
  0xd6   : > { %v328_v36 = vpop.permute.xlu1 %327  ;;  %v325_v44 = vpop.permute.xlu0 %324 }
  0xd7   : > { %vm420_vm1 = vcmp.eq.s32.totalorder %v4561_v22, %v328_v36  ;;  %vm419_vm2 = vcmp.eq.s32.totalorder %v4561_v22, %v325_v44 }
  0xd8   : > { %vm452_vm3 = vmor %vm292_vm0, %vm420_vm1  ;;  %893 = vperm.xlu1 %3933, %v4349_v38   ;;  %3935 = vset.pattern.permute.xlu0 %v4080_v39 }
  0xd9   : > { %934 = vperm.xlu0 %3935, %v4165_v2   ;;  %vm451_vm5 = vmor %vm291_vm4, %vm419_vm2  ;;  %vm297_vm2 = vcmp.eq.s32.totalorder %v4561_v22, %v4485_v58  ;;  %v6112_v58 = vld [vmem:[#allocation6_spill] sm:$0xff] }
  0xda   : > { %3588 = vmatprep.mubr.msk.f32.mxu0 %vm451_vm5, %v6064_v29  ;;  %v331_v43 = vpop.permute.xlu1 %330  ;;  %v334_v53 = vpop.permute.xlu0 %333  ;;  %vm298_vm5 = vcmp.eq.s32.totalorder %v4561_v22, %v4483_v57  ;;  %v6110_v57 = vld [vmem:[#allocation13_spill] sm:$0xff] }
  0xdb   : > { %vm421_vm7 = vcmp.eq.s32.totalorder %v4561_v22, %v331_v43  ;;  %3589 = vmatmul.mubr.msk.f32.vlgmr.msra.gmra.mxu0 %vm452_vm3, %v6064_v29  ;;  %vm422_vm8 = vcmp.eq.s32.totalorder %v4561_v22, %v334_v53 }
  0xdc   : > { %vm453_vm10 = vmor %vm293_vm6, %vm421_vm7  ;;  %899 = vperm.xlu1 %3933, %v4373_v42   ;;  %3717 = vmatpush3.msra.mxu0 %v4234_v19 }
  0xdd   : > { %vm454_vm11 = vmor %vm294_vm9, %vm422_vm8  ;;  %943 = vperm.xlu0 %3935, %v4170_v3   ;;  %3591 = vmatprep.mubr.msk.f32.mxu0 %vm453_vm10, %v6064_v29  ;;  %vm299_vm8 = vcmp.eq.s32.totalorder %v4561_v22, %v4491_v60  ;;  %v6113_v60 = vld [vmem:[#allocation14_spill] sm:$0xff] }
  0xde   : > { %v337_v36 = vpop.permute.xlu1 %336  ;;  %v340_v44 = vpop.permute.xlu0 %339  ;;  %3718 = vmatprep.subr.mxu0 %v4241_v20 }
  0xdf   : > { %vm423_vm13 = vcmp.eq.s32.totalorder %v4561_v22, %v337_v36  ;;  %3592 = vmatmul.mubr.msk.f32.gmra.mxu0 %vm454_vm11, %v6064_v29  ;;  %vm424_vm14 = vcmp.eq.s32.totalorder %v4561_v22, %v340_v44  ;;  %vm300_vm11 = vcmp.eq.s32.totalorder %v4561_v22, %v4489_v59  ;;  %v6119_v36 = vld [vmem:[#allocation17_spill] sm:$0xff]  ;;  %v6120_v44 = vld [vmem:[#allocation26_spill] sm:$0xff] }
  0xe0   : > { %vm455_vm0 = vmor %vm295_vm12, %vm423_vm13  ;;  %3936 = vset.pattern.permute.xlu1 %v4080_v39  ;;  %3719 = vmatpush3.msra.mxu0 %v4241_v20 }
  0xe1   : > { %vm456_vm1 = vmor %vm296_vm15, %vm424_vm14  ;;  %937 = vperm.xlu1 %3936, %v4173_v4   ;;  %949 = vperm.xlu0 %3935, %v4178_v5   ;;  %vm301_vm14 = vcmp.eq.s32.totalorder %v4561_v22, %v4497_v62  ;;  %v6115_v62 = vld [vmem:[#allocation7_spill] sm:$0xff] }
  0xe2   : > { %3594 = vmatprep.mubr.msk.f32.mxu0 %vm455_vm0, %v6064_v29  ;;  %v343_v19 = vpop.permute.xlu1 %342  ;;  %v346_v43 = vpop.permute.xlu0 %345  ;;  %3720 = vmatprep.subr.mxu0 %v4257_v23 }
  0xe3   : > { %vm425_vm3 = vcmp.eq.s32.totalorder %v4561_v22, %v343_v19  ;;  %3595 = vmatmul.mubr.msk.f32.gmra.mxu0 %vm456_vm1, %v6064_v29  ;;  %vm426_vm4 = vcmp.eq.s32.totalorder %v4561_v22, %v346_v43  ;;  %vm302_vm1 = vcmp.eq.s32.totalorder %v4561_v22, %v4495_v61  ;;  %v6114_v61 = vld [vmem:[#allocation23_spill] sm:$0xff]  ;;  %v6121_v19 = vld [vmem:[#allocation25_spill] sm:$0xff] }
  0xe4   : > { %vm457_vm6 = vmor %vm297_vm2, %vm425_vm3  ;;  %3721 = vmatpush3.msra.mxu0 %v4257_v23  ;;  %v6122_v43 = vld [vmem:[#allocation9_spill] sm:$0xff] }
  0xe5   : > { %vm458_vm7 = vmor %vm298_vm5, %vm426_vm4  ;;  %940 = vperm.xlu1 %3936, %v4162_v1   ;;  %955 = vperm.xlu0 %3935, %v4186_v7   ;;  %vm303_vm4 = vcmp.eq.s32.totalorder %v4561_v22, %v4503_v0  ;;  %v6116_v0 = vld [vmem:[#allocation16_spill] sm:$0xff] }
  0xe6   : > { %3597 = vmatprep.mubr.msk.f32.mxu0 %vm457_vm6, %v6064_v29  ;;  %v349_v20 = vpop.permute.xlu1 %348  ;;  %v352_v39 = vpop.permute.xlu0 %351  ;;  %3722 = vmatprep.subr.mxu0 %v4274_v26 }
  0xe7   : > { %vm427_vm9 = vcmp.eq.s32.totalorder %v4561_v22, %v349_v20  ;;  %3598 = vmatmul.mubr.msk.f32.gmra.mxu0 %vm458_vm7, %v6064_v29  ;;  %vm428_vm10 = vcmp.eq.s32.totalorder %v4561_v22, %v352_v39  ;;  %vm304_vm7 = vcmp.eq.s32.totalorder %v4561_v22, %v4501_v63 }
  0xe8   : > { %vm459_vm12 = vmor %vm299_vm8, %vm427_vm9  ;;  %3723 = vmatpush3.msra.mxu0 %v4274_v26 }
  0xe9   : > { %vm460_vm13 = vmor %vm300_vm11, %vm428_vm10  ;;  %946 = vperm.xlu1 %3936, %v4181_v6   ;;  %961 = vperm.xlu0 %3935, %v4194_v9   ;;  %vm305_vm10 = vcmp.eq.s32.totalorder %v4561_v22, %v4509_v54  ;;  %v6118_v54 = vld [vmem:[#allocation8_spill] sm:$0xff] }
  0xea   : > { %3600 = vmatprep.mubr.msk.f32.mxu0 %vm459_vm12, %v6064_v29  ;;  %v355_v23 = vpop.permute.xlu1 %354  ;;  %v358_v50 = vpop.permute.xlu0 %357  ;;  %3724 = vmatprep.subr.mxu0 %v4284_v27 }
  0xeb   : > { %vm429_vm15 = vcmp.eq.s32.totalorder %v4561_v22, %v355_v23  ;;  %3601 = vmatmul.mubr.msk.f32.gmra.mxu0 %vm460_vm13, %v6064_v29  ;;  %vm430_vm0 = vcmp.eq.s32.totalorder %v4561_v22, %v358_v50  ;;  %vm306_vm13 = vcmp.eq.s32.totalorder %v4561_v22, %v4507_v46  ;;  %v6117_v46 = vld [vmem:[#allocation24_spill] sm:$0xff]  ;;  %v6123_v23 = vld [vmem:[#allocation18_spill] sm:$0xff] }
  0xec   : > { %vm461_vm2 = vmor %vm301_vm14, %vm429_vm15  ;;  %3725 = vmatpush3.msra.mxu0 %v4284_v27  ;;  %v6124_v50 = vld [vmem:[#allocation10_spill] sm:$0xff] }
  0xed   : > { %vm462_vm3 = vmor %vm302_vm1, %vm430_vm0  ;;  %952 = vperm.xlu1 %3936, %v4189_v8   ;;  %967 = vperm.xlu0 %3935, %v4202_v11   ;;  %vm307_vm0 = vcmp.eq.s32.totalorder %v4561_v22, %v4515_v48 }
  0xee   : > { %3603 = vmatprep.mubr.msk.f32.mxu0 %vm461_vm2, %v6064_v29  ;;  %v361_v26 = vpop.permute.xlu1 %360  ;;  %v364_v51 = vpop.permute.xlu0 %363  ;;  %3726 = vmatprep.subr.mxu0 %v4300_v30 }
  0xef   : > { %vm431_vm5 = vcmp.eq.s32.totalorder %v4561_v22, %v361_v26  ;;  %3604 = vmatmul.mubr.msk.f32.gmra.mxu0 %vm462_vm3, %v6064_v29  ;;  %vm432_vm6 = vcmp.eq.s32.totalorder %v4561_v22, %v364_v51  ;;  %vm308_vm3 = vcmp.eq.s32.totalorder %v4561_v22, %v4513_v49  ;;  %v6109_v49 = vld [vmem:[#allocation5_spill] sm:$0xff]  ;;  %v6125_v51 = vld [vmem:[#allocation19_spill] sm:$0xff] }
  0xf0   : > { %vm463_vm8 = vmor %vm303_vm4, %vm431_vm5  ;;  %3727 = vmatpush3.msra.mxu0 %v4300_v30 }
  0xf1   : > { %vm464_vm9 = vmor %vm304_vm7, %vm432_vm6  ;;  %958 = vperm.xlu1 %3936, %v4197_v10   ;;  %973 = vperm.xlu0 %3935, %v4210_v13   ;;  %vm309_vm6 = vcmp.eq.s32.totalorder %v4561_v22, %v4521_v45 }
  0xf2   : > { %3606 = vmatprep.mubr.msk.f32.mxu0 %vm463_vm8, %v6064_v29  ;;  %v367_v27 = vpop.permute.xlu1 %366  ;;  %v370_v52 = vpop.permute.xlu0 %369  ;;  %3728 = vmatprep.subr.mxu0 %v4317_v33 }
  0xf3   : > { %vm433_vm11 = vcmp.eq.s32.totalorder %v4561_v22, %v367_v27  ;;  %3607 = vmatmul.mubr.msk.f32.gmra.mxu0 %vm464_vm9, %v6064_v29  ;;  %vm434_vm12 = vcmp.eq.s32.totalorder %v4561_v22, %v370_v52 }
  0xf4   : > { %vm465_vm14 = vmor %vm305_vm10, %vm433_vm11  ;;  %3729 = vmatpush3.msra.mxu0 %v4317_v33 }
  0xf5   : > { %vm466_vm15 = vmor %vm306_vm13, %vm434_vm12  ;;  %964 = vperm.xlu1 %3936, %v4205_v12   ;;  %979 = vperm.xlu0 %3935, %v4218_v15   ;;  %vm311_vm12 = vcmp.eq.s32.totalorder %v4561_v22, %v4527_v41 }
  0xf6   : > { %3609 = vmatprep.mubr.msk.f32.mxu0 %vm465_vm14, %v6064_v29  ;;  %v373_v30 = vpop.permute.xlu1 %372  ;;  %v376_v55 = vpop.permute.xlu0 %375  ;;  %3730 = vmatprep.subr.mxu0 %v4327_v34 }
  0xf7   : > { %vm435_vm1 = vcmp.eq.s32.totalorder %v4561_v22, %v373_v30  ;;  %3610 = vmatmul.mubr.msk.f32.gmra.mxu0 %vm466_vm15, %v6064_v29  ;;  %vm436_vm2 = vcmp.eq.s32.totalorder %v4561_v22, %v376_v55 }
  0xf8   : > { %vm467_vm4 = vmor %vm307_vm0, %vm435_vm1  ;;  %3731 = vmatpush3.msra.mxu0 %v4327_v34  ;;  %v6108_v34 = vld [vmem:[#allocation21_spill] sm:$0xff] }
  0xf9   : > { %vm468_vm5 = vmor %vm308_vm3, %vm436_vm2  ;;  %970 = vperm.xlu1 %3936, %v4213_v14   ;;  %985 = vperm.xlu0 %3935, %v4226_v17   ;;  %vm310_vm9 = vcmp.eq.s32.totalorder %v4561_v22, %v6108_v34  ;;  %vm313_vm2 = vcmp.eq.s32.totalorder %v4561_v22, %v4533_v16 }
  0xfa   : > { %3612 = vmatprep.mubr.msk.f32.mxu0 %vm467_vm4, %v6064_v29  ;;  %v379_v33 = vpop.permute.xlu1 %378  ;;  %v382_v48 = vpop.permute.xlu0 %381  ;;  %3732 = vmatprep.subr.mxu0 %v4343_v37 }
  0xfb   : > { %vm437_vm7 = vcmp.eq.s32.totalorder %v4561_v22, %v379_v33  ;;  %3613 = vmatmul.mubr.msk.f32.gmra.mxu0 %vm468_vm5, %v6064_v29  ;;  %vm438_vm8 = vcmp.eq.s32.totalorder %v4561_v22, %v382_v48  ;;  %vm314_vm5 = vcmp.eq.s32.totalorder %v4561_v22, %v6114_v61  ;;  %v6129_v33 = vld [vmem:[#allocation15_spill] sm:$0xff] }
  0xfc   : > { %vm469_vm10 = vmor %vm309_vm6, %vm437_vm7  ;;  %3733 = vmatpush3.msra.mxu0 %v4343_v37  ;;  %v6111_v37 = vld [vmem:[#allocation22_spill] sm:$0xff] }
  0xfd   : > { %vm470_vm11 = vmor %vm310_vm9, %vm438_vm8  ;;  %976 = vperm.xlu1 %3936, %v6109_v49   ;;  %991 = vperm.xlu0 %3935, %v4244_v21   ;;  %vm312_vm15 = vcmp.eq.s32.totalorder %v4561_v22, %v6111_v37  ;;  %vm315_vm8 = vcmp.eq.s32.totalorder %v4561_v22, %v4539_v47 }
  0xfe   : > { %3615 = vmatprep.mubr.msk.f32.mxu0 %vm469_vm10, %v6064_v29  ;;  %v385_v45 = vpop.permute.xlu1 %384  ;;  %v388_v56 = vpop.permute.xlu0 %387  ;;  %3734 = vmatprep.subr.mxu0 %v6110_v57 }
  0xff   : > { %vm439_vm13 = vcmp.eq.s32.totalorder %v4561_v22, %v385_v45  ;;  %3616 = vmatmul.mubr.msk.f32.gmra.mxu0 %vm470_vm11, %v6064_v29  ;;  %vm440_vm14 = vcmp.eq.s32.totalorder %v4561_v22, %v388_v56  ;;  %vm316_vm11 = vcmp.eq.s32.totalorder %v4561_v22, %v6117_v46  ;;  %v4082_v45 = vmov 4  }
 0x100   : > { %vm471_vm0 = vmor %vm311_vm12, %vm439_vm13  ;;  %3735 = vmatpush3.msra.mxu0 %v6110_v57 }
 0x101   : > { %vm472_vm1 = vmor %vm312_vm15, %vm440_vm14  ;;  %982 = vperm.xlu1 %3936, %v6112_v58   ;;  %997 = vperm.xlu0 %3935, %v4263_v24   ;;  %vm317_vm14 = vcmp.eq.s32.totalorder %v4561_v22, %v6120_v44  ;;  %v3972_v44 = vld [vmem:[%s6030_s1 + $0x50] sm:$0xff] }
 0x102   : > { %3618 = vmatprep.mubr.msk.f32.mxu0 %vm471_vm0, %v6064_v29  ;;  %v391_v41 = vpop.permute.xlu1 %390  ;;  %v394_v59 = vpop.permute.xlu0 %393  ;;  %3736 = vmatprep.subr.mxu0 %v6113_v60 }
 0x103   : > { %vm441_vm3 = vcmp.eq.s32.totalorder %v4561_v22, %v391_v41  ;;  %3619 = vmatmul.mubr.msk.f32.gmra.mxu0 %vm472_vm1, %v6064_v29  ;;  %vm442_vm4 = vcmp.eq.s32.totalorder %v4561_v22, %v394_v59  ;;  %vm318_vm1 = vcmp.eq.s32.totalorder %v4561_v22, %v6121_v19 }
 0x104   : > { %vm473_vm6 = vmor %vm313_vm2, %vm441_vm3  ;;  %3737 = vmatpush3.msra.mxu0 %v6113_v60 }
 0x105   : > { %vm474_vm7 = vmor %vm314_vm5, %vm442_vm4  ;;  %988 = vperm.xlu1 %3936, %v6115_v62   ;;  %1003 = vperm.xlu0 %3935, %v4287_v28   ;;  %vm319_vm4 = vcmp.eq.s32.totalorder %v4561_v22, %v4551_v40 }
 0x106   : > { %3621 = vmatprep.mubr.msk.f32.mxu0 %vm473_vm6, %v6064_v29  ;;  %v397_v16 = vpop.permute.xlu1 %396  ;;  %v400_v63 = vpop.permute.xlu0 %399  ;;  %3738 = vmatprep.subr.mxu0 %v6116_v0 }
 0x107   : > { %vm443_vm9 = vcmp.eq.s32.totalorder %v4561_v22, %v397_v16  ;;  %3622 = vmatmul.mubr.msk.f32.gmra.mxu0 %vm474_vm7, %v6064_v29  ;;  %vm444_vm10 = vcmp.eq.s32.totalorder %v4561_v22, %v400_v63  ;;  %vm320_vm7 = vcmp.eq.s32.totalorder %v4561_v22, %v4549_v25  ;;  %v6126_v25 = vld [vmem:[#allocation11_spill] sm:$0xff] }
 0x108   : > { %vm475_vm12 = vmor %vm315_vm8, %vm443_vm9  ;;  %3739 = vmatpush3.msra.mxu0 %v6116_v0  ;;  %v3969_v0 = vld [vmem:[%s6030_s1 + $0x68] sm:$0xff] }
 0x109   : > { %vm476_vm13 = vmor %vm316_vm11, %vm444_vm10  ;;  %994 = vperm.xlu1 %3936, %v6118_v54   ;;  %1009 = vperm.xlu0 %3935, %v4306_v31   ;;  %vm321_vm10 = vcmp.eq.s32.totalorder %v4561_v22, %v4557_v32  ;;  %v6127_v32 = vld [vmem:[#allocation20_spill] sm:$0xff] }
 0x10a   : > { %3624 = vmatprep.mubr.msk.f32.mxu0 %vm475_vm12, %v6064_v29  ;;  %v403_v47 = vpop.permute.xlu1 %402  ;;  %v406_v53 = vpop.permute.xlu0 %405  ;;  %3740 = vmatprep.subr.mxu0 %v6119_v36 }
 0x10b   : > { %vm445_vm15 = vcmp.eq.s32.totalorder %v4561_v22, %v403_v47  ;;  %3625 = vmatmul.mubr.msk.f32.gmra.mxu0 %vm476_vm13, %v6064_v29  ;;  %vm446_vm0 = vcmp.eq.s32.totalorder %v4561_v22, %v406_v53  ;;  %vm322_vm13 = vcmp.eq.s32.totalorder %v4561_v22, %v4555_v18  ;;  %v6128_v18 = vld [vmem:[#allocation12_spill] sm:$0xff] }
 0x10c   : > { %vm477_vm2 = vmor %vm317_vm14, %vm445_vm15  ;;  %3741 = vmatpush3.msra.mxu0 %v6119_v36  ;;  %v3971_v36 = vld [vmem:[%s6030_s1 + $0x58] sm:$0xff] }
 0x10d   : > { %vm478_vm3 = vmor %vm318_vm1, %vm446_vm0  ;;  %1000 = vperm.xlu1 %3936, %v6122_v43   ;;  %1015 = vperm.xlu0 %3935, %v4330_v35  }
 0x10e   : > { %3627 = vmatprep.mubr.msk.f32.mxu0 %vm477_vm2, %v6064_v29  ;;  %v409_v20 = vpop.permute.xlu1 %408  ;;  %v412_v39 = vpop.permute.xlu0 %411  ;;  %3742 = vmatprep.subr.mxu0 %v6123_v23 }
 0x10f   : > { %vm447_vm5 = vcmp.eq.s32.totalorder %v4561_v22, %v409_v20  ;;  %3628 = vmatmul.mubr.msk.f32.gmra.mxu0 %vm478_vm3, %v6064_v29  ;;  %vm448_vm6 = vcmp.eq.s32.totalorder %v4561_v22, %v412_v39  ;;  %v3973_v20 = vld [vmem:[%s6030_s1 + $0x48] sm:$0xff]  ;;  %v3974_v39 = vld [vmem:[%s6030_s1 + $0x40] sm:$0xff] }
 0x110   : > { %vm479_vm8 = vmor %vm319_vm4, %vm447_vm5  ;;  %3743 = vmatpush3.msra.mxu0 %v6123_v23 }
 0x111   : > { %vm480_vm9 = vmor %vm320_vm7, %vm448_vm6  ;;  %1006 = vperm.xlu1 %3936, %v6124_v50   ;;  %1021 = vperm.xlu0 %3935, %v4349_v38  }
 0x112   : > { %3630 = vmatprep.mubr.msk.f32.mxu0 %vm479_vm8, %v6064_v29  ;;  %v415_v40 = vpop.permute.xlu1 %414  ;;  %v418_v26 = vpop.permute.xlu0 %417  ;;  %3744 = vmatprep.subr.mxu0 %v6125_v51 }
 0x113   : > { %vm449_vm11 = vcmp.eq.s32.totalorder %v4561_v22, %v415_v40  ;;  %3631 = vmatmul.mubr.msk.f32.gmra.mxu0 %vm480_vm9, %v6064_v29  ;;  %vm450_vm12 = vcmp.eq.s32.totalorder %v4561_v22, %v418_v26  ;;  %v3975_v40 = vld [vmem:[%s6030_s1 + $0x38] sm:$0xff]  ;;  %v3976_v26 = vld [vmem:[%s6030_s1 + $0x30] sm:$0xff] }
 0x114   : > { %vm481_vm14 = vmor %vm321_vm10, %vm449_vm11  ;;  %3745 = vmatpush3.msra.mxu0 %v6125_v51 }
 0x115   : > { %vm482_vm15 = vmor %vm322_vm13, %vm450_vm12  ;;  %1012 = vperm.xlu1 %3936, %v6126_v25   ;;  %1027 = vperm.xlu0 %3935, %v4373_v42  }
 0x116   : > { %3633 = vmatprep.mubr.msk.f32.mxu0 %vm481_vm14, %v6064_v29  ;;  %3746 = vmatprep.subr.mxu0 %v6127_v32 }
 0x117   : > { %3634 = vmatmul.mubr.msk.f32.gmra.mxu0 %vm482_vm15, %v6064_v29  ;;  %v4753_v27 = vpop.permute.xlu1 %806  ;;  %v4755_v52 = vpop.permute.xlu0 %809 }
 0x118   : > { %3747 = vmatpush3.msra.mxu0 %v6127_v32  ;;  %vm901_vm0 = vcmp.eq.s32.totalorder %v4561_v22, %v4753_v27  ;;  %vm902_vm3 = vcmp.eq.s32.totalorder %v4561_v22, %v4755_v52  ;;  %v3977_v32 = vld [vmem:[%s6030_s1 + $0x28] sm:$0xff]  ;;  %v3978_v27 = vld [vmem:[%s6030_s1 + $0x20] sm:$0xff] }
 0x119   : > { %1018 = vperm.xlu1 %3936, %v6128_v18   ;;  %3938 = vset.pattern.permute.xlu0 %v4082_v45 }
 0x11a   : > { %1547 = vperm.xlu0 %3938, %v4173_v4  }
 0x11b   : > { %v4759_v30 = vpop.permute.xlu1 %812  ;;  %v4761_v55 = vpop.permute.xlu0 %818 }
 0x11c   : > { %vm903_vm7 = vcmp.eq.s32.totalorder %v4561_v22, %v4759_v30  ;;  %vm905_vm13 = vcmp.eq.s32.totalorder %v4561_v22, %v4761_v55  ;;  %v3979_v30 = vld [vmem:[%s6030_s1 + $0x18] sm:$0xff]  ;;  %v3980_v55 = vld [vmem:[%s6030_s1 + $0x10] sm:$0xff] }
 0x11d   : > { %1024 = vperm.xlu1 %3936, %v6129_v33  }
 0x11e   : > { %1556 = vperm.xlu0 %3938, %v4181_v6  }
 0x11f   : > { %v4764_v48 = vpop.permute.xlu1 %815  ;;  %v4766_v34 = vpop.permute.xlu0 %824 }
 0x120   : > { %vm904_vm9 = vcmp.eq.s32.totalorder %v4561_v22, %v4764_v48 }
 0x121   : > { %3937 = vset.pattern.permute.xlu1 %v4082_v45  ;;  %v3982_v45 = vld [vmem:[%s6030_s1] sm:$0xff] }
 0x122   : > { %1544 = vperm.xlu1 %3937, %v4165_v2   ;;  %1562 = vperm.xlu0 %3938, %v4189_v8  }
 0x123   : > { %v4770_v56 = vpop.permute.xlu1 %821  ;;  %v4772_v57 = vpop.permute.xlu0 %830 }
 0x124   : > { %vm906_vm15 = vcmp.eq.s32.totalorder %v4561_v22, %v4770_v56 }
 0x126   : > { %1550 = vperm.xlu1 %3937, %v4162_v1   ;;  %1568 = vperm.xlu0 %3938, %v4197_v10  }
 0x127   : > { %v4776_v37 = vpop.permute.xlu1 %827  ;;  %v4778_v41 = vpop.permute.xlu0 %836 }
 0x12a   : > { %1553 = vperm.xlu1 %3937, %v4170_v3   ;;  %1574 = vperm.xlu0 %3938, %v4205_v12  }
 0x12b   : > { %v4782_v4 = vpop.permute.xlu1 %833  ;;  %v4784_v59 = vpop.permute.xlu0 %842 }
 0x12e   : > { %1559 = vperm.xlu1 %3937, %v4178_v5   ;;  %1580 = vperm.xlu0 %3938, %v4213_v14  }
 0x12f   : > { %v4788_v2 = vpop.permute.xlu1 %839  ;;  %v4790_v6 = vpop.permute.xlu0 %848 }
 0x132   : > { %1565 = vperm.xlu1 %3937, %v4186_v7   ;;  %1586 = vperm.xlu0 %3938, %v6109_v49  }
 0x133   : > { %v4794_v1 = vpop.permute.xlu1 %845  ;;  %v4796_v8 = vpop.permute.xlu0 %854 }
 0x136   : > { %1571 = vperm.xlu1 %3937, %v4194_v9   ;;  %1592 = vperm.xlu0 %3938, %v6112_v58  }
 0x137   : > { %v4800_v3 = vpop.permute.xlu1 %851  ;;  %v4802_v10 = vpop.permute.xlu0 %860 }
 0x13a   : > { %1577 = vperm.xlu1 %3937, %v4202_v11   ;;  %1598 = vperm.xlu0 %3938, %v6115_v62  }
 0x13b   : > { %v4806_v5 = vpop.permute.xlu1 %857  ;;  %v4808_v12 = vpop.permute.xlu0 %866 }
 0x13e   : > { %1583 = vperm.xlu1 %3937, %v4210_v13   ;;  %1604 = vperm.xlu0 %3938, %v6118_v54  }
 0x13f   : > { %v4812_v7 = vpop.permute.xlu1 %863  ;;  %v4814_v14 = vpop.permute.xlu0 %872 }
 0x142   : > { %1589 = vperm.xlu1 %3937, %v4218_v15   ;;  %1610 = vperm.xlu0 %3938, %v6122_v43  }
 0x143   : > { %v4818_v9 = vpop.permute.xlu1 %869  ;;  %v4820_v49 = vpop.permute.xlu0 %878 }
 0x146   : > { %1595 = vperm.xlu1 %3937, %v4226_v17   ;;  %1616 = vperm.xlu0 %3938, %v6124_v50  }
 0x147   : > { %v4824_v11 = vpop.permute.xlu1 %875  ;;  %v4826_v58 = vpop.permute.xlu0 %884 }
 0x14a   : > { %1601 = vperm.xlu1 %3937, %v4244_v21   ;;  %1622 = vperm.xlu0 %3938, %v6126_v25  }
 0x14b   : > { %v4830_v13 = vpop.permute.xlu1 %881  ;;  %v4832_v60 = vpop.permute.xlu0 %890 }
 0x14e   : > { %1607 = vperm.xlu1 %3937, %v4263_v24   ;;  %1628 = vperm.xlu0 %3938, %v6128_v18  }
 0x14f   : > { %v4836_v15 = vpop.permute.xlu1 %887  ;;  %v4838_v61 = vpop.permute.xlu0 %896 }
 0x152   : > { %1613 = vperm.xlu1 %3937, %v4287_v28   ;;  %1634 = vperm.xlu0 %3938, %v6129_v33  }
 0x153   : > { %v4842_v17 = vpop.permute.xlu1 %893 }
 0x154   : > { %v935_v62 = vpop.permute.xlu0 %934 }
 0x155   : > { %vm1029_vm1 = vcmp.eq.s32.totalorder %v4561_v22, %v935_v62 }
 0x156   : > { %vm1061_vm2 = vmor %vm901_vm0, %vm1029_vm1  ;;  %1619 = vperm.xlu1 %3937, %v4306_v31  }
 0x157   : > { %v4849_v21 = vpop.permute.xlu1 %899  ;;  %3668 = vmatprep.mubr.msk.f32.mxu1 %vm1061_vm2, %v6064_v29 }
 0x158   : > { %v944_v24 = vpop.permute.xlu0 %943 }
 0x159   : > { %vm1032_vm6 = vcmp.eq.s32.totalorder %v4561_v22, %v944_v24 }
 0x15a   : > { %1625 = vperm.xlu1 %3937, %v4330_v35   ;;  %v3967_v35 = vld [vmem:[%s6030_s1 + $0x78] sm:$0xff]  ;;  %vm1064_vm11 = vmor %vm904_vm9, %vm1032_vm6  ;;  %vm909_vm9 = vcmp.eq.s32.totalorder %v4561_v22, %v4772_v57 }
 0x15c   : > { %v938_v28 = vpop.permute.xlu1 %937  ;;  %v950_v16 = vpop.permute.xlu0 %949 }
 0x15d   : > { %vm1030_vm4 = vcmp.eq.s32.totalorder %v4561_v22, %v938_v28  ;;  %vm1034_vm12 = vcmp.eq.s32.totalorder %v4561_v22, %v950_v16 }
 0x15e   : > { %vm1062_vm5 = vmor %vm902_vm3, %vm1030_vm4  ;;  %1631 = vperm.xlu1 %3937, %v4349_v38   ;;  %v3968_v38 = vld [vmem:[%s6030_s1 + $0x70] sm:$0xff]  ;;  %vm907_vm3 = vcmp.eq.s32.totalorder %v4561_v22, %v4766_v34  ;;  %v3981_v34 = vld [vmem:[%s6030_s1 + $0x8] sm:$0xff] }
 0x15f   : > { %3669 = vmatmul.mubr.msk.f32.vlgmr.msra.gmra.mxu1 %vm1062_vm5, %v6064_v29  ;;  %vm1066_vm1 = vmor %vm906_vm15, %vm1034_vm12  ;;  %vm908_vm5 = vcmp.eq.s32.totalorder %v4561_v22, %v4776_v37  ;;  %vm911_vm15 = vcmp.eq.s32.totalorder %v4561_v22, %v4778_v41 }
 0x160   : > { %v941_v31 = vpop.permute.xlu1 %940  ;;  %v956_v63 = vpop.permute.xlu0 %955  ;;  %3797 = vmatpush3.msra.mxu1 %v3967_v35 }
 0x161   : > { %vm1031_vm8 = vcmp.eq.s32.totalorder %v4561_v22, %v941_v31  ;;  %3798 = vmatprep.subr.mxu1 %v3968_v38  ;;  %vm1036_vm2 = vcmp.eq.s32.totalorder %v4561_v22, %v956_v63 }
 0x162   : > { %vm1063_vm10 = vmor %vm903_vm7, %vm1031_vm8  ;;  %1637 = vperm.xlu1 %3937, %v4373_v42   ;;  %3799 = vmatpush3.msra.mxu1 %v3968_v38  ;;  %v3970_v42 = vld [vmem:[%s6030_s1 + $0x60] sm:$0xff] }
 0x163   : > { %3671 = vmatprep.mubr.msk.f32.mxu1 %vm1063_vm10, %v6064_v29  ;;  %3800 = vmatprep.subr.mxu1 %v3969_v0  ;;  %vm1068_vm7 = vmor %vm908_vm5, %vm1036_vm2  ;;  %vm913_vm5 = vcmp.eq.s32.totalorder %v4561_v22, %v4784_v59 }
 0x164   : > { %v947_v46 = vpop.permute.xlu1 %946  ;;  %3672 = vmatmul.mubr.msk.f32.gmra.mxu1 %vm1064_vm11, %v6064_v29  ;;  %v962_v54 = vpop.permute.xlu0 %961  ;;  %vm910_vm11 = vcmp.eq.s32.totalorder %v4561_v22, %v4782_v4 }
 0x165   : > { %vm1033_vm14 = vcmp.eq.s32.totalorder %v4561_v22, %v947_v46  ;;  %3801 = vmatpush3.msra.mxu1 %v3969_v0  ;;  %vm1038_vm8 = vcmp.eq.s32.totalorder %v4561_v22, %v962_v54 }
 0x166   : > { %vm1065_vm0 = vmor %vm905_vm13, %vm1033_vm14  ;;  %3802 = vmatprep.subr.mxu1 %v3970_v42 }
 0x167   : > { %3674 = vmatprep.mubr.msk.f32.mxu1 %vm1065_vm0, %v6064_v29  ;;  %3803 = vmatpush3.msra.mxu1 %v3970_v42  ;;  %vm1070_vm13 = vmor %vm910_vm11, %vm1038_vm8  ;;  %vm915_vm11 = vcmp.eq.s32.totalorder %v4561_v22, %v4790_v6 }
 0x168   : > { %v953_v47 = vpop.permute.xlu1 %952  ;;  %3675 = vmatmul.mubr.msk.f32.gmra.mxu1 %vm1066_vm1, %v6064_v29  ;;  %v968_v53 = vpop.permute.xlu0 %967  ;;  %3804 = vmatprep.subr.mxu1 %v3971_v36  ;;  %vm912_vm1 = vcmp.eq.s32.totalorder %v4561_v22, %v4788_v2 }
 0x169   : > { %vm1035_vm4 = vcmp.eq.s32.totalorder %v4561_v22, %v953_v47  ;;  %3805 = vmatpush3.msra.mxu1 %v3971_v36  ;;  %vm1040_vm14 = vcmp.eq.s32.totalorder %v4561_v22, %v968_v53 }
 0x16a   : > { %vm1067_vm6 = vmor %vm907_vm3, %vm1035_vm4  ;;  %3806 = vmatprep.subr.mxu1 %v3972_v44 }
 0x16b   : > { %3677 = vmatprep.mubr.msk.f32.mxu1 %vm1067_vm6, %v6064_v29  ;;  %3807 = vmatpush3.msra.mxu1 %v3972_v44  ;;  %vm1072_vm3 = vmor %vm912_vm1, %vm1040_vm14  ;;  %vm917_vm1 = vcmp.eq.s32.totalorder %v4561_v22, %v4796_v8 }
 0x16c   : > { %v959_v19 = vpop.permute.xlu1 %958  ;;  %3678 = vmatmul.mubr.msk.f32.gmra.mxu1 %vm1068_vm7, %v6064_v29  ;;  %v974_v43 = vpop.permute.xlu0 %973  ;;  %3808 = vmatprep.subr.mxu1 %v3973_v20  ;;  %vm914_vm7 = vcmp.eq.s32.totalorder %v4561_v22, %v4794_v1 }
 0x16d   : > { %vm1037_vm10 = vcmp.eq.s32.totalorder %v4561_v22, %v959_v19  ;;  %3809 = vmatpush3.msra.mxu1 %v3973_v20  ;;  %vm1042_vm4 = vcmp.eq.s32.totalorder %v4561_v22, %v974_v43  ;;  %v4083_v20 = vmov 5  }
 0x16e   : > { %vm1069_vm12 = vmor %vm909_vm9, %vm1037_vm10  ;;  %3810 = vmatprep.subr.mxu1 %v3974_v39  ;;  %3939 = vset.pattern.permute.xlu0 %v4083_v20 }
 0x16f   : > { %3680 = vmatprep.mubr.msk.f32.mxu1 %vm1069_vm12, %v6064_v29  ;;  %3811 = vmatpush3.msra.mxu1 %v3974_v39  ;;  %vm1074_vm9 = vmor %vm914_vm7, %vm1042_vm4  ;;  %vm919_vm7 = vcmp.eq.s32.totalorder %v4561_v22, %v4802_v10 }
 0x170   : > { %v965_v23 = vpop.permute.xlu1 %964  ;;  %3681 = vmatmul.mubr.msk.f32.gmra.mxu1 %vm1070_vm13, %v6064_v29  ;;  %v980_v50 = vpop.permute.xlu0 %979  ;;  %3812 = vmatprep.subr.mxu1 %v3975_v40  ;;  %vm916_vm13 = vcmp.eq.s32.totalorder %v4561_v22, %v4800_v3 }
 0x171   : > { %vm1039_vm0 = vcmp.eq.s32.totalorder %v4561_v22, %v965_v23  ;;  %3813 = vmatpush3.msra.mxu1 %v3975_v40  ;;  %vm1044_vm10 = vcmp.eq.s32.totalorder %v4561_v22, %v980_v50  ;;  %3940 = vset.pattern.permute.xlu1 %v4083_v20  ;;  %v5204_v20 = vld [vmem:[%s4159_s25 + $0x48] sm:$0xff] }
 0x172   : > { %vm1071_vm2 = vmor %vm911_vm15, %vm1039_vm0  ;;  %3814 = vmatprep.subr.mxu1 %v3976_v26 }
 0x173   : > { %3683 = vmatprep.mubr.msk.f32.mxu1 %vm1071_vm2, %v6064_v29  ;;  %3815 = vmatpush3.msra.mxu1 %v3976_v26  ;;  %vm1076_vm15 = vmor %vm916_vm13, %vm1044_vm10  ;;  %vm921_vm13 = vcmp.eq.s32.totalorder %v4561_v22, %v4808_v12 }
 0x174   : > { %v971_v51 = vpop.permute.xlu1 %970  ;;  %3684 = vmatmul.mubr.msk.f32.gmra.mxu1 %vm1072_vm3, %v6064_v29  ;;  %v986_v25 = vpop.permute.xlu0 %985  ;;  %3816 = vmatprep.subr.mxu1 %v3977_v32  ;;  %vm918_vm3 = vcmp.eq.s32.totalorder %v4561_v22, %v4806_v5 }
 0x175   : > { %vm1041_vm6 = vcmp.eq.s32.totalorder %v4561_v22, %v971_v51  ;;  %3817 = vmatpush3.msra.mxu1 %v3977_v32  ;;  %vm1046_vm0 = vcmp.eq.s32.totalorder %v4561_v22, %v986_v25 }
 0x176   : > { %vm1073_vm8 = vmor %vm913_vm5, %vm1041_vm6  ;;  %3818 = vmatprep.subr.mxu1 %v3978_v27 }
 0x177   : > { %3686 = vmatprep.mubr.msk.f32.mxu1 %vm1073_vm8, %v6064_v29  ;;  %3819 = vmatpush3.msra.mxu1 %v3978_v27  ;;  %vm1078_vm5 = vmor %vm918_vm3, %vm1046_vm0  ;;  %vm923_vm3 = vcmp.eq.s32.totalorder %v4561_v22, %v4814_v14 }
 0x178   : > { %v977_v52 = vpop.permute.xlu1 %976  ;;  %3687 = vmatmul.mubr.msk.f32.gmra.mxu1 %vm1074_vm9, %v6064_v29  ;;  %v992_v18 = vpop.permute.xlu0 %991  ;;  %3820 = vmatprep.subr.mxu1 %v3979_v30  ;;  %vm920_vm9 = vcmp.eq.s32.totalorder %v4561_v22, %v4812_v7 }
 0x179   : > { %vm1043_vm12 = vcmp.eq.s32.totalorder %v4561_v22, %v977_v52  ;;  %3821 = vmatpush3.msra.mxu1 %v3979_v30  ;;  %vm1048_vm6 = vcmp.eq.s32.totalorder %v4561_v22, %v992_v18 }
 0x17a   : > { %vm1075_vm14 = vmor %vm915_vm11, %vm1043_vm12  ;;  %3822 = vmatprep.subr.mxu1 %v3980_v55 }
 0x17b   : > { %3689 = vmatprep.mubr.msk.f32.mxu1 %vm1075_vm14, %v6064_v29  ;;  %3823 = vmatpush3.msra.mxu1 %v3980_v55  ;;  %vm1080_vm11 = vmor %vm920_vm9, %vm1048_vm6  ;;  %vm925_vm9 = vcmp.eq.s32.totalorder %v4561_v22, %v4820_v49 }
 0x17c   : > { %v983_v33 = vpop.permute.xlu1 %982  ;;  %3690 = vmatmul.mubr.msk.f32.gmra.mxu1 %vm1076_vm15, %v6064_v29  ;;  %v998_v48 = vpop.permute.xlu0 %997  ;;  %3824 = vmatprep.subr.mxu1 %v3981_v34  ;;  %vm922_vm15 = vcmp.eq.s32.totalorder %v4561_v22, %v4818_v9 }
 0x17d   : > { %vm1045_vm2 = vcmp.eq.s32.totalorder %v4561_v22, %v983_v33  ;;  %3825 = vmatpush3.msra.mxu1 %v3981_v34  ;;  %vm1050_vm12 = vcmp.eq.s32.totalorder %v4561_v22, %v998_v48 }
 0x17e   : > { %vm1077_vm4 = vmor %vm917_vm1, %vm1045_vm2  ;;  %3826 = vmatprep.subr.mxu1 %v3982_v45 }
 0x17f   : > { %3692 = vmatprep.mubr.msk.f32.mxu1 %vm1077_vm4, %v6064_v29  ;;  %3827 = vmatpush3.msra.mxu1 %v3982_v45  ;;  %vm1082_vm1 = vmor %vm922_vm15, %vm1050_vm12  ;;  %vm927_vm15 = vcmp.eq.s32.totalorder %v4561_v22, %v4826_v58 }
 0x180   : > { %v989_v56 = vpop.permute.xlu1 %988  ;;  %3693 = vmatmul.mubr.msk.f32.gmra.mxu1 %vm1078_vm5, %v6064_v29  ;;  %v1004_v57 = vpop.permute.xlu0 %1003  ;;  %vm924_vm5 = vcmp.eq.s32.totalorder %v4561_v22, %v4824_v11 }
 0x181   : > { %vm1047_vm8 = vcmp.eq.s32.totalorder %v4561_v22, %v989_v56  ;;  %vm1052_vm2 = vcmp.eq.s32.totalorder %v4561_v22, %v1004_v57 }
 0x182   : > { %vm1079_vm10 = vmor %vm919_vm7, %vm1047_vm8 }
 0x183   : > { %3695 = vmatprep.mubr.msk.f32.mxu1 %vm1079_vm10, %v6064_v29  ;;  %vm1084_vm7 = vmor %vm924_vm5, %vm1052_vm2  ;;  %vm929_vm5 = vcmp.eq.s32.totalorder %v4561_v22, %v4832_v60 }
 0x184   : > { %v995_v37 = vpop.permute.xlu1 %994  ;;  %3696 = vmatmul.mubr.msk.f32.gmra.mxu1 %vm1080_vm11, %v6064_v29  ;;  %v1010_v41 = vpop.permute.xlu0 %1009  ;;  %vm926_vm11 = vcmp.eq.s32.totalorder %v4561_v22, %v4830_v13 }
 0x185   : > { %vm1049_vm14 = vcmp.eq.s32.totalorder %v4561_v22, %v995_v37  ;;  %vm1054_vm8 = vcmp.eq.s32.totalorder %v4561_v22, %v1010_v41 }
 0x186   : > { %vm1081_vm0 = vmor %vm921_vm13, %vm1049_vm14 }
 0x187   : > { %3698 = vmatprep.mubr.msk.f32.mxu1 %vm1081_vm0, %v6064_v29  ;;  %vm1086_vm13 = vmor %vm926_vm11, %vm1054_vm8  ;;  %vm931_vm11 = vcmp.eq.s32.totalorder %v4561_v22, %v4838_v61 }
 0x188   : > { %v1001_v4 = vpop.permute.xlu1 %1000  ;;  %3699 = vmatmul.mubr.msk.f32.gmra.mxu1 %vm1082_vm1, %v6064_v29  ;;  %v1016_v59 = vpop.permute.xlu0 %1015  ;;  %vm928_vm1 = vcmp.eq.s32.totalorder %v4561_v22, %v4836_v15 }
 0x189   : > { %vm1051_vm4 = vcmp.eq.s32.totalorder %v4561_v22, %v1001_v4  ;;  %vm1056_vm14 = vcmp.eq.s32.totalorder %v4561_v22, %v1016_v59 }
 0x18a   : > { %vm1083_vm6 = vmor %vm923_vm3, %vm1051_vm4 }
 0x18b   : > { %3701 = vmatprep.mubr.msk.f32.mxu1 %vm1083_vm6, %v6064_v29  ;;  %vm1088_vm3 = vmor %vm928_vm1, %vm1056_vm14  ;;  %vm932_vm14 = vcmp.eq.s32.totalorder %v4561_v22, %v4849_v21  ;;  %vm1510_vm1 = vcmask 523520  }
 0x18c   : > { %v1007_v2 = vpop.permute.xlu1 %1006  ;;  %3702 = vmatmul.mubr.msk.f32.gmra.mxu1 %vm1084_vm7, %v6064_v29  ;;  %v1022_v6 = vpop.permute.xlu0 %1021  ;;  %vm930_vm7 = vcmp.eq.s32.totalorder %v4561_v22, %v4842_v17 }
 0x18d   : > { %vm1053_vm10 = vcmp.eq.s32.totalorder %v4561_v22, %v1007_v2  ;;  %vm1058_vm4 = vcmp.eq.s32.totalorder %v4561_v22, %v1022_v6 }
 0x18e   : > { %vm1085_vm12 = vmor %vm925_vm9, %vm1053_vm10 }
 0x18f   : > { %3704 = vmatprep.mubr.msk.f32.mxu1 %vm1085_vm12, %v6064_v29  ;;  %vm1090_vm9 = vmor %vm930_vm7, %vm1058_vm4 }
 0x190   : > { %v1013_v1 = vpop.permute.xlu1 %1012  ;;  %3705 = vmatmul.mubr.msk.f32.gmra.mxu1 %vm1086_vm13, %v6064_v29  ;;  %v1028_v3 = vpop.permute.xlu0 %1027  ;;  %vm772_vm13 = vcmask 261120  }
 0x191   : > { %vm1055_vm0 = vcmp.eq.s32.totalorder %v4561_v22, %v1013_v1  ;;  %vm1060_vm10 = vcmp.eq.s32.totalorder %v4561_v22, %v1028_v3 }
 0x192   : > { %vm1087_vm2 = vmor %vm927_vm15, %vm1055_vm0 }
 0x193   : > { %3707 = vmatprep.mubr.msk.f32.mxu1 %vm1087_vm2, %v6064_v29  ;;  %vm1092_vm0 = vmor %vm932_vm14, %vm1060_vm10 }
 0x194   : > { %v1019_v8 = vpop.permute.xlu1 %1018  ;;  %3708 = vmatmul.mubr.msk.f32.gmra.mxu1 %vm1088_vm3, %v6064_v29 }
 0x195   : > { %vm1057_vm6 = vcmp.eq.s32.totalorder %v4561_v22, %v1019_v8  ;;  %v5114_v34 = vpop.permute.xlu0 %1547 }
 0x196   : > { %vm1089_vm8 = vmor %vm929_vm5, %vm1057_vm6  ;;  %vm1640_vm5 = vcmp.eq.s32.totalorder %v4561_v22, %v5114_v34 }
 0x197   : > { %3710 = vmatprep.mubr.msk.f32.mxu1 %vm1089_vm8, %v6064_v29 }
 0x198   : > { %v1025_v10 = vpop.permute.xlu1 %1024  ;;  %3711 = vmatmul.mubr.msk.f32.gmra.mxu1 %vm1090_vm9, %v6064_v29 }
 0x199   : > { %vm1059_vm12 = vcmp.eq.s32.totalorder %v4561_v22, %v1025_v10  ;;  %v5121_v41 = vpop.permute.xlu0 %1556 }
 0x19a   : > { %vm1091_vm15 = vmor %vm931_vm11, %vm1059_vm12 }
 0x19b   : > { %v3590_v5 = vpop.f32.mrf.mxu0  ;;  %3713 = vmatprep.mubr.msk.f32.mxu1 %vm1091_vm15, %v6064_v29  ;;  %vm1643_vm15 = vcmp.eq.s32.totalorder %v4561_v22, %v5121_v41 }
 0x19c   : > { %774 = vst.msk [vmem:[%s5030_s16 + $0x8] sm:$0xff] %vm772_vm13, %v3590_v5  ;;  %3714 = vmatmul.mubr.msk.f32.gmra.mxu1 %vm1092_vm0, %v6064_v29 }
 0x19d   : > { %v613_v12 = vpop.f32.mrf.mxu0  ;;  %v5105_v27 = vpop.permute.xlu1 %1544 }
 0x19e   : > { %773 = vst.msk [vmem:[%s5030_s16] sm:$0xff] %vm772_vm13, %v613_v12  ;;  %v5128_v1 = vpop.permute.xlu0 %1562  ;;  %vm1639_vm2 = vcmp.eq.s32.totalorder %v4561_v22, %v5105_v27 }
 0x19f   : > { %v3593_v7 = vpop.f32.mrf.mxu0 }
 0x1a0   : > { %776 = vst.msk [vmem:[%s5030_s16 + $0x18] sm:$0xff] %vm772_vm13, %v3593_v7 }
 0x1a1   : > { %v623_v14 = vpop.f32.mrf.mxu0  ;;  %v5110_v55 = vpop.permute.xlu1 %1550 }
 0x1a2   : > { %775 = vst.msk [vmem:[%s5030_s16 + $0x10] sm:$0xff] %vm772_vm13, %v623_v14  ;;  %v5135_v12 = vpop.permute.xlu0 %1568  ;;  %vm1641_vm9 = vcmp.eq.s32.totalorder %v4561_v22, %v5110_v55 }
 0x1a3   : > { %v3596_v9 = vpop.f32.mrf.mxu0 }
 0x1a4   : > { %778 = vst.msk [vmem:[%s5030_s16 + $0x28] sm:$0xff] %vm772_vm13, %v3596_v9 }
 0x1a5   : > { %v633_v49 = vpop.f32.mrf.mxu0  ;;  %v5117_v56 = vpop.permute.xlu1 %1553 }
 0x1a6   : > { %777 = vst.msk [vmem:[%s5030_s16 + $0x20] sm:$0xff] %vm772_vm13, %v633_v49  ;;  %vm1642_vm11 = vcmp.eq.s32.totalorder %v4561_v22, %v5117_v56 }
 0x1a7   : > { %v3599_v11 = vpop.f32.mrf.mxu0 }
 0x1a8   : > { %780 = vst.msk [vmem:[%s5030_s16 + $0x38] sm:$0xff] %vm772_vm13, %v3599_v11  ;;  %v5142_v11 = vpop.permute.xlu0 %1574 }
 0x1a9   : > { %v643_v58 = vpop.f32.mrf.mxu0  ;;  %v5124_v59 = vpop.permute.xlu1 %1559 }
 0x1aa   : > { %779 = vst.msk [vmem:[%s5030_s16 + $0x30] sm:$0xff] %vm772_vm13, %v643_v58 }
 0x1ab   : > { %v3602_v13 = vpop.f32.mrf.mxu0 }
 0x1ac   : > { %782 = vst.msk [vmem:[%s5030_s16 + $0x48] sm:$0xff] %vm772_vm13, %v3602_v13 }
 0x1ad   : > { %v653_v60 = vpop.f32.mrf.mxu0  ;;  %v5131_v3 = vpop.permute.xlu1 %1565 }
 0x1ae   : > { %781 = vst.msk [vmem:[%s5030_s16 + $0x40] sm:$0xff] %vm772_vm13, %v653_v60 }
 0x1af   : > { %v3605_v15 = vpop.f32.mrf.mxu0 }
 0x1b0   : > { %784 = vst.msk [vmem:[%s5030_s16 + $0x58] sm:$0xff] %vm772_vm13, %v3605_v15 }
 0x1b1   : > { %v663_v61 = vpop.f32.mrf.mxu0  ;;  %v5138_v14 = vpop.permute.xlu1 %1571 }
 0x1b2   : > { %783 = vst.msk [vmem:[%s5030_s16 + $0x50] sm:$0xff] %vm772_vm13, %v663_v61  ;;  %v5149_v61 = vpop.permute.xlu0 %1580 }
 0x1b3   : > { %v3608_v17 = vpop.f32.mrf.mxu0 }
 0x1b4   : > { %786 = vst.msk [vmem:[%s5030_s16 + $0x68] sm:$0xff] %vm772_vm13, %v3608_v17 }
 0x1b5   : > { %v673_v62 = vpop.f32.mrf.mxu0  ;;  %v5145_v13 = vpop.permute.xlu1 %1577 }
 0x1b6   : > { %785 = vst.msk [vmem:[%s5030_s16 + $0x60] sm:$0xff] %vm772_vm13, %v673_v62 }
 0x1b7   : > { %v3611_v21 = vpop.f32.mrf.mxu0 }
 0x1b8   : > { %788 = vst.msk [vmem:[%s5030_s16 + $0x78] sm:$0xff] %vm772_vm13, %v3611_v21 }
 0x1b9   : > { %v683_v24 = vpop.f32.mrf.mxu0  ;;  %v5152_v62 = vpop.permute.xlu1 %1583 }
 0x1ba   : > { %787 = vst.msk [vmem:[%s5030_s16 + $0x70] sm:$0xff] %vm772_vm13, %v683_v24 }
 0x1bb   : > { %v3614_v28 = vpop.f32.mrf.mxu0 }
 0x1bc   : > { %790 = vst.msk [vmem:[%s5030_s16 + $0x88] sm:$0xff] %vm772_vm13, %v3614_v28  ;;  %v5156_v28 = vpop.permute.xlu0 %1586 }
 0x1bd   : > { %v693_v16 = vpop.f32.mrf.mxu0 }
 0x1be   : > { %789 = vst.msk [vmem:[%s5030_s16 + $0x80] sm:$0xff] %vm772_vm13, %v693_v16 }
 0x1bf   : > { %v3617_v31 = vpop.f32.mrf.mxu0 }
 0x1c0   : > { %792 = vst.msk [vmem:[%s5030_s16 + $0x98] sm:$0xff] %vm772_vm13, %v3617_v31  ;;  %v5159_v31 = vpop.permute.xlu1 %1589 }
 0x1c1   : > { %v703_v63 = vpop.f32.mrf.mxu0 }
 0x1c2   : > { %791 = vst.msk [vmem:[%s5030_s16 + $0x90] sm:$0xff] %vm772_vm13, %v703_v63  ;;  %v5162_v63 = vld [vmem:[%s4159_s25] sm:$0xff] }
 0x1c3   : > { %v3620_v35 = vpop.f32.mrf.mxu0 }
 0x1c4   : > { %794 = vst.msk [vmem:[%s5030_s16 + $0xa8] sm:$0xff] %vm772_vm13, %v3620_v35  ;;  %v5166_v35 = vld [vmem:[%s4159_s25 + $0x8] sm:$0xff] }
 0x1c5   : > { %v713_v38 = vpop.f32.mrf.mxu0 }
 0x1c6   : > { %793 = vst.msk [vmem:[%s5030_s16 + $0xa0] sm:$0xff] %vm772_vm13, %v713_v38  ;;  %v5169_v38 = vpop.permute.xlu0 %1592 }
 0x1c7   : > { %v3623_v0 = vpop.f32.mrf.mxu0 }
 0x1c8   : > { %796 = vst.msk [vmem:[%s5030_s16 + $0xb8] sm:$0xff] %vm772_vm13, %v3623_v0  ;;  %v5172_v0 = vld [vmem:[%s4159_s25 + $0x18] sm:$0xff] }
 0x1c9   : > { %v723_v46 = vpop.f32.mrf.mxu0 }
 0x1ca   : > { %795 = vst.msk [vmem:[%s5030_s16 + $0xb0] sm:$0xff] %vm772_vm13, %v723_v46  ;;  %v5175_v46 = vpop.permute.xlu1 %1595 }
 0x1cb   : > { %v3626_v54 = vpop.f32.mrf.mxu0 }
 0x1cc   : > { %798 = vst.msk [vmem:[%s5030_s16 + $0xc8] sm:$0xff] %vm772_vm13, %v3626_v54  ;;  %v5178_v54 = vld [vmem:[%s4159_s25 + $0x10] sm:$0xff] }
 0x1cd   : > { %v733_v42 = vpop.f32.mrf.mxu0 }
 0x1ce   : > { %797 = vst.msk [vmem:[%s5030_s16 + $0xc0] sm:$0xff] %vm772_vm13, %v733_v42  ;;  %v5182_v42 = vld [vmem:[%s4159_s25 + $0x28] sm:$0xff] }
 0x1cf   : > { %v3629_v47 = vpop.f32.mrf.mxu0 }
 0x1d0   : > { %800 = vst.msk [vmem:[%s5030_s16 + $0xd8] sm:$0xff] %vm772_vm13, %v3629_v47  ;;  %v5185_v47 = vpop.permute.xlu0 %1598 }
 0x1d1   : > { %v743_v53 = vpop.f32.mrf.mxu0 }
 0x1d2   : > { %799 = vst.msk [vmem:[%s5030_s16 + $0xd0] sm:$0xff] %vm772_vm13, %v743_v53  ;;  %v5188_v53 = vld [vmem:[%s4159_s25 + $0x20] sm:$0xff] }
 0x1d3   : > { %v3632_v36 = vpop.f32.mrf.mxu0 }
 0x1d4   : > { %802 = vst.msk [vmem:[%s5030_s16 + $0xe8] sm:$0xff] %vm772_vm13, %v3632_v36  ;;  %v5191_v36 = vpop.permute.xlu1 %1601 }
 0x1d5   : > { %v753_v44 = vpop.f32.mrf.mxu0 }
 0x1d6   : > { %801 = vst.msk [vmem:[%s5030_s16 + $0xe0] sm:$0xff] %vm772_vm13, %v753_v44  ;;  %v5194_v44 = vld [vmem:[%s4159_s25 + $0x38] sm:$0xff] }
 0x1d7   : > { %v3635_v19 = vpop.f32.mrf.mxu0 }
 0x1d8   : > { %804 = vst.msk [vmem:[%s5030_s16 + $0xf8] sm:$0xff] %vm772_vm13, %v3635_v19  ;;  %v5198_v19 = vld [vmem:[%s4159_s25 + $0x30] sm:$0xff] }
 0x1d9   : > { %v763_v43 = vpop.f32.mrf.mxu0 }
 0x1da   : > { %803 = vst.msk [vmem:[%s5030_s16 + $0xf0] sm:$0xff] %vm772_vm13, %v763_v43  ;;  %v5201_v43 = vpop.permute.xlu0 %1604 }
 0x21f   : > { %v3670_v39 = vpop.f32.mrf.mxu1 }
 0x220   : > { %1416 = vrot.lane.b32.xlu0 %v3670_v39, %s4084_s17  ;;  %v5207_v39 = vpop.permute.xlu1 %1607 }
 0x221   : > { %v1223_v23 = vpop.f32.mrf.mxu1 }
 0x222   : > { %1414 = vrot.lane.b32.xlu1 %v1223_v23, %s4084_s17  ;;  %v5210_v23 = vld [vmem:[%s4159_s25 + $0x40] sm:$0xff] }
 0x224   : > { %v3673_v50 = vpop.f32.mrf.mxu1 }
 0x225   : > { %1420 = vrot.lane.b32.xlu0 %v3673_v50, %s4084_s17  ;;  %v5214_v50 = vld [vmem:[%s4159_s25 + $0x58] sm:$0xff] }
 0x226   : > { %v1233_v40 = vpop.f32.mrf.mxu1 }
 0x227   : > { %1418 = vrot.lane.b32.xlu1 %v1233_v40, %s4084_s17  ;;  %v5217_v40 = vpop.permute.xlu0 %1610 }
 0x228   : > { %v3676_v26 = vpop.f32.mrf.mxu1 }
 0x229   : > { %1424 = vrot.lane.b32.xlu0 %v3676_v26, %s4084_s17  ;;  %v5220_v26 = vld [vmem:[%s4159_s25 + $0x50] sm:$0xff] }
 0x22a   : > { %v1243_v51 = vpop.f32.mrf.mxu1 }
 0x22b   : > { %1422 = vrot.lane.b32.xlu1 %v1243_v51, %s4084_s17  ;;  %v5223_v51 = vpop.permute.xlu1 %1613 }
 0x22c   : > { %v3679_v25 = vpop.f32.mrf.mxu1 }
 0x22d   : > { %1428 = vrot.lane.b32.xlu0 %v3679_v25, %s4084_s17  ;;  %v5226_v25 = vld [vmem:[%s4159_s25 + $0x68] sm:$0xff] }
 0x22e   : > { %v1253_v32 = vpop.f32.mrf.mxu1  ;;  %6130 = vst [vmem:[#allocation21_spill] sm:$0xff] %v5226_v25 }
 0x22f   : > { %1426 = vrot.lane.b32.xlu1 %v1253_v32, %s4084_s17  ;;  %v5230_v32 = vld [vmem:[%s4159_s25 + $0x60] sm:$0xff] }
 0x230   : > { %v3682_v52 = vpop.f32.mrf.mxu1 }
 0x231   : > { %1432 = vrot.lane.b32.xlu0 %v3682_v52, %s4084_s17  ;;  %v5233_v52 = vpop.permute.xlu0 %1616 }
 0x232   : > { %v1263_v18 = vpop.f32.mrf.mxu1 }
 0x233   : > { %1430 = vrot.lane.b32.xlu1 %v1263_v18, %s4084_s17  ;;  %v5236_v18 = vld [vmem:[%s4159_s25 + $0x78] sm:$0xff] }
 0x234   : > { %v3685_v30 = vpop.f32.mrf.mxu1 }
 0x235   : > { %1436 = vrot.lane.b32.xlu0 %v3685_v30, %s4084_s17  ;;  %v5239_v30 = vpop.permute.xlu1 %1619 }
 0x236   : > { %v1273_v33 = vpop.f32.mrf.mxu1 }
 0x237   : > { %1434 = vrot.lane.b32.xlu1 %v1273_v33, %s4084_s17  ;;  %v5242_v33 = vld [vmem:[%s4159_s25 + $0x70] sm:$0xff] }
 0x238   : > { %v3688_v48 = vpop.f32.mrf.mxu1 }
 0x239   : > { %1440 = vrot.lane.b32.xlu0 %v3688_v48, %s4084_s17  ;;  %v5246_v48 = vld [vmem:[%s4159_s25 + $0x88] sm:$0xff] }
 0x23a   : > { %v1283_v45 = vpop.f32.mrf.mxu1 }
 0x23b   : > { %1438 = vrot.lane.b32.xlu1 %v1283_v45, %s4084_s17  ;;  %v5249_v45 = vpop.permute.xlu0 %1622 }
 0x23c   : > { %v3691_v57 = vpop.f32.mrf.mxu1 }
 0x23d   : > { %1444 = vrot.lane.b32.xlu0 %v3691_v57, %s4084_s17  ;;  %v5252_v57 = vld [vmem:[%s4159_s25 + $0x80] sm:$0xff] }
 0x23e   : > { %v1293_v37 = vpop.f32.mrf.mxu1  ;;  %6131 = vst [vmem:[#allocation5_spill] sm:$0xff] %v5252_v57 }
 0x23f   : > { %1442 = vrot.lane.b32.xlu1 %v1293_v37, %s4084_s17  ;;  %v5255_v37 = vpop.permute.xlu1 %1625 }
 0x240   : > { %v3694_v4 = vpop.f32.mrf.mxu1 }
 0x241   : > { %1448 = vrot.lane.b32.xlu0 %v3694_v4, %s4084_s17  ;;  %v5258_v4 = vld [vmem:[%s4159_s25 + $0x98] sm:$0xff] }
 0x242   : > { %v1303_v2 = vpop.f32.mrf.mxu1  ;;  %6132 = vst [vmem:[#allocation13_spill] sm:$0xff] %v5258_v4 }
 0x243   : > { %1446 = vrot.lane.b32.xlu1 %v1303_v2, %s4084_s17  ;;  %v5262_v2 = vld [vmem:[%s4159_s25 + $0x90] sm:$0xff] }
 0x244   : > { %v3697_v6 = vpop.f32.mrf.mxu1 }
 0x245   : > { %1452 = vrot.lane.b32.xlu0 %v3697_v6, %s4084_s17  ;;  %v5265_v6 = vpop.permute.xlu0 %1628 }
 0x246   : > { %v1313_v8 = vpop.f32.mrf.mxu1 }
 0x247   : > { %1450 = vrot.lane.b32.xlu1 %v1313_v8, %s4084_s17  ;;  %v5268_v8 = vld [vmem:[%s4159_s25 + $0xa8] sm:$0xff] }
 0x248   : > { %v3700_v10 = vpop.f32.mrf.mxu1 }
 0x249   : > { %1456 = vrot.lane.b32.xlu0 %v3700_v10, %s4084_s17  ;;  %v5271_v10 = vpop.permute.xlu1 %1631 }
 0x24a   : > { %v1323_v5 = vpop.f32.mrf.mxu1 }
 0x24b   : > { %1454 = vrot.lane.b32.xlu1 %v1323_v5, %s4084_s17  ;;  %v5274_v5 = vld [vmem:[%s4159_s25 + $0xa0] sm:$0xff] }
 0x24c   : > { %v3703_v7 = vpop.f32.mrf.mxu1 }
 0x24d   : > { %1460 = vrot.lane.b32.xlu0 %v3703_v7, %s4084_s17  ;;  %v5278_v7 = vld [vmem:[%s4159_s25 + $0xb8] sm:$0xff] }
 0x24e   : > { %v1333_v9 = vpop.f32.mrf.mxu1 }
 0x24f   : > { %1458 = vrot.lane.b32.xlu1 %v1333_v9, %s4084_s17  ;;  %v5281_v9 = vpop.permute.xlu0 %1634 }
 0x250   : > { %v3706_v49 = vpop.f32.mrf.mxu1 }
 0x251   : > { %1464 = vrot.lane.b32.xlu0 %v3706_v49, %s4084_s17  ;;  %v5284_v49 = vld [vmem:[%s4159_s25 + $0xb0] sm:$0xff] }
 0x252   : > { %v1343_v58 = vpop.f32.mrf.mxu1  ;;  %6133 = vst [vmem:[#allocation22_spill] sm:$0xff] %v5284_v49 }
 0x253   : > { %1462 = vrot.lane.b32.xlu1 %v1343_v58, %s4084_s17  ;;  %v5287_v58 = vpop.permute.xlu1 %1637 }
 0x254   : > { %v3709_v60 = vpop.f32.mrf.mxu1 }
 0x255   : > { %1468 = vrot.lane.b32.xlu0 %v3709_v60, %s4084_s17  ;;  %v5290_v60 = vld [vmem:[%s4159_s25 + $0xc8] sm:$0xff] }
 0x256   : > { %v1353_v15 = vpop.f32.mrf.mxu1  ;;  %6134 = vst [vmem:[#allocation6_spill] sm:$0xff] %v5290_v60 }
 0x257   : > { %1466 = vrot.lane.b32.xlu1 %v1353_v15, %s4084_s17 }
 0x258   : > { %v3712_v17 = vpop.f32.mrf.mxu1 }
 0x259   : > { %1472 = vrot.lane.b32.xlu0 %v3712_v17, %s4084_s17  ;;  %v5296_v17 = vld [vmem:[%s4159_s25 + $0xc0] sm:$0xff] }
 0x25a   : > { %v1363_v21 = vpop.f32.mrf.mxu1 }
 0x25b   : > { %1470 = vrot.lane.b32.xlu1 %v1363_v21, %s4084_s17 }
 0x25c   : > { %v3715_v24 = vpop.f32.mrf.mxu1 }
 0x25d   : > { %1476 = vrot.lane.b32.xlu0 %v3715_v24, %s4084_s17  ;;  %v5302_v24 = vld [vmem:[%s4159_s25 + $0xd8] sm:$0xff] }
 0x25e   : > { %v1373_v16 = vpop.f32.mrf.mxu1 }
 0x25f   : > { %1474 = vrot.lane.b32.xlu1 %v1373_v16, %s4084_s17  ;;  %v5306_v16 = vld [vmem:[%s4159_s25 + $0xd0] sm:$0xff] }
 0x261   : > { %1672 = vperm.xlu0 %3939, %v5162_v63  }
 0x263   : > { %1675 = vperm.xlu1 %3940, %v5166_v35  }
 0x265   : > { %1681 = vperm.xlu0 %3939, %v5172_v0  }
 0x267   : > { %1678 = vperm.xlu1 %3940, %v5178_v54  }
 0x269   : > { %1687 = vperm.xlu0 %3939, %v5182_v42  }
 0x26b   : > { %1684 = vperm.xlu1 %3940, %v5188_v53  }
 0x26d   : > { %1693 = vperm.xlu0 %3939, %v5194_v44  }
 0x26f   : > { %1690 = vperm.xlu1 %3940, %v5198_v19  }
 0x271   : > { %1699 = vperm.xlu0 %3939, %v5204_v20  }
 0x273   : > { %1696 = vperm.xlu1 %3940, %v5210_v23  }
 0x275   : > { %1705 = vperm.xlu0 %3939, %v5214_v50  }
 0x277   : > { %1702 = vperm.xlu1 %3940, %v5220_v26  }
 0x279   : > { %1711 = vperm.xlu0 %3939, %v5226_v25  }
 0x27b   : > { %1708 = vperm.xlu1 %3940, %v5230_v32  }
 0x27d   : > { %1717 = vperm.xlu0 %3939, %v5236_v18  }
 0x27f   : > { %1714 = vperm.xlu1 %3940, %v5242_v33  }
 0x281   : > { %1723 = vperm.xlu0 %3939, %v5246_v48  }
 0x283   : > { %1720 = vperm.xlu1 %3940, %v5252_v57  }
 0x285   : > { %1729 = vperm.xlu0 %3939, %v5258_v4   ;;  %v5324_v4 = vld [vmem:[%s4159_s25 + $0xf8] sm:$0xff] }
 0x286   : > { %6137 = vst [vmem:[#allocation7_spill] sm:$0xff] %v5324_v4 }
 0x287   : > { %1726 = vperm.xlu1 %3940, %v5262_v2  }
 0x289   : > { %1735 = vperm.xlu0 %3939, %v5268_v8  }
 0x28b   : > { %1732 = vperm.xlu1 %3940, %v5274_v5  }
 0x28d   : > { %1741 = vperm.xlu0 %3939, %v5278_v7  }
 0x28f   : > { %1738 = vperm.xlu1 %3940, %v5284_v49  }
 0x291   : > { %1747 = vperm.xlu0 %3939, %v5290_v60   ;;  %v5312_v60 = vld [vmem:[%s4159_s25 + $0xe8] sm:$0xff] }
 0x292   : > { %v1417_v15 = vpop.permute.xlu0 %1416  ;;  %6135 = vst [vmem:[#allocation14_spill] sm:$0xff] %v5312_v60 }
 0x293   : > { %1512 = vst.msk [vmem:[%s5030_s16 + $0x8] sm:$0xff] %vm1510_vm1, %v1417_v15  ;;  %1744 = vperm.xlu1 %3940, %v5296_v17  }
 0x294   : > { %v1415_v21 = vpop.permute.xlu1 %1414 }
 0x295   : > { %1511 = vst.msk [vmem:[%s5030_s16] sm:$0xff] %vm1510_vm1, %v1415_v21  ;;  %1753 = vperm.xlu0 %3939, %v5302_v24   ;;  %v5318_v21 = vld [vmem:[%s4159_s25 + $0xe0] sm:$0xff] }
 0x296   : > { %6136 = vst [vmem:[#allocation23_spill] sm:$0xff] %v5318_v21 }
 0x297   : > { %1750 = vperm.xlu1 %3940, %v5306_v16   ;;  %v1421_v15 = vpop.permute.xlu0 %1420 }
 0x298   : > { %1514 = vst.msk [vmem:[%s5030_s16 + $0x18] sm:$0xff] %vm1510_vm1, %v1421_v15 }
 0x299   : > { %v1419_v29 = vpop.permute.xlu1 %1418  ;;  %1759 = vperm.xlu0 %3939, %v5312_v60  }
 0x29a   : > { %1513 = vst.msk [vmem:[%s5030_s16 + $0x10] sm:$0xff] %vm1510_vm1, %v1419_v29  ;;  %v5330_v29 = vld [vmem:[%s4159_s25 + $0xf0] sm:$0xff]  ;;  %s4086_s25 = smov 64  }
 0x29b   : > { %1756 = vperm.xlu1 %3940, %v5318_v21   ;;  %v1425_v49 = vpop.permute.xlu0 %1424  ;;  %6138 = vst [vmem:[#allocation16_spill] sm:$0xff] %v5330_v29 }
 0x29c   : > { %1516 = vst.msk [vmem:[%s5030_s16 + $0x28] sm:$0xff] %vm1510_vm1, %v1425_v49 }
 0x29d   : > { %v1423_v15 = vpop.permute.xlu1 %1422  ;;  %1765 = vperm.xlu0 %3939, %v5324_v4  }
 0x29e   : > { %1515 = vst.msk [vmem:[%s5030_s16 + $0x20] sm:$0xff] %vm1510_vm1, %v1423_v15 }
 0x29f   : > { %1762 = vperm.xlu1 %3940, %v5330_v29   ;;  %v1429_v21 = vpop.permute.xlu0 %1428 }
 0x2a0   : > { %1518 = vst.msk [vmem:[%s5030_s16 + $0x38] sm:$0xff] %vm1510_vm1, %v1429_v21 }
 0x2a1   : > { %v1427_v49 = vpop.permute.xlu1 %1426 }
 0x2a2   : > { %1517 = vst.msk [vmem:[%s5030_s16 + $0x30] sm:$0xff] %vm1510_vm1, %v1427_v49 }
 0x2a3   : > { %v1433_v57 = vpop.permute.xlu0 %1432 }
 0x2a4   : > { %1520 = vst.msk [vmem:[%s5030_s16 + $0x48] sm:$0xff] %vm1510_vm1, %v1433_v57 }
 0x2a5   : > { %v1431_v4 = vpop.permute.xlu1 %1430 }
 0x2a6   : > { %1519 = vst.msk [vmem:[%s5030_s16 + $0x40] sm:$0xff] %vm1510_vm1, %v1431_v4 }
 0x2a7   : > { %v1437_v15 = vpop.permute.xlu0 %1436 }
 0x2a8   : > { %1522 = vst.msk [vmem:[%s5030_s16 + $0x58] sm:$0xff] %vm1510_vm1, %v1437_v15 }
 0x2a9   : > { %v1435_v29 = vpop.permute.xlu1 %1434 }
 0x2aa   : > { %1521 = vst.msk [vmem:[%s5030_s16 + $0x50] sm:$0xff] %vm1510_vm1, %v1435_v29 }
 0x2ab   : > { %v1441_v21 = vpop.permute.xlu0 %1440 }
 0x2ac   : > { %1524 = vst.msk [vmem:[%s5030_s16 + $0x68] sm:$0xff] %vm1510_vm1, %v1441_v21 }
 0x2ad   : > { %v1439_v49 = vpop.permute.xlu1 %1438 }
 0x2ae   : > { %1523 = vst.msk [vmem:[%s5030_s16 + $0x60] sm:$0xff] %vm1510_vm1, %v1439_v49 }
 0x2af   : > { %v1445_v57 = vpop.permute.xlu0 %1444 }
 0x2b0   : > { %1526 = vst.msk [vmem:[%s5030_s16 + $0x78] sm:$0xff] %vm1510_vm1, %v1445_v57 }
 0x2b1   : > { %v1443_v4 = vpop.permute.xlu1 %1442 }
 0x2b2   : > { %1525 = vst.msk [vmem:[%s5030_s16 + $0x70] sm:$0xff] %vm1510_vm1, %v1443_v4 }
 0x2b3   : > { %v1449_v15 = vpop.permute.xlu0 %1448 }
 0x2b4   : > { %1528 = vst.msk [vmem:[%s5030_s16 + $0x88] sm:$0xff] %vm1510_vm1, %v1449_v15 }
 0x2b5   : > { %v1447_v29 = vpop.permute.xlu1 %1446 }
 0x2b6   : > { %1527 = vst.msk [vmem:[%s5030_s16 + $0x80] sm:$0xff] %vm1510_vm1, %v1447_v29 }
 0x2b7   : > { %v1453_v21 = vpop.permute.xlu0 %1452 }
 0x2b8   : > { %1530 = vst.msk [vmem:[%s5030_s16 + $0x98] sm:$0xff] %vm1510_vm1, %v1453_v21 }
 0x2b9   : > { %v1451_v49 = vpop.permute.xlu1 %1450 }
 0x2ba   : > { %1529 = vst.msk [vmem:[%s5030_s16 + $0x90] sm:$0xff] %vm1510_vm1, %v1451_v49 }
 0x2bb   : > { %v1457_v57 = vpop.permute.xlu0 %1456 }
 0x2bc   : > { %1532 = vst.msk [vmem:[%s5030_s16 + $0xa8] sm:$0xff] %vm1510_vm1, %v1457_v57 }
 0x2bd   : > { %v1455_v4 = vpop.permute.xlu1 %1454 }
 0x2be   : > { %1531 = vst.msk [vmem:[%s5030_s16 + $0xa0] sm:$0xff] %vm1510_vm1, %v1455_v4 }
 0x2bf   : > { %v1461_v15 = vpop.permute.xlu0 %1460 }
 0x2c0   : > { %1534 = vst.msk [vmem:[%s5030_s16 + $0xb8] sm:$0xff] %vm1510_vm1, %v1461_v15 }
 0x2c1   : > { %v1459_v29 = vpop.permute.xlu1 %1458 }
 0x2c2   : > { %1533 = vst.msk [vmem:[%s5030_s16 + $0xb0] sm:$0xff] %vm1510_vm1, %v1459_v29 }
 0x2c3   : > { %v1465_v21 = vpop.permute.xlu0 %1464 }
 0x2c4   : > { %1536 = vst.msk [vmem:[%s5030_s16 + $0xc8] sm:$0xff] %vm1510_vm1, %v1465_v21 }
 0x2c5   : > { %v1463_v49 = vpop.permute.xlu1 %1462 }
 0x2c6   : > { %1535 = vst.msk [vmem:[%s5030_s16 + $0xc0] sm:$0xff] %vm1510_vm1, %v1463_v49  ;;  %v6139_v49 = vmov 1.0  }
 0x2c7   : > { %v1469_v57 = vpop.permute.xlu0 %1468 }
 0x2c8   : > { %1538 = vst.msk [vmem:[%s5030_s16 + $0xd8] sm:$0xff] %vm1510_vm1, %v1469_v57 }
 0x2c9   : > { %v1467_v25 = vpop.permute.xlu1 %1466 }
 0x2ca   : > { %1537 = vst.msk [vmem:[%s5030_s16 + $0xd0] sm:$0xff] %vm1510_vm1, %v1467_v25 }
 0x2cb   : > { %v1473_v4 = vpop.permute.xlu0 %1472 }
 0x2cc   : > { %1540 = vst.msk [vmem:[%s5030_s16 + $0xe8] sm:$0xff] %vm1510_vm1, %v1473_v4 }
 0x2cd   : > { %v1471_v15 = vpop.permute.xlu1 %1470 }
 0x2ce   : > { %1539 = vst.msk [vmem:[%s5030_s16 + $0xe0] sm:$0xff] %vm1510_vm1, %v1471_v15 }
 0x2cf   : > { %v1477_v29 = vpop.permute.xlu0 %1476 }
 0x2d0   : > { %1542 = vst.msk [vmem:[%s5030_s16 + $0xf8] sm:$0xff] %vm1510_vm1, %v1477_v29 }
 0x2d1   : > { %v1475_v60 = vpop.permute.xlu1 %1474 }
 0x2d2   : > { %1541 = vst.msk [vmem:[%s5030_s16 + $0xf0] sm:$0xff] %vm1510_vm1, %v1475_v60  ;;  %vm1644_vm1 = vcmp.eq.s32.totalorder %v4561_v22, %v5124_v59 }
 0x2dc   : > { %v1673_v21 = vpop.permute.xlu0 %1672 }
 0x2dd   : > { %vm1767_vm3 = vcmp.eq.s32.totalorder %v4561_v22, %v1673_v21 }
 0x2de   : > { %vm1799_vm4 = vmor %vm1639_vm2, %vm1767_vm3  ;;  %v1676_v25 = vpop.permute.xlu1 %1675 }
 0x2df   : > { %vm1768_vm6 = vcmp.eq.s32.totalorder %v4561_v22, %v1676_v25  ;;  %3748 = vmatprep.mubr.msk.f32.mxu0 %vm1799_vm4, %v6139_v49  ;;  %v6140_v25 = vld [vmem:[#allocation14_spill] sm:$0xff] }
 0x2e0   : > { %vm1800_vm7 = vmor %vm1640_vm5, %vm1768_vm6  ;;  %v1682_v57 = vpop.permute.xlu0 %1681  ;;  %vm1645_vm5 = vcmp.eq.s32.totalorder %v4561_v22, %v5128_v1 }
 0x2e1   : > { %3749 = vmatmul.mubr.msk.f32.vlgmr.msra.gmra.mxu0 %vm1800_vm7, %v6139_v49  ;;  %vm1770_vm8 = vcmp.eq.s32.totalorder %v4561_v22, %v1682_v57  ;;  %vm1646_vm7 = vcmp.eq.s32.totalorder %v4561_v22, %v5131_v3 }
 0x2e2   : > { %v1679_v60 = vpop.permute.xlu1 %1678  ;;  %vm1802_vm13 = vmor %vm1642_vm11, %vm1770_vm8  ;;  %vm1647_vm11 = vcmp.eq.s32.totalorder %v4561_v22, %v5135_v12 }
 0x2e3   : > { %vm1769_vm10 = vcmp.eq.s32.totalorder %v4561_v22, %v1679_v60 }
 0x2e4   : > { %vm1801_vm12 = vmor %vm1641_vm9, %vm1769_vm10  ;;  %v1688_v27 = vpop.permute.xlu0 %1687 }
 0x2e5   : > { %3751 = vmatprep.mubr.msk.f32.mxu0 %vm1801_vm12, %v6139_v49  ;;  %vm1772_vm14 = vcmp.eq.s32.totalorder %v4561_v22, %v1688_v27 }
 0x2e6   : > { %v1685_v34 = vpop.permute.xlu1 %1684  ;;  %3752 = vmatmul.mubr.msk.f32.gmra.mxu0 %vm1802_vm13, %v6139_v49  ;;  %vm1804_vm3 = vmor %vm1644_vm1, %vm1772_vm14  ;;  %vm1648_vm13 = vcmp.eq.s32.totalorder %v4561_v22, %v5138_v14  ;;  %vm1649_vm1 = vcmp.eq.s32.totalorder %v4561_v22, %v5142_v11 }
 0x2e7   : > { %vm1771_vm0 = vcmp.eq.s32.totalorder %v4561_v22, %v1685_v34  ;;  %v6143_v34 = vld [vmem:[#allocation5_spill] sm:$0xff] }
 0x2e8   : > { %vm1803_vm2 = vmor %vm1643_vm15, %vm1771_vm0  ;;  %v1694_v55 = vpop.permute.xlu0 %1693 }
 0x2e9   : > { %3754 = vmatprep.mubr.msk.f32.mxu0 %vm1803_vm2, %v6139_v49  ;;  %vm1774_vm4 = vcmp.eq.s32.totalorder %v4561_v22, %v1694_v55 }
 0x2ea   : > { %v1691_v56 = vpop.permute.xlu1 %1690  ;;  %3755 = vmatmul.mubr.msk.f32.gmra.mxu0 %vm1804_vm3, %v6139_v49  ;;  %vm1806_vm9 = vmor %vm1646_vm7, %vm1774_vm4  ;;  %vm1650_vm3 = vcmp.eq.s32.totalorder %v4561_v22, %v5145_v13  ;;  %vm1651_vm7 = vcmp.eq.s32.totalorder %v4561_v22, %v5149_v61 }
 0x2eb   : > { %vm1773_vm6 = vcmp.eq.s32.totalorder %v4561_v22, %v1691_v56 }
 0x2ec   : > { %vm1805_vm8 = vmor %vm1645_vm5, %vm1773_vm6  ;;  %v1700_v41 = vpop.permute.xlu0 %1699 }
 0x2ed   : > { %3757 = vmatprep.mubr.msk.f32.mxu0 %vm1805_vm8, %v6139_v49  ;;  %vm1776_vm10 = vcmp.eq.s32.totalorder %v4561_v22, %v1700_v41 }
 0x2ee   : > { %v1697_v59 = vpop.permute.xlu1 %1696  ;;  %3758 = vmatmul.mubr.msk.f32.gmra.mxu0 %vm1806_vm9, %v6139_v49  ;;  %vm1808_vm15 = vmor %vm1648_vm13, %vm1776_vm10  ;;  %vm1652_vm9 = vcmp.eq.s32.totalorder %v4561_v22, %v5152_v62  ;;  %vm1653_vm13 = vcmp.eq.s32.totalorder %v4561_v22, %v5156_v28 }
 0x2ef   : > { %vm1775_vm12 = vcmp.eq.s32.totalorder %v4561_v22, %v1697_v59 }
 0x2f0   : > { %vm1807_vm14 = vmor %vm1647_vm11, %vm1775_vm12  ;;  %v1706_v1 = vpop.permute.xlu0 %1705 }
 0x2f1   : > { %3760 = vmatprep.mubr.msk.f32.mxu0 %vm1807_vm14, %v6139_v49  ;;  %vm1778_vm0 = vcmp.eq.s32.totalorder %v4561_v22, %v1706_v1 }
 0x2f2   : > { %v1703_v3 = vpop.permute.xlu1 %1702  ;;  %3761 = vmatmul.mubr.msk.f32.gmra.mxu0 %vm1808_vm15, %v6139_v49  ;;  %vm1810_vm5 = vmor %vm1650_vm3, %vm1778_vm0  ;;  %vm1654_vm15 = vcmp.eq.s32.totalorder %v4561_v22, %v5159_v31  ;;  %vm1655_vm3 = vcmp.eq.s32.totalorder %v4561_v22, %v5169_v38 }
 0x2f3   : > { %vm1777_vm2 = vcmp.eq.s32.totalorder %v4561_v22, %v1703_v3 }
 0x2f4   : > { %vm1809_vm4 = vmor %vm1649_vm1, %vm1777_vm2  ;;  %v1712_v12 = vpop.permute.xlu0 %1711 }
 0x2f5   : > { %3763 = vmatprep.mubr.msk.f32.mxu0 %vm1809_vm4, %v6139_v49  ;;  %vm1780_vm6 = vcmp.eq.s32.totalorder %v4561_v22, %v1712_v12 }
 0x2f6   : > { %v1709_v14 = vpop.permute.xlu1 %1708  ;;  %3764 = vmatmul.mubr.msk.f32.gmra.mxu0 %vm1810_vm5, %v6139_v49  ;;  %vm1812_vm11 = vmor %vm1652_vm9, %vm1780_vm6  ;;  %vm1656_vm5 = vcmp.eq.s32.totalorder %v4561_v22, %v5175_v46  ;;  %vm1657_vm9 = vcmp.eq.s32.totalorder %v4561_v22, %v5185_v47 }
 0x2f7   : > { %vm1779_vm8 = vcmp.eq.s32.totalorder %v4561_v22, %v1709_v14 }
 0x2f8   : > { %vm1811_vm10 = vmor %vm1651_vm7, %vm1779_vm8  ;;  %v1718_v11 = vpop.permute.xlu0 %1717 }
 0x2f9   : > { %3766 = vmatprep.mubr.msk.f32.mxu0 %vm1811_vm10, %v6139_v49  ;;  %vm1782_vm12 = vcmp.eq.s32.totalorder %v4561_v22, %v1718_v11 }
 0x2fa   : > { %v1715_v13 = vpop.permute.xlu1 %1714  ;;  %3767 = vmatmul.mubr.msk.f32.gmra.mxu0 %vm1812_vm11, %v6139_v49  ;;  %vm1814_vm1 = vmor %vm1654_vm15, %vm1782_vm12  ;;  %vm1658_vm11 = vcmp.eq.s32.totalorder %v4561_v22, %v5191_v36  ;;  %vm1659_vm15 = vcmp.eq.s32.totalorder %v4561_v22, %v5201_v43 }
 0x2fb   : > { %vm1781_vm14 = vcmp.eq.s32.totalorder %v4561_v22, %v1715_v13 }
 0x2fc   : > { %vm1813_vm0 = vmor %vm1653_vm13, %vm1781_vm14  ;;  %v1724_v61 = vpop.permute.xlu0 %1723 }
 0x2fd   : > { %3769 = vmatprep.mubr.msk.f32.mxu0 %vm1813_vm0, %v6139_v49  ;;  %vm1784_vm2 = vcmp.eq.s32.totalorder %v4561_v22, %v1724_v61 }
 0x2fe   : > { %v1721_v62 = vpop.permute.xlu1 %1720  ;;  %3770 = vmatmul.mubr.msk.f32.gmra.mxu0 %vm1814_vm1, %v6139_v49  ;;  %vm1816_vm7 = vmor %vm1656_vm5, %vm1784_vm2  ;;  %vm1660_vm1 = vcmp.eq.s32.totalorder %v4561_v22, %v5207_v39  ;;  %vm1661_vm5 = vcmp.eq.s32.totalorder %v4561_v22, %v5217_v40 }
 0x2ff   : > { %vm1783_vm4 = vcmp.eq.s32.totalorder %v4561_v22, %v1721_v62 }
 0x300   : > { %vm1815_vm6 = vmor %vm1655_vm3, %vm1783_vm4  ;;  %v1730_v28 = vpop.permute.xlu0 %1729 }
 0x301   : > { %3772 = vmatprep.mubr.msk.f32.mxu0 %vm1815_vm6, %v6139_v49  ;;  %vm1786_vm8 = vcmp.eq.s32.totalorder %v4561_v22, %v1730_v28 }
 0x302   : > { %v1727_v31 = vpop.permute.xlu1 %1726  ;;  %3773 = vmatmul.mubr.msk.f32.gmra.mxu0 %vm1816_vm7, %v6139_v49  ;;  %vm1818_vm13 = vmor %vm1658_vm11, %vm1786_vm8  ;;  %vm1662_vm7 = vcmp.eq.s32.totalorder %v4561_v22, %v5223_v51  ;;  %vm1663_vm11 = vcmp.eq.s32.totalorder %v4561_v22, %v5233_v52 }
 0x303   : > { %vm1785_vm10 = vcmp.eq.s32.totalorder %v4561_v22, %v1727_v31 }
 0x304   : > { %vm1817_vm12 = vmor %vm1657_vm9, %vm1785_vm10  ;;  %v1736_v38 = vpop.permute.xlu0 %1735 }
 0x305   : > { %3775 = vmatprep.mubr.msk.f32.mxu0 %vm1817_vm12, %v6139_v49  ;;  %vm1788_vm14 = vcmp.eq.s32.totalorder %v4561_v22, %v1736_v38 }
 0x306   : > { %v1733_v46 = vpop.permute.xlu1 %1732  ;;  %3776 = vmatmul.mubr.msk.f32.gmra.mxu0 %vm1818_vm13, %v6139_v49  ;;  %vm1820_vm3 = vmor %vm1660_vm1, %vm1788_vm14  ;;  %vm1664_vm13 = vcmp.eq.s32.totalorder %v4561_v22, %v5239_v30  ;;  %vm1665_vm1 = vcmp.eq.s32.totalorder %v4561_v22, %v5249_v45 }
 0x307   : > { %vm1787_vm0 = vcmp.eq.s32.totalorder %v4561_v22, %v1733_v46 }
 0x308   : > { %vm1819_vm2 = vmor %vm1659_vm15, %vm1787_vm0  ;;  %v1742_v47 = vpop.permute.xlu0 %1741 }
 0x309   : > { %3778 = vmatprep.mubr.msk.f32.mxu0 %vm1819_vm2, %v6139_v49  ;;  %vm1790_vm4 = vcmp.eq.s32.totalorder %v4561_v22, %v1742_v47 }
 0x30a   : > { %v1739_v36 = vpop.permute.xlu1 %1738  ;;  %3779 = vmatmul.mubr.msk.f32.gmra.mxu0 %vm1820_vm3, %v6139_v49  ;;  %vm1822_vm9 = vmor %vm1662_vm7, %vm1790_vm4  ;;  %vm1666_vm3 = vcmp.eq.s32.totalorder %v4561_v22, %v5255_v37  ;;  %vm1667_vm7 = vcmp.eq.s32.totalorder %v4561_v22, %v5265_v6  ;;  %v4085_v6 = vmov 6  }
 0x30b   : > { %vm1789_vm6 = vcmp.eq.s32.totalorder %v4561_v22, %v1739_v36  ;;  %3943 = vset.pattern.permute.xlu0 %v4085_v6  ;;  %3941 = vset.pattern.permute.xlu1 %v4085_v6 }
 0x30c   : > { %vm1821_vm8 = vmor %vm1661_vm5, %vm1789_vm6  ;;  %v1748_v43 = vpop.permute.xlu0 %1747 }
 0x30d   : > { %3781 = vmatprep.mubr.msk.f32.mxu0 %vm1821_vm8, %v6139_v49  ;;  %vm1792_vm10 = vcmp.eq.s32.totalorder %v4561_v22, %v1748_v43 }
 0x30e   : > { %v1745_v39 = vpop.permute.xlu1 %1744  ;;  %3782 = vmatmul.mubr.msk.f32.gmra.mxu0 %vm1822_vm9, %v6139_v49  ;;  %vm1824_vm15 = vmor %vm1664_vm13, %vm1792_vm10  ;;  %vm1668_vm9 = vcmp.eq.s32.totalorder %v4561_v22, %v5271_v10  ;;  %vm1669_vm13 = vcmp.eq.s32.totalorder %v4561_v22, %v5281_v9 }
 0x30f   : > { %vm1791_vm12 = vcmp.eq.s32.totalorder %v4561_v22, %v1745_v39 }
 0x310   : > { %vm1823_vm14 = vmor %vm1663_vm11, %vm1791_vm12  ;;  %v1754_v40 = vpop.permute.xlu0 %1753 }
 0x311   : > { %3784 = vmatprep.mubr.msk.f32.mxu0 %vm1823_vm14, %v6139_v49  ;;  %vm1794_vm0 = vcmp.eq.s32.totalorder %v4561_v22, %v1754_v40 }
 0x312   : > { %v1751_v51 = vpop.permute.xlu1 %1750  ;;  %3785 = vmatmul.mubr.msk.f32.gmra.mxu0 %vm1824_vm15, %v6139_v49  ;;  %vm1826_vm5 = vmor %vm1666_vm3, %vm1794_vm0  ;;  %vm1670_vm15 = vcmp.eq.s32.totalorder %v4561_v22, %v5287_v58  ;;  %v4087_v58 = vmov 7  }
 0x313   : > { %vm1793_vm2 = vcmp.eq.s32.totalorder %v4561_v22, %v1751_v51 }
 0x314   : > { %vm1825_vm4 = vmor %vm1665_vm1, %vm1793_vm2  ;;  %v1760_v52 = vpop.permute.xlu0 %1759  ;;  %vm2248_vm2 = vcmask 785920  }
 0x315   : > { %3787 = vmatprep.mubr.msk.f32.mxu0 %vm1825_vm4, %v6139_v49  ;;  %vm1796_vm6 = vcmp.eq.s32.totalorder %v4561_v22, %v1760_v52 }
 0x316   : > { %v1757_v30 = vpop.permute.xlu1 %1756  ;;  %3788 = vmatmul.mubr.msk.f32.gmra.mxu0 %vm1826_vm5, %v6139_v49  ;;  %vm1828_vm11 = vmor %vm1668_vm9, %vm1796_vm6 }
 0x317   : > { %vm1795_vm8 = vcmp.eq.s32.totalorder %v4561_v22, %v1757_v30 }
 0x318   : > { %vm1827_vm10 = vmor %vm1667_vm7, %vm1795_vm8  ;;  %v1766_v45 = vpop.permute.xlu0 %1765 }
 0x319   : > { %3790 = vmatprep.mubr.msk.f32.mxu0 %vm1827_vm10, %v6139_v49  ;;  %vm1798_vm12 = vcmp.eq.s32.totalorder %v4561_v22, %v1766_v45 }
 0x31a   : > { %v1763_v37 = vpop.permute.xlu1 %1762  ;;  %3791 = vmatmul.mubr.msk.f32.gmra.mxu0 %vm1828_vm11, %v6139_v49  ;;  %vm1830_vm1 = vmor %vm1670_vm15, %vm1798_vm12 }
 0x31b   : > { %vm1797_vm14 = vcmp.eq.s32.totalorder %v4561_v22, %v1763_v37 }
 0x31c   : > { %vm1829_vm0 = vmor %vm1669_vm13, %vm1797_vm14 }
 0x31d   : > { %3793 = vmatprep.mubr.msk.f32.mxu0 %vm1829_vm0, %v6139_v49 }
 0x31e   : > { %3794 = vmatmul.mubr.msk.f32.gmra.mxu0 %vm1830_vm1, %v6139_v49 }
 0x3a1   : > { %v3750_v10 = vpop.f32.mrf.mxu0 }
 0x3a2   : > { %2154 = vrot.lane.b32.xlu0 %v3750_v10, %s4086_s25 }
 0x3a3   : > { %v1961_v9 = vpop.f32.mrf.mxu0 }
 0x3a4   : > { %2152 = vrot.lane.b32.xlu1 %v1961_v9, %s4086_s25 }
 0x3a6   : > { %2288 = vperm.xlu0 %3943, %v5178_v54   ;;  %v5533_v4 = vpop.f32.mrf.mxu0 }
 0x3a8   : > { %2282 = vperm.xlu1 %3941, %v5162_v63  }
 0x3aa   : > { %2297 = vperm.xlu0 %3943, %v5182_v42  }
 0x3ac   : > { %2285 = vperm.xlu1 %3941, %v5166_v35  }
 0x3ae   : > { %2306 = vperm.xlu0 %3943, %v5210_v23  }
 0x3b0   : > { %3942 = vset.pattern.permute.xlu1 %v4087_v58 }
 0x3b1   : > { %2413 = vperm.xlu1 %3942, %v5166_v35   ;;  %v1971_v35 = vpop.f32.mrf.mxu0 }
 0x3b2   : > { %2315 = vperm.xlu0 %3943, %v5214_v50  }
 0x3b5   : > { %2416 = vperm.xlu1 %3942, %v5178_v54   ;;  %v5540_v54 = vpop.f32.mrf.mxu0 }
 0x3b6   : > { %2324 = vperm.xlu0 %3943, %v5242_v33  }
 0x3b9   : > { %3944 = vset.pattern.permute.xlu1 %v4085_v6 }
 0x3ba   : > { %2333 = vperm.xlu0 %3943, %v5246_v48   ;;  %2291 = vperm.xlu1 %3944, %v5172_v0  }
 0x3be   : > { %3954 = vset.pattern.permute.xlu0 %v4087_v58  ;;  %2294 = vperm.xlu1 %3944, %v5188_v53  }
 0x3bf   : > { %2410 = vperm.xlu0 %3954, %v5162_v63   ;;  %v1981_v63 = vpop.f32.mrf.mxu0 }
 0x3c1   : > { %v5546_v15 = vpop.f32.mrf.mxu0 }
 0x3c2   : > { %3945 = vset.pattern.permute.xlu1 %v4087_v58 }
 0x3c3   : > { %2419 = vperm.xlu0 %3954, %v5172_v0   ;;  %2422 = vperm.xlu1 %3945, %v5188_v53   ;;  %v1991_v0 = vpop.f32.mrf.mxu0 }
 0x3c7   : > { %2428 = vperm.xlu0 %3954, %v5198_v19   ;;  %2425 = vperm.xlu1 %3945, %v5182_v42   ;;  %v5553_v42 = vpop.f32.mrf.mxu0 }
 0x3c9   : > { %v2001_v53 = vpop.f32.mrf.mxu0 }
 0x3cb   : > { %2437 = vperm.xlu0 %3954, %v5204_v20   ;;  %3946 = vset.pattern.permute.xlu1 %v4085_v6 }
 0x3cc   : > { %2300 = vperm.xlu1 %3946, %v5198_v19   ;;  %v5560_v19 = vpop.f32.mrf.mxu0 }
 0x3cf   : > { %2446 = vperm.xlu0 %3954, %v5230_v32  }
 0x3d0   : > { %2303 = vperm.xlu1 %3946, %v5194_v44  }
 0x3d3   : > { %2455 = vperm.xlu0 %3954, %v5236_v18  }
 0x3d4   : > { %3947 = vset.pattern.permute.xlu1 %v4087_v58 }
 0x3d5   : > { %2431 = vperm.xlu1 %3947, %v5194_v44   ;;  %v2011_v44 = vpop.f32.mrf.mxu0 }
 0x3d7   : > { %2464 = vperm.xlu0 %3954, %v5262_v2  }
 0x3d9   : > { %2434 = vperm.xlu1 %3947, %v5210_v23   ;;  %v5567_v23 = vpop.f32.mrf.mxu0 }
 0x3db   : > { %2473 = vperm.xlu0 %3954, %v5268_v8  }
 0x3dd   : > { %3948 = vset.pattern.permute.xlu1 %v4085_v6 }
 0x3de   : > { %2309 = vperm.xlu1 %3948, %v5204_v20   ;;  %v2021_v20 = vpop.f32.mrf.mxu0 }
 0x3df   : > { %2482 = vperm.xlu0 %3954, %v5296_v17  }
 0x3e0   : > { %v5573_v29 = vpop.f32.mrf.mxu0 }
 0x3e2   : > { %2312 = vperm.xlu1 %3948, %v5220_v26   ;;  %v2031_v21 = vpop.f32.mrf.mxu0 }
 0x3e3   : > { %2491 = vperm.xlu0 %3954, %v5302_v24  }
 0x3e4   : > { %v5579_v57 = vpop.f32.mrf.mxu0 }
 0x3e6   : > { %3949 = vset.pattern.permute.xlu1 %v4087_v58  ;;  %v2041_v60 = vpop.f32.mrf.mxu0 }
 0x3e7   : > { %3962 = vset.pattern.permute.xlu0 %v4085_v6  ;;  %2440 = vperm.xlu1 %3949, %v5220_v26   ;;  %v6141_v26 = vld [vmem:[#allocation21_spill] sm:$0xff] }
 0x3e8   : > { %2342 = vperm.xlu0 %3962, %v5274_v5  }
 0x3eb   : > { %2443 = vperm.xlu1 %3949, %v5214_v50   ;;  %v6142_v50 = vld [vmem:[#allocation16_spill] sm:$0xff] }
 0x3ec   : > { %2351 = vperm.xlu0 %3962, %v5278_v7  }
 0x3ef   : > { %3950 = vset.pattern.permute.xlu1 %v4085_v6 }
 0x3f0   : > { %2360 = vperm.xlu0 %3962, %v5306_v16   ;;  %2318 = vperm.xlu1 %3950, %v5230_v32   ;;  %v5587_v32 = vpop.f32.mrf.mxu0 }
 0x3f2   : > { %v2051_v27 = vpop.f32.mrf.mxu0 }
 0x3f4   : > { %2369 = vperm.xlu0 %3962, %v6140_v25   ;;  %2321 = vperm.xlu1 %3950, %v6141_v26   ;;  %v5594_v55 = vpop.f32.mrf.mxu0 }
 0x3f8   : > { %3965 = vset.pattern.permute.xlu0 %v4087_v58  ;;  %3951 = vset.pattern.permute.xlu1 %v4087_v58 }
 0x3f9   : > { %2500 = vperm.xlu0 %3965, %v6142_v50   ;;  %2449 = vperm.xlu1 %3951, %v6141_v26  }
 0x3fd   : > { %2452 = vperm.xlu1 %3951, %v5242_v33   ;;  %2156 = vrot.lane.b32.xlu0 %v1971_v35, %s4086_s25  ;;  %v2061_v33 = vpop.f32.mrf.mxu0 }
 0x401   : > { %3952 = vset.pattern.permute.xlu1 %v4085_v6  ;;  %2160 = vrot.lane.b32.xlu0 %v1981_v63, %s4086_s25 }
 0x402   : > { %2327 = vperm.xlu1 %3952, %v5236_v18   ;;  %v5601_v18 = vpop.f32.mrf.mxu0 }
 0x404   : > { %v2071_v56 = vpop.f32.mrf.mxu0 }
 0x405   : > { %2164 = vrot.lane.b32.xlu0 %v1991_v0, %s4086_s25  ;;  %v6147_v0 = vld [vmem:[#allocation23_spill] sm:$0xff] }
 0x406   : > { %2330 = vperm.xlu1 %3952, %v6143_v34   ;;  %v5611_v1 = vpop.f32.mrf.mxu0 }
 0x408   : > { %v2081_v3 = vpop.f32.mrf.mxu0 }
 0x409   : > { %2168 = vrot.lane.b32.xlu0 %v2001_v53, %s4086_s25 }
 0x40a   : > { %3953 = vset.pattern.permute.xlu1 %v4087_v58 }
 0x40b   : > { %2458 = vperm.xlu1 %3953, %v6143_v34  }
 0x40d   : > { %2172 = vrot.lane.b32.xlu0 %v2011_v44, %s4086_s25 }
 0x40f   : > { %2461 = vperm.xlu1 %3953, %v5246_v48   ;;  %v6144_v48 = vld [vmem:[#allocation13_spill] sm:$0xff] }
 0x411   : > { %2176 = vrot.lane.b32.xlu0 %v2021_v20, %s4086_s25 }
 0x413   : > { %3955 = vset.pattern.permute.xlu1 %v4085_v6 }
 0x414   : > { %2336 = vperm.xlu1 %3955, %v5262_v2   ;;  %v2155_v41 = vpop.permute.xlu0 %2154  ;;  %v5618_v2 = vpop.f32.mrf.mxu0 }
 0x415   : > { %2250 = vst.msk [vmem:[%s5030_s16 + $0x8] sm:$0xff] %vm2248_vm2, %v2155_v41  ;;  %2180 = vrot.lane.b32.xlu0 %v2031_v21, %s4086_s25 }
 0x416   : > { %v2153_v59 = vpop.permute.xlu1 %2152  ;;  %v2091_v11 = vpop.f32.mrf.mxu0 }
 0x417   : > { %2249 = vst.msk [vmem:[%s5030_s16] sm:$0xff] %vm2248_vm2, %v2153_v59 }
 0x418   : > { %2339 = vperm.xlu1 %3955, %v6144_v48   ;;  %v5625_v62 = vpop.f32.mrf.mxu0 }
 0x419   : > { %2184 = vrot.lane.b32.xlu0 %v2041_v60, %s4086_s25 }
 0x41a   : > { %v2101_v31 = vpop.f32.mrf.mxu0 }
 0x41c   : > { %3956 = vset.pattern.permute.xlu1 %v4087_v58 }
 0x41d   : > { %2467 = vperm.xlu1 %3956, %v6144_v48   ;;  %2188 = vrot.lane.b32.xlu0 %v2051_v27, %s4086_s25 }
 0x421   : > { %2470 = vperm.xlu1 %3956, %v5274_v5   ;;  %2192 = vrot.lane.b32.xlu0 %v2061_v33, %s4086_s25  ;;  %v2289_v12 = vpop.permute.xlu0 %2288  ;;  %v6145_v5 = vld [vmem:[#allocation22_spill] sm:$0xff] }
 0x422   : > { %vm2379_vm4 = vcmp.eq.s32.totalorder %v4561_v22, %v2289_v12 }
 0x423   : > { %v2283_v14 = vpop.permute.xlu1 %2282 }
 0x424   : > { %vm2377_vm5 = vcmp.eq.s32.totalorder %v4561_v22, %v2283_v14 }
 0x425   : > { %3957 = vset.pattern.permute.xlu1 %v4085_v6  ;;  %2196 = vrot.lane.b32.xlu0 %v2071_v56, %s4086_s25  ;;  %v2298_v13 = vpop.permute.xlu0 %2297 }
 0x426   : > { %2345 = vperm.xlu1 %3957, %v5268_v8   ;;  %v5636_v8 = vpop.f32.mrf.mxu0  ;;  %vm2382_vm15 = vcmp.eq.s32.totalorder %v4561_v22, %v2298_v13 }
 0x427   : > { %v2286_v61 = vpop.permute.xlu1 %2285 }
 0x428   : > { %v2111_v43 = vpop.f32.mrf.mxu0  ;;  %vm2378_vm8 = vcmp.eq.s32.totalorder %v4561_v22, %v2286_v61 }
 0x429   : > { %2200 = vrot.lane.b32.xlu0 %v2081_v3, %s4086_s25  ;;  %v5628_v28 = vpop.permute.xlu0 %2306 }
 0x42a   : > { %2348 = vperm.xlu1 %3957, %v6145_v5  }
 0x42c   : > { %v2414_v38 = vpop.permute.xlu1 %2413 }
 0x42d   : > { %2204 = vrot.lane.b32.xlu0 %v2091_v11, %s4086_s25  ;;  %v5632_v46 = vpop.permute.xlu0 %2315  ;;  %vm2506_vm3 = vcmp.eq.s32.totalorder %v4561_v22, %v2414_v38 }
 0x42e   : > { %3958 = vset.pattern.permute.xlu1 %v4087_v58  ;;  %vm2538_vm10 = vmor %vm2378_vm8, %vm2506_vm3 }
 0x42f   : > { %2476 = vperm.xlu1 %3958, %v6145_v5  }
 0x430   : > { %v2417_v47 = vpop.permute.xlu1 %2416 }
 0x431   : > { %2208 = vrot.lane.b32.xlu0 %v2101_v31, %s4086_s25  ;;  %v5639_v36 = vpop.permute.xlu0 %2324  ;;  %vm2507_vm6 = vcmp.eq.s32.totalorder %v4561_v22, %v2417_v47 }
 0x432   : > { %vm2539_vm11 = vmor %vm2379_vm4, %vm2507_vm6 }
 0x433   : > { %2479 = vperm.xlu1 %3958, %v5278_v7   ;;  %v6146_v7 = vld [vmem:[#allocation6_spill] sm:$0xff] }
 0x435   : > { %v2292_v39 = vpop.permute.xlu1 %2291  ;;  %2212 = vrot.lane.b32.xlu0 %v2111_v43, %s4086_s25  ;;  %v5643_v40 = vpop.permute.xlu0 %2333 }
 0x436   : > { %vm2380_vm14 = vcmp.eq.s32.totalorder %v4561_v22, %v2292_v39 }
 0x437   : > { %3959 = vset.pattern.permute.xlu1 %v4085_v6 }
 0x438   : > { %2354 = vperm.xlu1 %3959, %v5296_v17  }
 0x439   : > { %v2295_v51 = vpop.permute.xlu1 %2294 }
 0x43a   : > { %v2411_v52 = vpop.permute.xlu0 %2410  ;;  %vm2381_vm0 = vcmp.eq.s32.totalorder %v4561_v22, %v2295_v51 }
 0x43b   : > { %vm2505_vm7 = vcmp.eq.s32.totalorder %v4561_v22, %v2411_v52 }
 0x43c   : > { %vm2537_vm9 = vmor %vm2377_vm5, %vm2505_vm7  ;;  %2357 = vperm.xlu1 %3959, %v6146_v7  }
 0x43d   : > { %3828 = vmatprep.mubr.msk.f32.mxu1 %vm2537_vm9, %v6139_v49 }
 0x43e   : > { %v2423_v17 = vpop.permute.xlu1 %2422  ;;  %3829 = vmatmul.mubr.msk.f32.vlgmr.msra.gmra.mxu1 %vm2538_vm10, %v6139_v49  ;;  %v2420_v30 = vpop.permute.xlu0 %2419 }
 0x43f   : > { %vm2509_vm12 = vcmp.eq.s32.totalorder %v4561_v22, %v2423_v17  ;;  %vm2508_vm13 = vcmp.eq.s32.totalorder %v4561_v22, %v2420_v30  ;;  %3831 = vmatprep.mubr.msk.f32.mxu1 %vm2539_vm11, %v6139_v49 }
 0x440   : > { %3960 = vset.pattern.permute.xlu1 %v4087_v58  ;;  %vm2540_vm1 = vmor %vm2380_vm14, %vm2508_vm13 }
 0x441   : > { %2485 = vperm.xlu1 %3960, %v6146_v7   ;;  %vm2541_vm3 = vmor %vm2381_vm0, %vm2509_vm12  ;;  %vm2385_vm12 = vcmp.eq.s32.totalorder %v4561_v22, %v5628_v28 }
 0x442   : > { %v2426_v45 = vpop.permute.xlu1 %2425  ;;  %3832 = vmatmul.mubr.msk.f32.gmra.mxu1 %vm2540_vm1, %v6139_v49  ;;  %v2429_v37 = vpop.permute.xlu0 %2428 }
 0x443   : > { %vm2510_vm4 = vcmp.eq.s32.totalorder %v4561_v22, %v2426_v45  ;;  %3834 = vmatprep.mubr.msk.f32.mxu1 %vm2541_vm3, %v6139_v49  ;;  %vm2511_vm6 = vcmp.eq.s32.totalorder %v4561_v22, %v2429_v37 }
 0x444   : > { %vm2542_vm5 = vmor %vm2382_vm15, %vm2510_vm4 }
 0x445   : > { %2488 = vperm.xlu1 %3960, %v5306_v16  }
 0x446   : > { %3835 = vmatmul.mubr.msk.f32.gmra.mxu1 %vm2542_vm5, %v6139_v49  ;;  %v2438_v10 = vpop.permute.xlu0 %2437 }
 0x447   : > { %v2301_v9 = vpop.permute.xlu1 %2300  ;;  %vm2514_vm15 = vcmp.eq.s32.totalorder %v4561_v22, %v2438_v10 }
 0x448   : > { %vm2383_vm7 = vcmp.eq.s32.totalorder %v4561_v22, %v2301_v9 }
 0x449   : > { %vm2543_vm8 = vmor %vm2383_vm7, %vm2511_vm6  ;;  %3961 = vset.pattern.permute.xlu1 %v4085_v6  ;;  %vm2388_vm6 = vcmp.eq.s32.totalorder %v4561_v22, %v5632_v46 }
 0x44a   : > { %2363 = vperm.xlu1 %3961, %v5302_v24   ;;  %3837 = vmatprep.mubr.msk.f32.mxu1 %vm2543_vm8, %v6139_v49  ;;  %v2447_v35 = vpop.permute.xlu0 %2446 }
 0x44b   : > { %v2304_v63 = vpop.permute.xlu1 %2303 }
 0x44c   : > { %vm2384_vm9 = vcmp.eq.s32.totalorder %v4561_v22, %v2304_v63 }
 0x44e   : > { %2366 = vperm.xlu1 %3961, %v6147_v0   ;;  %v5675_v16 = vpop.permute.xlu0 %2455 }
 0x450   : > { %v2432_v53 = vpop.permute.xlu1 %2431 }
 0x451   : > { %vm2512_vm10 = vcmp.eq.s32.totalorder %v4561_v22, %v2432_v53 }
 0x452   : > { %vm2544_vm11 = vmor %vm2384_vm9, %vm2512_vm10  ;;  %3963 = vset.pattern.permute.xlu1 %v4087_v58  ;;  %v5680_v44 = vpop.permute.xlu0 %2464  ;;  %vm2517_vm9 = vcmp.eq.s32.totalorder %v4561_v22, %v2447_v35 }
 0x453   : > { %2494 = vperm.xlu1 %3963, %v6147_v0   ;;  %3838 = vmatmul.mubr.msk.f32.gmra.mxu1 %vm2544_vm11, %v6139_v49 }
 0x454   : > { %v2435_v24 = vpop.permute.xlu1 %2434 }
 0x455   : > { %vm2513_vm13 = vcmp.eq.s32.totalorder %v4561_v22, %v2435_v24 }
 0x456   : > { %vm2545_vm14 = vmor %vm2385_vm12, %vm2513_vm13  ;;  %v5687_v20 = vpop.permute.xlu0 %2473 }
 0x457   : > { %2497 = vperm.xlu1 %3963, %v6140_v25   ;;  %3840 = vmatprep.mubr.msk.f32.mxu1 %vm2545_vm14, %v6139_v49  ;;  %v6148_v25 = vld [vmem:[#allocation7_spill] sm:$0xff] }
 0x459   : > { %v2310_v21 = vpop.permute.xlu1 %2309 }
 0x45a   : > { %vm2386_vm0 = vcmp.eq.s32.totalorder %v4561_v22, %v2310_v21  ;;  %v5693_v26 = vpop.permute.xlu0 %2482 }
 0x45b   : > { %vm2546_vm1 = vmor %vm2386_vm0, %vm2514_vm15  ;;  %3964 = vset.pattern.permute.xlu1 %v4085_v6  ;;  %vm2391_vm15 = vcmp.eq.s32.totalorder %v4561_v22, %v5639_v36 }
 0x45c   : > { %2372 = vperm.xlu1 %3964, %v6142_v50   ;;  %3841 = vmatmul.mubr.msk.f32.gmra.mxu1 %vm2546_vm1, %v6139_v49 }
 0x45d   : > { %v2313_v60 = vpop.permute.xlu1 %2312 }
 0x45e   : > { %v5698_v27 = vpop.permute.xlu0 %2491  ;;  %vm2387_vm3 = vcmp.eq.s32.totalorder %v4561_v22, %v2313_v60 }
 0x460   : > { %2375 = vperm.xlu1 %3964, %v6148_v25  }
 0x462   : > { %v2441_v34 = vpop.permute.xlu1 %2440 }
 0x463   : > { %vm2515_vm4 = vcmp.eq.s32.totalorder %v4561_v22, %v2441_v34  ;;  %v5703_v33 = vpop.permute.xlu0 %2342 }
 0x464   : > { %vm2547_vm5 = vmor %vm2387_vm3, %vm2515_vm4  ;;  %3966 = vset.pattern.permute.xlu1 %v4087_v58  ;;  %vm2520_vm3 = vcmp.eq.s32.totalorder %v4561_v22, %v5675_v16 }
 0x465   : > { %2503 = vperm.xlu1 %3966, %v6148_v25   ;;  %3843 = vmatprep.mubr.msk.f32.mxu1 %vm2547_vm5, %v6139_v49 }
 0x466   : > { %v2444_v6 = vpop.permute.xlu1 %2443 }
 0x467   : > { %vm2516_vm7 = vcmp.eq.s32.totalorder %v4561_v22, %v2444_v6  ;;  %v5711_v50 = vpop.permute.xlu0 %2351 }
 0x468   : > { %vm2548_vm8 = vmor %vm2388_vm6, %vm2516_vm7 }
 0x469   : > { %2158 = vrot.lane.b32.xlu1 %v5533_v4, %s4086_s25  ;;  %3844 = vmatmul.mubr.msk.f32.gmra.mxu1 %vm2548_vm8, %v6139_v49 }
 0x46b   : > { %v2319_v58 = vpop.permute.xlu1 %2318  ;;  %v5717_v56 = vpop.permute.xlu0 %2360 }
 0x46c   : > { %vm2389_vm10 = vcmp.eq.s32.totalorder %v4561_v22, %v2319_v58 }
 0x46d   : > { %vm2549_vm11 = vmor %vm2389_vm10, %vm2517_vm9  ;;  %2162 = vrot.lane.b32.xlu1 %v5540_v54, %s4086_s25  ;;  %vm2394_vm9 = vcmp.eq.s32.totalorder %v4561_v22, %v5643_v40 }
 0x46e   : > { %3846 = vmatprep.mubr.msk.f32.mxu1 %vm2549_vm11, %v6139_v49 }
 0x46f   : > { %v2322_v41 = vpop.permute.xlu1 %2321  ;;  %v5723_v59 = vpop.permute.xlu0 %2369 }
 0x470   : > { %vm2390_vm12 = vcmp.eq.s32.totalorder %v4561_v22, %v2322_v41 }
 0x471   : > { %2166 = vrot.lane.b32.xlu1 %v5546_v15, %s4086_s25 }
 0x474   : > { %v2450_v4 = vpop.permute.xlu1 %2449  ;;  %v5727_v48 = vpop.permute.xlu0 %2500 }
 0x475   : > { %vm2518_vm13 = vcmp.eq.s32.totalorder %v4561_v22, %v2450_v4  ;;  %2170 = vrot.lane.b32.xlu1 %v5553_v42, %s4086_s25 }
 0x476   : > { %vm2550_vm14 = vmor %vm2390_vm12, %vm2518_vm13  ;;  %vm2523_vm12 = vcmp.eq.s32.totalorder %v4561_v22, %v5680_v44 }
 0x477   : > { %3847 = vmatmul.mubr.msk.f32.gmra.mxu1 %vm2550_vm14, %v6139_v49 }
 0x478   : > { %v2453_v54 = vpop.permute.xlu1 %2452  ;;  %v2157_v15 = vpop.permute.xlu0 %2156 }
 0x479   : > { %vm2519_vm0 = vcmp.eq.s32.totalorder %v4561_v22, %v2453_v54  ;;  %2251 = vst.msk [vmem:[%s5030_s16 + $0x10] sm:$0xff] %vm2248_vm2, %v2157_v15  ;;  %2174 = vrot.lane.b32.xlu1 %v5560_v19, %s4086_s25 }
 0x47a   : > { %vm2551_vm1 = vmor %vm2391_vm15, %vm2519_vm0 }
 0x47b   : > { %3849 = vmatprep.mubr.msk.f32.mxu1 %vm2551_vm1, %v6139_v49 }
 0x47c   : > { %v2161_v42 = vpop.permute.xlu0 %2160 }
 0x47d   : > { %2253 = vst.msk [vmem:[%s5030_s16 + $0x20] sm:$0xff] %vm2248_vm2, %v2161_v42  ;;  %v2328_v3 = vpop.permute.xlu1 %2327  ;;  %2178 = vrot.lane.b32.xlu1 %v5567_v23, %s4086_s25 }
 0x47e   : > { %vm2392_vm4 = vcmp.eq.s32.totalorder %v4561_v22, %v2328_v3 }
 0x47f   : > { %vm2552_vm5 = vmor %vm2392_vm4, %vm2520_vm3  ;;  %vm2397_vm3 = vcmp.eq.s32.totalorder %v4561_v22, %v5703_v33 }
 0x480   : > { %3850 = vmatmul.mubr.msk.f32.gmra.mxu1 %vm2552_vm5, %v6139_v49  ;;  %v2165_v19 = vpop.permute.xlu0 %2164 }
 0x481   : > { %2255 = vst.msk [vmem:[%s5030_s16 + $0x30] sm:$0xff] %vm2248_vm2, %v2165_v19  ;;  %v2331_v12 = vpop.permute.xlu1 %2330  ;;  %2182 = vrot.lane.b32.xlu1 %v5573_v29, %s4086_s25 }
 0x482   : > { %vm2393_vm6 = vcmp.eq.s32.totalorder %v4561_v22, %v2331_v12 }
 0x484   : > { %v2169_v14 = vpop.permute.xlu0 %2168 }
 0x485   : > { %2257 = vst.msk [vmem:[%s5030_s16 + $0x40] sm:$0xff] %vm2248_vm2, %v2169_v14  ;;  %2186 = vrot.lane.b32.xlu1 %v5579_v57, %s4086_s25 }
 0x486   : > { %v2459_v23 = vpop.permute.xlu1 %2458 }
 0x487   : > { %vm2521_vm7 = vcmp.eq.s32.totalorder %v4561_v22, %v2459_v23 }
 0x488   : > { %vm2553_vm8 = vmor %vm2393_vm6, %vm2521_vm7  ;;  %v2173_v11 = vpop.permute.xlu0 %2172  ;;  %vm2526_vm6 = vcmp.eq.s32.totalorder %v4561_v22, %v5687_v20 }
 0x489   : > { %2259 = vst.msk [vmem:[%s5030_s16 + $0x50] sm:$0xff] %vm2248_vm2, %v2173_v11  ;;  %2190 = vrot.lane.b32.xlu1 %v5587_v32, %s4086_s25  ;;  %3852 = vmatprep.mubr.msk.f32.mxu1 %vm2553_vm8, %v6139_v49 }
 0x48a   : > { %v2462_v29 = vpop.permute.xlu1 %2461 }
 0x48b   : > { %vm2522_vm10 = vcmp.eq.s32.totalorder %v4561_v22, %v2462_v29 }
 0x48c   : > { %vm2554_vm11 = vmor %vm2394_vm9, %vm2522_vm10  ;;  %v2177_v57 = vpop.permute.xlu0 %2176 }
 0x48d   : > { %2261 = vst.msk [vmem:[%s5030_s16 + $0x60] sm:$0xff] %vm2248_vm2, %v2177_v57  ;;  %2194 = vrot.lane.b32.xlu1 %v5594_v55, %s4086_s25  ;;  %3853 = vmatmul.mubr.msk.f32.gmra.mxu1 %vm2554_vm11, %v6139_v49 }
 0x48f   : > { %v2337_v32 = vpop.permute.xlu1 %2336 }
 0x490   : > { %vm2395_vm13 = vcmp.eq.s32.totalorder %v4561_v22, %v2337_v32  ;;  %v2181_v13 = vpop.permute.xlu0 %2180 }
 0x491   : > { %vm2555_vm14 = vmor %vm2395_vm13, %vm2523_vm12  ;;  %2263 = vst.msk [vmem:[%s5030_s16 + $0x70] sm:$0xff] %vm2248_vm2, %v2181_v13  ;;  %2198 = vrot.lane.b32.xlu1 %v5601_v18, %s4086_s25  ;;  %vm2400_vm12 = vcmp.eq.s32.totalorder %v4561_v22, %v5711_v50 }
 0x492   : > { %3855 = vmatprep.mubr.msk.f32.mxu1 %vm2555_vm14, %v6139_v49 }
 0x493   : > { %v2340_v61 = vpop.permute.xlu1 %2339 }
 0x494   : > { %v2185_v55 = vpop.permute.xlu0 %2184  ;;  %vm2396_vm15 = vcmp.eq.s32.totalorder %v4561_v22, %v2340_v61 }
 0x495   : > { %2265 = vst.msk [vmem:[%s5030_s16 + $0x80] sm:$0xff] %vm2248_vm2, %v2185_v55  ;;  %2202 = vrot.lane.b32.xlu1 %v5611_v1, %s4086_s25 }
 0x498   : > { %v2468_v28 = vpop.permute.xlu1 %2467  ;;  %v2189_v5 = vpop.permute.xlu0 %2188 }
 0x499   : > { %vm2524_vm0 = vcmp.eq.s32.totalorder %v4561_v22, %v2468_v28  ;;  %2267 = vst.msk [vmem:[%s5030_s16 + $0x90] sm:$0xff] %vm2248_vm2, %v2189_v5  ;;  %2206 = vrot.lane.b32.xlu1 %v5618_v2, %s4086_s25 }
 0x49a   : > { %vm2556_vm1 = vmor %vm2396_vm15, %vm2524_vm0  ;;  %vm2529_vm15 = vcmp.eq.s32.totalorder %v4561_v22, %v5693_v26 }
 0x49b   : > { %3856 = vmatmul.mubr.msk.f32.gmra.mxu1 %vm2556_vm1, %v6139_v49 }
 0x49c   : > { %v2471_v18 = vpop.permute.xlu1 %2470  ;;  %v2193_v1 = vpop.permute.xlu0 %2192 }
 0x49d   : > { %vm2525_vm4 = vcmp.eq.s32.totalorder %v4561_v22, %v2471_v18  ;;  %2269 = vst.msk [vmem:[%s5030_s16 + $0xa0] sm:$0xff] %vm2248_vm2, %v2193_v1  ;;  %2210 = vrot.lane.b32.xlu1 %v5625_v62, %s4086_s25 }
 0x49e   : > { %vm2557_vm5 = vmor %vm2397_vm3, %vm2525_vm4 }
 0x49f   : > { %3858 = vmatprep.mubr.msk.f32.mxu1 %vm2557_vm5, %v6139_v49 }
 0x4a0   : > { %v2197_v2 = vpop.permute.xlu0 %2196 }
 0x4a1   : > { %2271 = vst.msk [vmem:[%s5030_s16 + $0xb0] sm:$0xff] %vm2248_vm2, %v2197_v2  ;;  %v2346_v31 = vpop.permute.xlu1 %2345  ;;  %2214 = vrot.lane.b32.xlu1 %v5636_v8, %s4086_s25 }
 0x4a2   : > { %vm2398_vm7 = vcmp.eq.s32.totalorder %v4561_v22, %v2346_v31 }
 0x4a3   : > { %vm2558_vm8 = vmor %vm2398_vm7, %vm2526_vm6  ;;  %vm2403_vm6 = vcmp.eq.s32.totalorder %v4561_v22, %v5717_v56 }
 0x4a4   : > { %3859 = vmatmul.mubr.msk.f32.gmra.mxu1 %vm2558_vm8, %v6139_v49  ;;  %v2201_v62 = vpop.permute.xlu0 %2200 }
 0x4a5   : > { %2273 = vst.msk [vmem:[%s5030_s16 + $0xc0] sm:$0xff] %vm2248_vm2, %v2201_v62  ;;  %v2349_v38 = vpop.permute.xlu1 %2348 }
 0x4a6   : > { %vm2399_vm9 = vcmp.eq.s32.totalorder %v4561_v22, %v2349_v38 }
 0x4a8   : > { %v2205_v46 = vpop.permute.xlu0 %2204 }
 0x4a9   : > { %2275 = vst.msk [vmem:[%s5030_s16 + $0xd0] sm:$0xff] %vm2248_vm2, %v2205_v46 }
 0x4aa   : > { %v2477_v47 = vpop.permute.xlu1 %2476 }
 0x4ab   : > { %vm2527_vm10 = vcmp.eq.s32.totalorder %v4561_v22, %v2477_v47 }
 0x4ac   : > { %vm2559_vm11 = vmor %vm2399_vm9, %vm2527_vm10  ;;  %v2209_v8 = vpop.permute.xlu0 %2208  ;;  %vm2532_vm9 = vcmp.eq.s32.totalorder %v4561_v22, %v5698_v27 }
 0x4ad   : > { %2277 = vst.msk [vmem:[%s5030_s16 + $0xe0] sm:$0xff] %vm2248_vm2, %v2209_v8  ;;  %3861 = vmatprep.mubr.msk.f32.mxu1 %vm2559_vm11, %v6139_v49 }
 0x4ae   : > { %v2480_v36 = vpop.permute.xlu1 %2479 }
 0x4af   : > { %vm2528_vm13 = vcmp.eq.s32.totalorder %v4561_v22, %v2480_v36 }
 0x4b0   : > { %vm2560_vm14 = vmor %vm2400_vm12, %vm2528_vm13  ;;  %v2213_v43 = vpop.permute.xlu0 %2212 }
 0x4b1   : > { %2279 = vst.msk [vmem:[%s5030_s16 + $0xf0] sm:$0xff] %vm2248_vm2, %v2213_v43  ;;  %3862 = vmatmul.mubr.msk.f32.gmra.mxu1 %vm2560_vm14, %v6139_v49 }
 0x4b3   : > { %v2355_v39 = vpop.permute.xlu1 %2354 }
 0x4b4   : > { %vm2401_vm0 = vcmp.eq.s32.totalorder %v4561_v22, %v2355_v39 }
 0x4b5   : > { %vm2561_vm1 = vmor %vm2401_vm0, %vm2529_vm15  ;;  %vm2406_vm15 = vcmp.eq.s32.totalorder %v4561_v22, %v5723_v59 }
 0x4b6   : > { %3864 = vmatprep.mubr.msk.f32.mxu1 %vm2561_vm1, %v6139_v49 }
 0x4b7   : > { %v2358_v40 = vpop.permute.xlu1 %2357 }
 0x4b8   : > { %vm2402_vm3 = vcmp.eq.s32.totalorder %v4561_v22, %v2358_v40 }
 0x4bc   : > { %v2486_v51 = vpop.permute.xlu1 %2485 }
 0x4bd   : > { %vm2530_vm4 = vcmp.eq.s32.totalorder %v4561_v22, %v2486_v51 }
 0x4be   : > { %vm2562_vm5 = vmor %vm2402_vm3, %vm2530_vm4  ;;  %vm2535_vm3 = vcmp.eq.s32.totalorder %v4561_v22, %v5727_v48 }
 0x4bf   : > { %3865 = vmatmul.mubr.msk.f32.gmra.mxu1 %vm2562_vm5, %v6139_v49 }
 0x4c0   : > { %v2489_v52 = vpop.permute.xlu1 %2488 }
 0x4c1   : > { %vm2531_vm7 = vcmp.eq.s32.totalorder %v4561_v22, %v2489_v52 }
 0x4c2   : > { %vm2563_vm8 = vmor %vm2403_vm6, %vm2531_vm7 }
 0x4c3   : > { %3867 = vmatprep.mubr.msk.f32.mxu1 %vm2563_vm8, %v6139_v49 }
 0x4c5   : > { %v2364_v7 = vpop.permute.xlu1 %2363 }
 0x4c6   : > { %vm2404_vm10 = vcmp.eq.s32.totalorder %v4561_v22, %v2364_v7 }
 0x4c7   : > { %vm2564_vm11 = vmor %vm2404_vm10, %vm2532_vm9 }
 0x4c8   : > { %3868 = vmatmul.mubr.msk.f32.gmra.mxu1 %vm2564_vm11, %v6139_v49 }
 0x4c9   : > { %v2367_v17 = vpop.permute.xlu1 %2366 }
 0x4ca   : > { %vm2405_vm12 = vcmp.eq.s32.totalorder %v4561_v22, %v2367_v17 }
 0x4ce   : > { %v2495_v30 = vpop.permute.xlu1 %2494 }
 0x4cf   : > { %vm2533_vm13 = vcmp.eq.s32.totalorder %v4561_v22, %v2495_v30 }
 0x4d0   : > { %vm2565_vm14 = vmor %vm2405_vm12, %vm2533_vm13 }
 0x4d1   : > { %3870 = vmatprep.mubr.msk.f32.mxu1 %vm2565_vm14, %v6139_v49 }
 0x4d2   : > { %v2498_v45 = vpop.permute.xlu1 %2497 }
 0x4d3   : > { %vm2534_vm0 = vcmp.eq.s32.totalorder %v4561_v22, %v2498_v45 }
 0x4d4   : > { %vm2566_vm1 = vmor %vm2406_vm15, %vm2534_vm0 }
 0x4d5   : > { %3871 = vmatmul.mubr.msk.f32.gmra.mxu1 %vm2566_vm1, %v6139_v49 }
 0x4d7   : > { %v2373_v37 = vpop.permute.xlu1 %2372 }
 0x4d8   : > { %vm2407_vm4 = vcmp.eq.s32.totalorder %v4561_v22, %v2373_v37 }
 0x4d9   : > { %vm2567_vm5 = vmor %vm2407_vm4, %vm2535_vm3 }
 0x4da   : > { %3873 = vmatprep.mubr.msk.f32.mxu1 %vm2567_vm5, %v6139_v49 }
 0x4db   : > { %v2376_v10 = vpop.permute.xlu1 %2375 }
 0x4dc   : > { %vm2408_vm6 = vcmp.eq.s32.totalorder %v4561_v22, %v2376_v10 }
 0x4e0   : > { %v2504_v9 = vpop.permute.xlu1 %2503 }
 0x4e1   : > { %vm2536_vm7 = vcmp.eq.s32.totalorder %v4561_v22, %v2504_v9 }
 0x4e2   : > { %vm2568_vm8 = vmor %vm2408_vm6, %vm2536_vm7 }
 0x4e3   : > { %3874 = vmatmul.mubr.msk.f32.gmra.mxu1 %vm2568_vm8, %v6139_v49 }
 0x4e4   : > { %v2159_v35 = vpop.permute.xlu1 %2158 }
 0x4e5   : > { %2252 = vst.msk [vmem:[%s5030_s16 + $0x18] sm:$0xff] %vm2248_vm2, %v2159_v35 }
 0x4e8   : > { %v2163_v63 = vpop.permute.xlu1 %2162 }
 0x4e9   : > { %2254 = vst.msk [vmem:[%s5030_s16 + $0x28] sm:$0xff] %vm2248_vm2, %v2163_v63 }
 0x4ec   : > { %v2167_v0 = vpop.permute.xlu1 %2166 }
 0x4ed   : > { %2256 = vst.msk [vmem:[%s5030_s16 + $0x38] sm:$0xff] %vm2248_vm2, %v2167_v0 }
 0x4f0   : > { %v2171_v16 = vpop.permute.xlu1 %2170 }
 0x4f1   : > { %2258 = vst.msk [vmem:[%s5030_s16 + $0x48] sm:$0xff] %vm2248_vm2, %v2171_v16 }
 0x4f4   : > { %v2175_v53 = vpop.permute.xlu1 %2174 }
 0x4f5   : > { %2260 = vst.msk [vmem:[%s5030_s16 + $0x58] sm:$0xff] %vm2248_vm2, %v2175_v53 }
 0x4f8   : > { %v2179_v22 = vpop.permute.xlu1 %2178 }
 0x4f9   : > { %2262 = vst.msk [vmem:[%s5030_s16 + $0x68] sm:$0xff] %vm2248_vm2, %v2179_v22 }
 0x4fc   : > { %v2183_v49 = vpop.permute.xlu1 %2182 }
 0x4fd   : > { %2264 = vst.msk [vmem:[%s5030_s16 + $0x78] sm:$0xff] %vm2248_vm2, %v2183_v49 }
 0x4fe   : > { %v3830_v44 = vpop.f32.mrf.mxu1 }
 0x4ff   : > { %2892 = vrot.lane.b32.xlu1 %v3830_v44, %s4088_s21 }
 0x500   : > { %v2187_v24 = vpop.permute.xlu1 %2186  ;;  %v2699_v20 = vpop.f32.mrf.mxu1 }
 0x501   : > { %2266 = vst.msk [vmem:[%s5030_s16 + $0x88] sm:$0xff] %vm2248_vm2, %v2187_v24  ;;  %2890 = vrot.lane.b32.xlu0 %v2699_v20, %s4088_s21 }
 0x502   : > { %v3833_v21 = vpop.f32.mrf.mxu1 }
 0x503   : > { %2896 = vrot.lane.b32.xlu1 %v3833_v21, %s4088_s21 }
 0x504   : > { %v2191_v26 = vpop.permute.xlu1 %2190  ;;  %v2709_v60 = vpop.f32.mrf.mxu1 }
 0x505   : > { %2268 = vst.msk [vmem:[%s5030_s16 + $0x98] sm:$0xff] %vm2248_vm2, %v2191_v26  ;;  %2894 = vrot.lane.b32.xlu0 %v2709_v60, %s4088_s21 }
 0x506   : > { %v3836_v27 = vpop.f32.mrf.mxu1 }
 0x507   : > { %2900 = vrot.lane.b32.xlu1 %v3836_v27, %s4088_s21 }
 0x508   : > { %v2195_v25 = vpop.permute.xlu1 %2194  ;;  %v2719_v34 = vpop.f32.mrf.mxu1 }
 0x509   : > { %2270 = vst.msk [vmem:[%s5030_s16 + $0xa8] sm:$0xff] %vm2248_vm2, %v2195_v25  ;;  %2898 = vrot.lane.b32.xlu0 %v2719_v34, %s4088_s21 }
 0x50c   : > { %v2199_v33 = vpop.permute.xlu1 %2198 }
 0x50d   : > { %2272 = vst.msk [vmem:[%s5030_s16 + $0xb8] sm:$0xff] %vm2248_vm2, %v2199_v33 }
 0x510   : > { %v2203_v6 = vpop.permute.xlu1 %2202 }
 0x511   : > { %2274 = vst.msk [vmem:[%s5030_s16 + $0xc8] sm:$0xff] %vm2248_vm2, %v2203_v6 }
 0x513   : > { %v3839_v50 = vpop.f32.mrf.mxu1 }
 0x514   : > { %v2207_v58 = vpop.permute.xlu1 %2206  ;;  %2904 = vrot.lane.b32.xlu1 %v3839_v50, %s4088_s21 }
 0x515   : > { %2276 = vst.msk [vmem:[%s5030_s16 + $0xd8] sm:$0xff] %vm2248_vm2, %v2207_v58  ;;  %v2729_v56 = vpop.f32.mrf.mxu1 }
 0x516   : > { %2902 = vrot.lane.b32.xlu0 %v2729_v56, %s4088_s21 }
 0x518   : > { %v2211_v41 = vpop.permute.xlu1 %2210 }
 0x519   : > { %2278 = vst.msk [vmem:[%s5030_s16 + $0xe8] sm:$0xff] %vm2248_vm2, %v2211_v41 }
 0x51c   : > { %v2215_v59 = vpop.permute.xlu1 %2214  ;;  %v3842_v4 = vpop.f32.mrf.mxu1 }
 0x51d   : > { %2280 = vst.msk [vmem:[%s5030_s16 + $0xf8] sm:$0xff] %vm2248_vm2, %v2215_v59  ;;  %2908 = vrot.lane.b32.xlu1 %v3842_v4, %s4088_s21  ;;  %vm2986_vm2 = vcmask 1048320  }
 0x51e   : > { %v2739_v48 = vpop.f32.mrf.mxu1 }
 0x51f   : > { %2906 = vrot.lane.b32.xlu0 %v2739_v48, %s4088_s21 }
 0x529   : > { %v3845_v54 = vpop.f32.mrf.mxu1 }
 0x52a   : > { %2912 = vrot.lane.b32.xlu1 %v3845_v54, %s4088_s21 }
 0x52b   : > { %v2749_v15 = vpop.f32.mrf.mxu1 }
 0x52c   : > { %2910 = vrot.lane.b32.xlu0 %v2749_v15, %s4088_s21 }
 0x537   : > { %v3848_v42 = vpop.f32.mrf.mxu1 }
 0x538   : > { %2916 = vrot.lane.b32.xlu1 %v3848_v42, %s4088_s21 }
 0x539   : > { %v2759_v3 = vpop.f32.mrf.mxu1 }
 0x53a   : > { %2914 = vrot.lane.b32.xlu0 %v2759_v3, %s4088_s21 }
 0x540   : > { %v3851_v19 = vpop.f32.mrf.mxu1 }
 0x541   : > { %2920 = vrot.lane.b32.xlu1 %v3851_v19, %s4088_s21 }
 0x542   : > { %v2769_v12 = vpop.f32.mrf.mxu1 }
 0x543   : > { %2918 = vrot.lane.b32.xlu0 %v2769_v12, %s4088_s21 }
 0x54d   : > { %v3854_v14 = vpop.f32.mrf.mxu1 }
 0x54e   : > { %2924 = vrot.lane.b32.xlu1 %v3854_v14, %s4088_s21 }
 0x54f   : > { %v2779_v23 = vpop.f32.mrf.mxu1 }
 0x550   : > { %2922 = vrot.lane.b32.xlu0 %v2779_v23, %s4088_s21 }
 0x55b   : > { %v3857_v11 = vpop.f32.mrf.mxu1 }
 0x55c   : > { %2928 = vrot.lane.b32.xlu1 %v3857_v11, %s4088_s21 }
 0x55d   : > { %v2789_v29 = vpop.f32.mrf.mxu1 }
 0x55e   : > { %2926 = vrot.lane.b32.xlu0 %v2789_v29, %s4088_s21 }
 0x564   : > { %v3860_v57 = vpop.f32.mrf.mxu1 }
 0x565   : > { %2932 = vrot.lane.b32.xlu1 %v3860_v57, %s4088_s21 }
 0x566   : > { %v2799_v32 = vpop.f32.mrf.mxu1 }
 0x567   : > { %2930 = vrot.lane.b32.xlu0 %v2799_v32, %s4088_s21 }
 0x571   : > { %v2893_v13 = vpop.permute.xlu1 %2892  ;;  %v3863_v61 = vpop.f32.mrf.mxu1 }
 0x572   : > { %2988 = vst.msk [vmem:[%s5030_s16 + $0x8] sm:$0xff] %vm2986_vm2, %v2893_v13  ;;  %2936 = vrot.lane.b32.xlu1 %v3863_v61, %s4088_s21 }
 0x573   : > { %v2809_v55 = vpop.f32.mrf.mxu1  ;;  %v2891_v28 = vpop.permute.xlu0 %2890 }
 0x574   : > { %2987 = vst.msk [vmem:[%s5030_s16] sm:$0xff] %vm2986_vm2, %v2891_v28  ;;  %2934 = vrot.lane.b32.xlu0 %v2809_v55, %s4088_s21 }
 0x575   : > { %v2897_v5 = vpop.permute.xlu1 %2896 }
 0x576   : > { %2990 = vst.msk [vmem:[%s5030_s16 + $0x18] sm:$0xff] %vm2986_vm2, %v2897_v5 }
 0x577   : > { %v2895_v18 = vpop.permute.xlu0 %2894 }
 0x578   : > { %2989 = vst.msk [vmem:[%s5030_s16 + $0x10] sm:$0xff] %vm2986_vm2, %v2895_v18 }
 0x579   : > { %v2901_v1 = vpop.permute.xlu1 %2900 }
 0x57a   : > { %2992 = vst.msk [vmem:[%s5030_s16 + $0x28] sm:$0xff] %vm2986_vm2, %v2901_v1 }
 0x57b   : > { %v2899_v2 = vpop.permute.xlu0 %2898 }
 0x57c   : > { %2991 = vst.msk [vmem:[%s5030_s16 + $0x20] sm:$0xff] %vm2986_vm2, %v2899_v2 }
 0x57f   : > { %v3866_v31 = vpop.f32.mrf.mxu1 }
 0x580   : > { %2940 = vrot.lane.b32.xlu1 %v3866_v31, %s4088_s21 }
 0x581   : > { %v2819_v62 = vpop.f32.mrf.mxu1 }
 0x582   : > { %2938 = vrot.lane.b32.xlu0 %v2819_v62, %s4088_s21 }
 0x586   : > { %v2905_v38 = vpop.permute.xlu1 %2904 }
 0x587   : > { %2994 = vst.msk [vmem:[%s5030_s16 + $0x38] sm:$0xff] %vm2986_vm2, %v2905_v38 }
 0x588   : > { %v3869_v46 = vpop.f32.mrf.mxu1  ;;  %v2903_v47 = vpop.permute.xlu0 %2902 }
 0x589   : > { %2993 = vst.msk [vmem:[%s5030_s16 + $0x30] sm:$0xff] %vm2986_vm2, %v2903_v47  ;;  %2944 = vrot.lane.b32.xlu1 %v3869_v46, %s4088_s21 }
 0x58a   : > { %v2829_v8 = vpop.f32.mrf.mxu1 }
 0x58b   : > { %2942 = vrot.lane.b32.xlu0 %v2829_v8, %s4088_s21 }
 0x58f   : > { %v2909_v36 = vpop.permute.xlu1 %2908 }
 0x590   : > { %2996 = vst.msk [vmem:[%s5030_s16 + $0x48] sm:$0xff] %vm2986_vm2, %v2909_v36 }
 0x591   : > { %v2907_v43 = vpop.permute.xlu0 %2906 }
 0x592   : > { %2995 = vst.msk [vmem:[%s5030_s16 + $0x40] sm:$0xff] %vm2986_vm2, %v2907_v43 }
 0x595   : > { %v3872_v39 = vpop.f32.mrf.mxu1 }
 0x596   : > { %2948 = vrot.lane.b32.xlu1 %v3872_v39, %s4088_s21 }
 0x597   : > { %v2839_v40 = vpop.f32.mrf.mxu1 }
 0x598   : > { %2946 = vrot.lane.b32.xlu0 %v2839_v40, %s4088_s21 }
 0x59c   : > { %v2913_v51 = vpop.permute.xlu1 %2912 }
 0x59d   : > { %2998 = vst.msk [vmem:[%s5030_s16 + $0x58] sm:$0xff] %vm2986_vm2, %v2913_v51 }
 0x59e   : > { %v2911_v52 = vpop.permute.xlu0 %2910 }
 0x59f   : > { %2997 = vst.msk [vmem:[%s5030_s16 + $0x50] sm:$0xff] %vm2986_vm2, %v2911_v52 }
 0x5a3   : > { %v3875_v7 = vpop.f32.mrf.mxu1 }
 0x5a4   : > { %2952 = vrot.lane.b32.xlu1 %v3875_v7, %s4088_s21 }
 0x5a5   : > { %v2849_v17 = vpop.f32.mrf.mxu1 }
 0x5a6   : > { %2950 = vrot.lane.b32.xlu0 %v2849_v17, %s4088_s21 }
 0x5aa   : > { %v2917_v30 = vpop.permute.xlu1 %2916 }
 0x5ab   : > { %3000 = vst.msk [vmem:[%s5030_s16 + $0x68] sm:$0xff] %vm2986_vm2, %v2917_v30 }
 0x5ac   : > { %v2915_v45 = vpop.permute.xlu0 %2914 }
 0x5ad   : > { %2999 = vst.msk [vmem:[%s5030_s16 + $0x60] sm:$0xff] %vm2986_vm2, %v2915_v45 }
 0x5b3   : > { %v2921_v37 = vpop.permute.xlu1 %2920 }
 0x5b4   : > { %3002 = vst.msk [vmem:[%s5030_s16 + $0x78] sm:$0xff] %vm2986_vm2, %v2921_v37 }
 0x5b5   : > { %v2919_v10 = vpop.permute.xlu0 %2918 }
 0x5b6   : > { %3001 = vst.msk [vmem:[%s5030_s16 + $0x70] sm:$0xff] %vm2986_vm2, %v2919_v10 }
 0x5c0   : > { %v2925_v9 = vpop.permute.xlu1 %2924 }
 0x5c1   : > { %3004 = vst.msk [vmem:[%s5030_s16 + $0x88] sm:$0xff] %vm2986_vm2, %v2925_v9 }
 0x5c2   : > { %v2923_v35 = vpop.permute.xlu0 %2922 }
 0x5c3   : > { %3003 = vst.msk [vmem:[%s5030_s16 + $0x80] sm:$0xff] %vm2986_vm2, %v2923_v35 }
 0x5ce   : > { %v2929_v63 = vpop.permute.xlu1 %2928 }
 0x5cf   : > { %3006 = vst.msk [vmem:[%s5030_s16 + $0x98] sm:$0xff] %vm2986_vm2, %v2929_v63 }
 0x5d0   : > { %v2927_v0 = vpop.permute.xlu0 %2926 }
 0x5d1   : > { %3005 = vst.msk [vmem:[%s5030_s16 + $0x90] sm:$0xff] %vm2986_vm2, %v2927_v0 }
 0x5d7   : > { %v2933_v16 = vpop.permute.xlu1 %2932 }
 0x5d8   : > { %3008 = vst.msk [vmem:[%s5030_s16 + $0xa8] sm:$0xff] %vm2986_vm2, %v2933_v16 }
 0x5d9   : > { %v2931_v53 = vpop.permute.xlu0 %2930 }
 0x5da   : > { %3007 = vst.msk [vmem:[%s5030_s16 + $0xa0] sm:$0xff] %vm2986_vm2, %v2931_v53 }
 0x5e4   : > { %v2937_v22 = vpop.permute.xlu1 %2936 }
 0x5e5   : > { %3010 = vst.msk [vmem:[%s5030_s16 + $0xb8] sm:$0xff] %vm2986_vm2, %v2937_v22 }
 0x5e6   : > { %v2935_v49 = vpop.permute.xlu0 %2934 }
 0x5e7   : > { %3009 = vst.msk [vmem:[%s5030_s16 + $0xb0] sm:$0xff] %vm2986_vm2, %v2935_v49 }
 0x5f2   : > { %v2941_v44 = vpop.permute.xlu1 %2940 }
 0x5f3   : > { %3012 = vst.msk [vmem:[%s5030_s16 + $0xc8] sm:$0xff] %vm2986_vm2, %v2941_v44 }
 0x5f4   : > { %v2939_v24 = vpop.permute.xlu0 %2938 }
 0x5f5   : > { %3011 = vst.msk [vmem:[%s5030_s16 + $0xc0] sm:$0xff] %vm2986_vm2, %v2939_v24 }
 0x5fb   : > { %v2945_v20 = vpop.permute.xlu1 %2944 }
 0x5fc   : > { %3014 = vst.msk [vmem:[%s5030_s16 + $0xd8] sm:$0xff] %vm2986_vm2, %v2945_v20 }
 0x5fd   : > { %v2943_v21 = vpop.permute.xlu0 %2942 }
 0x5fe   : > { %3013 = vst.msk [vmem:[%s5030_s16 + $0xd0] sm:$0xff] %vm2986_vm2, %v2943_v21 }
 0x608   : > { %v2949_v26 = vpop.permute.xlu1 %2948 }
 0x609   : > { %3016 = vst.msk [vmem:[%s5030_s16 + $0xe8] sm:$0xff] %vm2986_vm2, %v2949_v26 }
 0x60a   : > { %v2947_v60 = vpop.permute.xlu0 %2946 }
 0x60b   : > { %3015 = vst.msk [vmem:[%s5030_s16 + $0xe0] sm:$0xff] %vm2986_vm2, %v2947_v60 }
 0x616   : > { %v2953_v27 = vpop.permute.xlu1 %2952 }
 0x617   : > { %3018 = vst.msk [vmem:[%s5030_s16 + $0xf8] sm:$0xff] %vm2986_vm2, %v2953_v27 }
 0x618   : > { %v2951_v25 = vpop.permute.xlu0 %2950 }
 0x619   : > { %3017 = vst.msk [vmem:[%s5030_s16 + $0xf0] sm:$0xff] %vm2986_vm2, %v2951_v25 }
 0x61a   : > { %4028 = shalt.err (!%p4025_p3)
}
 0x61b   : > { %s4029_s4 = scalar_lea.hbm %s5979_s27, 4096  ;;  %s4033_s7 = scalar_lea.hbm %s6031_s2, 12288 }
 0x61c   : > { %p4030_p4 = scmp.ne.s32.totalorder %s5979_s27, %s4029_s4  ;;  %p4034_p9 = scmp.lt.s32.totalorder %s5979_s27, %s6031_s2 }
 0x61d   : > { %p4035_p10 = scmp.lt.s32.totalorder %s4033_s7, %s4029_s4 }
 0x61e   : > { %p4031_p7 = pnand %p4030_p4, %p4145_p5 }
 0x61f   : > { %p4036_p11 = por %p4035_p10, %p4034_p9 }
 0x620   : > { %p4032_p8 = pneg %p4031_p7 }
 0x622   : > { %p4037_p12 = pnand %p4036_p11, %p4032_p8 }
 0x624   : > { %4040 = shalt.err (!%p4037_p12)
}
 0x625   : > { %s4090_s16 = smov 128   ;;  %s4091_s17 = smov 8  }
 0x626   : > { %3876 = dma.vmem_to_hbm [thread:$0]  (%p4145_p5), %s5981_s23, 4096, %s5979_s27, %s5989_s28, %s4090_s16, %s4090_s16, %s4091_s17  }
 0x627 PF: > { %p3882_p13 = scmp.ge.s32.totalorder %s4075_s12, 2  ;;  %s3048_s25 = sand.u32 1, %s4063_s9  }
 0x628   : > { %s3049_s21 = scalar_lea.sflag [#allocation3], %s3048_s25 }
 0x629   : > { %p3879_p0 = pnand %p3882_p13, %p4149_p6 }
 0x62b   : > { %p3880_p1 = pneg %p3879_p0 }
 0x62d   : > { %4058 = dma.done.wait (%p3880_p1), %s3049_s21, 4096  }
 0x62e   : > { %4060 = vsyncadd (%p3880_p1), %s3049_s21, 4294963200  ;;  %p12_p2 = scmp.ge.s32.totalorder %s4132_s15, 5   ;;  %s6149_s9 = smov %s4067_s10 }
 0x62f   : > { %s6150_s10 = smov %s4071_s11  ;;  %s6151_s11 = smov %s4143_s18 }
 0x630   : > { %s6152_s12 = smov %s4132_s15  ;;  %14 = sbr.rel (!%p12_p2) target bundleno = 3 (0x3), region = 63 }
 0x635   :  { %3054 = vsyncpa [#allocation3], 1 }
 0x636   :  { %3056 = vsyncpa [#allocation3 + $0x1], 1 }

</bundles_post_ra>
